<compile_context>
chip_gen: v7x
topology: tpu7x:2x2x1
jax: 0.10.0
libtpu: 0.0.40
codegen_flags: <defaults>
</compile_context>

<pallas_src>
import functools

import jax
import jax.numpy as jnp
from jax.experimental import pallas as pl
from jax.experimental.pallas import tpu as pltpu


def _lstm_kernel(T, B, H,
                 x_ref, wih0_ref, whh0_ref, b0_ref,
                 wih1_ref, whh1_ref, b1_ref, wfc_ref, bfc_ref,
                 out_ref, gx_ref, h0_ref):
    # x_ref   : (T*B, Dp) f32   time-major input, features zero-padded to Dp
    # wih*_ref: (K, 4H)  bf16   input->gates weights, gate order (i, f, o, g)
    # whh*_ref: (H, 4H)  bf16   hidden->gates weights, gate order (i, f, o, g)
    # b*_ref  : (1, 4H)  f32    fused bias (bias_ih + bias_hh)
    # wfc_ref : (1, H) f32, bfc_ref: (1, 1) f32
    # gx_ref  : (T, B, 4H) f32 scratch  (precomputed input projections)
    # h0_ref  : (T, B, H)  f32 scratch  (layer-0 hidden states)

    def cell(gx, h, c, whh_ref):
        # Serial-path work: one K=128 bf16 MXU pass + VPU/EUP gate math.
        gates = gx + jnp.dot(h.astype(jnp.bfloat16), whh_ref[...],
                             preferred_element_type=jnp.float32)
        s = jax.nn.sigmoid(gates[:, :3 * H])      # (i, f, o) in one slab
        g = jnp.tanh(gates[:, 3 * H:])
        i = s[:, :H]
        f = s[:, H:2 * H]
        o = s[:, 2 * H:]
        c_new = f * c + i * g
        h_new = o * jnp.tanh(c_new)
        return h_new, c_new

    z = jnp.zeros((B, H), jnp.float32)

    # ---- Layer 0 -----------------------------------------------------------
    # Batched input projection for all T steps at once (M = T*B), bias folded.
    gx0 = jnp.dot(x_ref[...].astype(jnp.bfloat16), wih0_ref[...],
                  preferred_element_type=jnp.float32) + b0_ref[...]
    gx_ref[...] = gx0.reshape(T, B, 4 * H)

    def step0(t, carry):
        h, c = carry
        h, c = cell(gx_ref[t], h, c, whh0_ref)
        h0_ref[t] = h
        return h, c

    jax.lax.fori_loop(0, T, step0, (z, z), unroll=True)

    # ---- Layer 1 -----------------------------------------------------------
    gx1 = jnp.dot(h0_ref[...].reshape(T * B, H).astype(jnp.bfloat16),
                  wih1_ref[...], preferred_element_type=jnp.float32) + b1_ref[...]
    gx_ref[...] = gx1.reshape(T, B, 4 * H)

    def step1(t, carry):
        h, c = carry
        return cell(gx_ref[t], h, c, whh1_ref)

    h1, _ = jax.lax.fori_loop(0, T, step1, (z, z), unroll=True)

    # ---- FC (output_size = 1): VPU multiply + lane reduction ---------------
    out = jnp.sum(h1 * wfc_ref[...], axis=-1, keepdims=True) + bfc_ref[...]
    out_ref[...] = out.astype(out_ref.dtype)


def lstm_model_forward(x, params):
    """x: (B, T, D) batch_first float32.  Returns (B, 1)."""
    B, T, D = x.shape
    H = params["whh0"].shape[0]          # whh0: (H, 4H)
    Dp = params["wih0"].shape[0]         # wih0: (Dp, 4H)
    Bp = ((B + 7) // 8) * 8              # pad batch to a full sublane tile

    x_tm = jnp.transpose(x, (1, 0, 2))                        # (T, B, D)
    x_tm = jnp.pad(x_tm, ((0, 0), (0, Bp - B), (0, Dp - D)))  # (T, Bp, Dp)
    x_flat = x_tm.reshape(T * Bp, Dp)                         # (T*Bp, Dp)

    vmem = pl.BlockSpec(memory_space=pltpu.MemorySpace.VMEM)
    out = pl.pallas_call(
        functools.partial(_lstm_kernel, T, Bp, H),
        out_shape=jax.ShapeDtypeStruct((Bp, 1), jnp.float32),
        in_specs=[vmem] * 9,
        out_specs=vmem,
        scratch_shapes=[
            pltpu.VMEM((T, Bp, 4 * H), jnp.float32),   # precomputed gate inputs
            pltpu.VMEM((T, Bp, H), jnp.float32),       # layer-0 hidden states
        ],
    )(x_flat,
      params["wih0"], params["whh0"], params["b0"],
      params["wih1"], params["whh1"], params["b1"],
      params["wfc"], params["bfc"])
    return out[:B]


def _reorder_gates(a, axis=0):
    """PyTorch gate order (i, f, g, o) -> kernel order (i, f, o, g)."""
    i, f, g, o = jnp.split(a, 4, axis=axis)
    return jnp.concatenate([i, f, o, g], axis=axis)


def _pack_ih(wih, in_dim_pad):
    """(4H, Din) -> (in_dim_pad, 4H) bf16, padded rows are zero."""
    din = wih.shape[1]
    w = _reorder_gates(wih)                                   # (4H, Din)
    w = jnp.pad(w, ((0, 0), (0, in_dim_pad - din)))           # (4H, Dp)
    return jnp.asarray(w.T, jnp.bfloat16)                     # (Dp, 4H)


def _pack_hh(whh):
    """(4H, H) -> (H, 4H) bf16."""
    return jnp.asarray(_reorder_gates(whh).T, jnp.bfloat16)


def init_params(key, D=7, H=128):
    """Deterministic PyTorch-style U(-1/sqrt(H), 1/sqrt(H)) init."""
    ks = jax.random.split(key, 10)
    s = 1.0 / float(jnp.sqrt(H))

    def u(k, shape):
        return jax.random.uniform(k, shape, jnp.float32, -s, s)

    wih0 = u(ks[0], (4 * H, D)); whh0 = u(ks[1], (4 * H, H))
    bih0 = u(ks[2], (4 * H,));   bhh0 = u(ks[3], (4 * H,))
    wih1 = u(ks[4], (4 * H, H)); whh1 = u(ks[5], (4 * H, H))
    bih1 = u(ks[6], (4 * H,));   bhh1 = u(ks[7], (4 * H,))
    wfc = u(ks[8], (1, H));      bfc = u(ks[9], (1,))

    Dp = 128  # pad input features to one full lane group

    kernel_params = dict(
        wih0=_pack_ih(wih0, Dp), whh0=_pack_hh(whh0),
        b0=_reorder_gates(bih0 + bhh0)[None, :].astype(jnp.float32),
        wih1=_pack_ih(wih1, H), whh1=_pack_hh(whh1),
        b1=_reorder_gates(bih1 + bhh1)[None, :].astype(jnp.float32),
        wfc=wfc, bfc=bfc[None, :])
    torch_style = dict(wih0=wih0, whh0=whh0, bih0=bih0, bhh0=bhh0,
                       wih1=wih1, whh1=whh1, bih1=bih1, bhh1=bhh1,
                       wfc=wfc, bfc=bfc)
    return kernel_params, torch_style


def lstm_model_reference(x, p):
    """Pure-JAX (f32) re-implementation of the PyTorch forward for verification."""
    B, T, D = x.shape
    H = p["whh0"].shape[1]

    def run_layer(inp, wih, whh, bih, bhh):
        def step(carry, x_t):
            h, c = carry
            gates = x_t @ wih.T + h @ whh.T + bih + bhh
            i = jax.nn.sigmoid(gates[:, 0 * H:1 * H])
            f = jax.nn.sigmoid(gates[:, 1 * H:2 * H])
            g = jnp.tanh(gates[:, 2 * H:3 * H])
            o = jax.nn.sigmoid(gates[:, 3 * H:4 * H])
            c = f * c + i * g
            h = o * jnp.tanh(c)
            return (h, c), h

        init = (jnp.zeros((B, H), jnp.float32), jnp.zeros((B, H), jnp.float32))
        _, ys = jax.lax.scan(step, init, jnp.transpose(inp, (1, 0, 2)))
        return jnp.transpose(ys, (1, 0, 2))

    out0 = run_layer(x, p["wih0"], p["whh0"], p["bih0"], p["bhh0"])
    out1 = run_layer(out0, p["wih1"], p["whh1"], p["bih1"], p["bhh1"])
    last = out1[:, -1, :]
    return last @ p["wfc"].T + p["bfc"]


if __name__ == "__main__":
    B, T, D, H = 2, 8, 7, 128
    key = jax.random.PRNGKey(0)
    k_x, k_p = jax.random.split(key)
    x = jax.random.normal(k_x, (B, T, D), jnp.float32)
    kernel_params, torch_params = init_params(k_p, D=D, H=H)

    out = jax.block_until_ready(lstm_model_forward(x, kernel_params))
    ref = jax.block_until_ready(lstm_model_reference(x, torch_params))

    assert out.shape == (B, 1), out.shape
    # bf16 MXU operands with f32 accumulation -> loosened tolerance vs f32 ref.
    assert jnp.allclose(out, ref, atol=5e-2, rtol=5e-2), (out, ref)

    print("KERNEL_OK")
</pallas_src>

<mosaic_0001>
module attributes {stable_mosaic.version = 11 : i64} {
  func.func @_lstm_kernel(%arg0: memref<64x128xf32, #tpu.memory_space<vmem>>, %arg1: memref<128x512xbf16, #tpu.memory_space<vmem>>, %arg2: memref<128x512xbf16, #tpu.memory_space<vmem>>, %arg3: memref<1x512xf32, #tpu.memory_space<vmem>>, %arg4: memref<128x512xbf16, #tpu.memory_space<vmem>>, %arg5: memref<128x512xbf16, #tpu.memory_space<vmem>>, %arg6: memref<1x512xf32, #tpu.memory_space<vmem>>, %arg7: memref<1x128xf32, #tpu.memory_space<vmem>>, %arg8: memref<1x1xf32, #tpu.memory_space<vmem>>, %arg9: memref<8x1xf32, #tpu.memory_space<vmem>>, %arg10: memref<8x8x512xf32, #tpu.memory_space<vmem>>, %arg11: memref<8x8x128xf32, #tpu.memory_space<vmem>>) attributes {dimension_semantics = [], scalar_prefetch = 0 : i64, scratch_operands = 2 : i64, tpu.core_type = #tpu.core_type<tc>} {
    %cst = arith.constant 0.000000e+00 : f32
    %0 = vector.broadcast %cst : f32 to vector<8x128xf32>
    %c0 = arith.constant 0 : index
    %c0_0 = arith.constant 0 : index
    %1 = vector.load %arg0[%c0, %c0_0] : memref<64x128xf32, #tpu.memory_space<vmem>>, vector<64x128xf32>
    %2 = arith.truncf %1 : vector<64x128xf32> to vector<64x128xbf16>
    %c0_1 = arith.constant 0 : index
    %c0_2 = arith.constant 0 : index
    %3 = vector.load %arg1[%c0_1, %c0_2] : memref<128x512xbf16, #tpu.memory_space<vmem>>, vector<128x512xbf16>
    %cst_3 = arith.constant dense<0.000000e+00> : vector<64x512xf32>
    %4 = tpu.matmul %2, %3, %cst_3 {dimension_numbers = #tpu.dot_dimension_numbers<[1], [0], [0], [1], [0, 0, 1, 1], [], []>} : vector<64x128xbf16>, vector<128x512xbf16>, vector<64x512xf32> -> vector<64x512xf32>
    %c0_4 = arith.constant 0 : index
    %c0_5 = arith.constant 0 : index
    %5 = vector.load %arg3[%c0_4, %c0_5] : memref<1x512xf32, #tpu.memory_space<vmem>>, vector<1x512xf32>
    %6 = vector.broadcast %5 : vector<1x512xf32> to vector<64x512xf32>
    %7 = arith.addf %4, %6 : vector<64x512xf32>
    %8 = vector.shape_cast %7 : vector<64x512xf32> to vector<8x8x512xf32>
    %c0_6 = arith.constant 0 : index
    %c0_7 = arith.constant 0 : index
    %c0_8 = arith.constant 0 : index
    %9 = vector.load %arg10[%c0_6, %c0_7, %c0_8] : memref<8x8x512xf32, #tpu.memory_space<vmem>>, vector<8x8x512xf32>
    tpu.vector_store %arg10[%c0_6, %c0_7, %c0_8], %8 {strides = array<i32>} : memref<8x8x512xf32, #tpu.memory_space<vmem>>, vector<8x8x512xf32>,
    %c0_i32 = arith.constant 0 : i32
    %10 = arith.index_cast %c0_i32 : i32 to index
    %c0_9 = arith.constant 0 : index
    %c0_10 = arith.constant 0 : index
    %11 = vector.load %arg10[%10, %c0_9, %c0_10] : memref<8x8x512xf32, #tpu.memory_space<vmem>>, vector<1x8x512xf32>
    %12 = vector.shape_cast %11 : vector<1x8x512xf32> to vector<8x512xf32>
    %13 = arith.truncf %0 : vector<8x128xf32> to vector<8x128xbf16>
    %c0_11 = arith.constant 0 : index
    %c0_12 = arith.constant 0 : index
    %14 = vector.load %arg2[%c0_11, %c0_12] : memref<128x512xbf16, #tpu.memory_space<vmem>>, vector<128x512xbf16>
    %cst_13 = arith.constant dense<0.000000e+00> : vector<8x512xf32>
    %15 = tpu.matmul %13, %14, %cst_13 {dimension_numbers = #tpu.dot_dimension_numbers<[1], [0], [0], [1], [0, 0, 1, 1], [], []>} : vector<8x128xbf16>, vector<128x512xbf16>, vector<8x512xf32> -> vector<8x512xf32>
    %16 = arith.addf %12, %15 : vector<8x512xf32>
    %17 = vector.extract_strided_slice %16 {offsets = [0, 0], sizes = [8, 384], strides = [1, 1]} : vector<8x512xf32> to vector<8x384xf32>
    %18 = arith.negf %17 : vector<8x384xf32>
    %19 = math.exp %18 : vector<8x384xf32>
    %cst_14 = arith.constant 1.000000e+00 : f32
    %20 = vector.broadcast %cst_14 : f32 to vector<8x384xf32>
    %21 = arith.addf %20, %19 : vector<8x384xf32>
    %22 = arith.divf %20, %21 : vector<8x384xf32>
    %23 = vector.extract_strided_slice %16 {offsets = [0, 384], sizes = [8, 128], strides = [1, 1]} : vector<8x512xf32> to vector<8x128xf32>
    %24 = math.tanh %23 : vector<8x128xf32>
    %25 = vector.extract_strided_slice %22 {offsets = [0, 0], sizes = [8, 128], strides = [1, 1]} : vector<8x384xf32> to vector<8x128xf32>
    %26 = vector.extract_strided_slice %22 {offsets = [0, 128], sizes = [8, 128], strides = [1, 1]} : vector<8x384xf32> to vector<8x128xf32>
    %27 = vector.extract_strided_slice %22 {offsets = [0, 256], sizes = [8, 128], strides = [1, 1]} : vector<8x384xf32> to vector<8x128xf32>
    %28 = arith.mulf %26, %0 : vector<8x128xf32>
    %29 = arith.mulf %25, %24 : vector<8x128xf32>
    %30 = arith.addf %28, %29 : vector<8x128xf32>
    %31 = math.tanh %30 : vector<8x128xf32>
    %32 = arith.mulf %27, %31 : vector<8x128xf32>
    %33 = arith.index_cast %c0_i32 : i32 to index
    %c0_15 = arith.constant 0 : index
    %c0_16 = arith.constant 0 : index
    %34 = vector.load %arg11[%33, %c0_15, %c0_16] : memref<8x8x128xf32, #tpu.memory_space<vmem>>, vector<1x8x128xf32>
    %35 = vector.shape_cast %34 : vector<1x8x128xf32> to vector<8x128xf32>
    %36 = vector.shape_cast %32 : vector<8x128xf32> to vector<1x8x128xf32>
    tpu.vector_store %arg11[%33, %c0_15, %c0_16], %36 {strides = array<i32>} : memref<8x8x128xf32, #tpu.memory_space<vmem>>, vector<1x8x128xf32>,
    %c1_i32 = arith.constant 1 : i32
    %37 = arith.index_cast %c1_i32 : i32 to index
    %c0_17 = arith.constant 0 : index
    %c0_18 = arith.constant 0 : index
    %38 = vector.load %arg10[%37, %c0_17, %c0_18] : memref<8x8x512xf32, #tpu.memory_space<vmem>>, vector<1x8x512xf32>
    %39 = vector.shape_cast %38 : vector<1x8x512xf32> to vector<8x512xf32>
    %40 = arith.truncf %32 : vector<8x128xf32> to vector<8x128xbf16>
    %c0_19 = arith.constant 0 : index
    %c0_20 = arith.constant 0 : index
    %41 = vector.load %arg2[%c0_19, %c0_20] : memref<128x512xbf16, #tpu.memory_space<vmem>>, vector<128x512xbf16>
    %cst_21 = arith.constant dense<0.000000e+00> : vector<8x512xf32>
    %42 = tpu.matmul %40, %41, %cst_21 {dimension_numbers = #tpu.dot_dimension_numbers<[1], [0], [0], [1], [0, 0, 1, 1], [], []>} : vector<8x128xbf16>, vector<128x512xbf16>, vector<8x512xf32> -> vector<8x512xf32>
    %43 = arith.addf %39, %42 : vector<8x512xf32>
    %44 = vector.extract_strided_slice %43 {offsets = [0, 0], sizes = [8, 384], strides = [1, 1]} : vector<8x512xf32> to vector<8x384xf32>
    %45 = arith.negf %44 : vector<8x384xf32>
    %46 = math.exp %45 : vector<8x384xf32>
    %cst_22 = arith.constant 1.000000e+00 : f32
    %47 = vector.broadcast %cst_22 : f32 to vector<8x384xf32>
    %48 = arith.addf %47, %46 : vector<8x384xf32>
    %49 = arith.divf %47, %48 : vector<8x384xf32>
    %50 = vector.extract_strided_slice %43 {offsets = [0, 384], sizes = [8, 128], strides = [1, 1]} : vector<8x512xf32> to vector<8x128xf32>
    %51 = math.tanh %50 : vector<8x128xf32>
    %52 = vector.extract_strided_slice %49 {offsets = [0, 0], sizes = [8, 128], strides = [1, 1]} : vector<8x384xf32> to vector<8x128xf32>
    %53 = vector.extract_strided_slice %49 {offsets = [0, 128], sizes = [8, 128], strides = [1, 1]} : vector<8x384xf32> to vector<8x128xf32>
    %54 = vector.extract_strided_slice %49 {offsets = [0, 256], sizes = [8, 128], strides = [1, 1]} : vector<8x384xf32> to vector<8x128xf32>
    %55 = arith.mulf %53, %30 : vector<8x128xf32>
    %56 = arith.mulf %52, %51 : vector<8x128xf32>
    %57 = arith.addf %55, %56 : vector<8x128xf32>
    %58 = math.tanh %57 : vector<8x128xf32>
    %59 = arith.mulf %54, %58 : vector<8x128xf32>
    %60 = arith.index_cast %c1_i32 : i32 to index
    %c0_23 = arith.constant 0 : index
    %c0_24 = arith.constant 0 : index
    %61 = vector.load %arg11[%60, %c0_23, %c0_24] : memref<8x8x128xf32, #tpu.memory_space<vmem>>, vector<1x8x128xf32>
    %62 = vector.shape_cast %61 : vector<1x8x128xf32> to vector<8x128xf32>
    %63 = vector.shape_cast %59 : vector<8x128xf32> to vector<1x8x128xf32>
    tpu.vector_store %arg11[%60, %c0_23, %c0_24], %63 {strides = array<i32>} : memref<8x8x128xf32, #tpu.memory_space<vmem>>, vector<1x8x128xf32>,
    %c2_i32 = arith.constant 2 : i32
    %64 = arith.index_cast %c2_i32 : i32 to index
    %c0_25 = arith.constant 0 : index
    %c0_26 = arith.constant 0 : index
    %65 = vector.load %arg10[%64, %c0_25, %c0_26] : memref<8x8x512xf32, #tpu.memory_space<vmem>>, vector<1x8x512xf32>
    %66 = vector.shape_cast %65 : vector<1x8x512xf32> to vector<8x512xf32>
    %67 = arith.truncf %59 : vector<8x128xf32> to vector<8x128xbf16>
    %c0_27 = arith.constant 0 : index
    %c0_28 = arith.constant 0 : index
    %68 = vector.load %arg2[%c0_27, %c0_28] : memref<128x512xbf16, #tpu.memory_space<vmem>>, vector<128x512xbf16>
    %cst_29 = arith.constant dense<0.000000e+00> : vector<8x512xf32>
    %69 = tpu.matmul %67, %68, %cst_29 {dimension_numbers = #tpu.dot_dimension_numbers<[1], [0], [0], [1], [0, 0, 1, 1], [], []>} : vector<8x128xbf16>, vector<128x512xbf16>, vector<8x512xf32> -> vector<8x512xf32>
    %70 = arith.addf %66, %69 : vector<8x512xf32>
    %71 = vector.extract_strided_slice %70 {offsets = [0, 0], sizes = [8, 384], strides = [1, 1]} : vector<8x512xf32> to vector<8x384xf32>
    %72 = arith.negf %71 : vector<8x384xf32>
    %73 = math.exp %72 : vector<8x384xf32>
    %cst_30 = arith.constant 1.000000e+00 : f32
    %74 = vector.broadcast %cst_30 : f32 to vector<8x384xf32>
    %75 = arith.addf %74, %73 : vector<8x384xf32>
    %76 = arith.divf %74, %75 : vector<8x384xf32>
    %77 = vector.extract_strided_slice %70 {offsets = [0, 384], sizes = [8, 128], strides = [1, 1]} : vector<8x512xf32> to vector<8x128xf32>
    %78 = math.tanh %77 : vector<8x128xf32>
    %79 = vector.extract_strided_slice %76 {offsets = [0, 0], sizes = [8, 128], strides = [1, 1]} : vector<8x384xf32> to vector<8x128xf32>
    %80 = vector.extract_strided_slice %76 {offsets = [0, 128], sizes = [8, 128], strides = [1, 1]} : vector<8x384xf32> to vector<8x128xf32>
    %81 = vector.extract_strided_slice %76 {offsets = [0, 256], sizes = [8, 128], strides = [1, 1]} : vector<8x384xf32> to vector<8x128xf32>
    %82 = arith.mulf %80, %57 : vector<8x128xf32>
    %83 = arith.mulf %79, %78 : vector<8x128xf32>
    %84 = arith.addf %82, %83 : vector<8x128xf32>
    %85 = math.tanh %84 : vector<8x128xf32>
    %86 = arith.mulf %81, %85 : vector<8x128xf32>
    %87 = arith.index_cast %c2_i32 : i32 to index
    %c0_31 = arith.constant 0 : index
    %c0_32 = arith.constant 0 : index
    %88 = vector.load %arg11[%87, %c0_31, %c0_32] : memref<8x8x128xf32, #tpu.memory_space<vmem>>, vector<1x8x128xf32>
    %89 = vector.shape_cast %88 : vector<1x8x128xf32> to vector<8x128xf32>
    %90 = vector.shape_cast %86 : vector<8x128xf32> to vector<1x8x128xf32>
    tpu.vector_store %arg11[%87, %c0_31, %c0_32], %90 {strides = array<i32>} : memref<8x8x128xf32, #tpu.memory_space<vmem>>, vector<1x8x128xf32>,
    %c3_i32 = arith.constant 3 : i32
    %91 = arith.index_cast %c3_i32 : i32 to index
    %c0_33 = arith.constant 0 : index
    %c0_34 = arith.constant 0 : index
    %92 = vector.load %arg10[%91, %c0_33, %c0_34] : memref<8x8x512xf32, #tpu.memory_space<vmem>>, vector<1x8x512xf32>
    %93 = vector.shape_cast %92 : vector<1x8x512xf32> to vector<8x512xf32>
    %94 = arith.truncf %86 : vector<8x128xf32> to vector<8x128xbf16>
    %c0_35 = arith.constant 0 : index
    %c0_36 = arith.constant 0 : index
    %95 = vector.load %arg2[%c0_35, %c0_36] : memref<128x512xbf16, #tpu.memory_space<vmem>>, vector<128x512xbf16>
    %cst_37 = arith.constant dense<0.000000e+00> : vector<8x512xf32>
    %96 = tpu.matmul %94, %95, %cst_37 {dimension_numbers = #tpu.dot_dimension_numbers<[1], [0], [0], [1], [0, 0, 1, 1], [], []>} : vector<8x128xbf16>, vector<128x512xbf16>, vector<8x512xf32> -> vector<8x512xf32>
    %97 = arith.addf %93, %96 : vector<8x512xf32>
    %98 = vector.extract_strided_slice %97 {offsets = [0, 0], sizes = [8, 384], strides = [1, 1]} : vector<8x512xf32> to vector<8x384xf32>
    %99 = arith.negf %98 : vector<8x384xf32>
    %100 = math.exp %99 : vector<8x384xf32>
    %cst_38 = arith.constant 1.000000e+00 : f32
    %101 = vector.broadcast %cst_38 : f32 to vector<8x384xf32>
    %102 = arith.addf %101, %100 : vector<8x384xf32>
    %103 = arith.divf %101, %102 : vector<8x384xf32>
    %104 = vector.extract_strided_slice %97 {offsets = [0, 384], sizes = [8, 128], strides = [1, 1]} : vector<8x512xf32> to vector<8x128xf32>
    %105 = math.tanh %104 : vector<8x128xf32>
    %106 = vector.extract_strided_slice %103 {offsets = [0, 0], sizes = [8, 128], strides = [1, 1]} : vector<8x384xf32> to vector<8x128xf32>
    %107 = vector.extract_strided_slice %103 {offsets = [0, 128], sizes = [8, 128], strides = [1, 1]} : vector<8x384xf32> to vector<8x128xf32>
    %108 = vector.extract_strided_slice %103 {offsets = [0, 256], sizes = [8, 128], strides = [1, 1]} : vector<8x384xf32> to vector<8x128xf32>
    %109 = arith.mulf %107, %84 : vector<8x128xf32>
    %110 = arith.mulf %106, %105 : vector<8x128xf32>
    %111 = arith.addf %109, %110 : vector<8x128xf32>
    %112 = math.tanh %111 : vector<8x128xf32>
    %113 = arith.mulf %108, %112 : vector<8x128xf32>
    %114 = arith.index_cast %c3_i32 : i32 to index
    %c0_39 = arith.constant 0 : index
    %c0_40 = arith.constant 0 : index
    %115 = vector.load %arg11[%114, %c0_39, %c0_40] : memref<8x8x128xf32, #tpu.memory_space<vmem>>, vector<1x8x128xf32>
    %116 = vector.shape_cast %115 : vector<1x8x128xf32> to vector<8x128xf32>
    %117 = vector.shape_cast %113 : vector<8x128xf32> to vector<1x8x128xf32>
    tpu.vector_store %arg11[%114, %c0_39, %c0_40], %117 {strides = array<i32>} : memref<8x8x128xf32, #tpu.memory_space<vmem>>, vector<1x8x128xf32>,
    %c4_i32 = arith.constant 4 : i32
    %118 = arith.index_cast %c4_i32 : i32 to index
    %c0_41 = arith.constant 0 : index
    %c0_42 = arith.constant 0 : index
    %119 = vector.load %arg10[%118, %c0_41, %c0_42] : memref<8x8x512xf32, #tpu.memory_space<vmem>>, vector<1x8x512xf32>
    %120 = vector.shape_cast %119 : vector<1x8x512xf32> to vector<8x512xf32>
    %121 = arith.truncf %113 : vector<8x128xf32> to vector<8x128xbf16>
    %c0_43 = arith.constant 0 : index
    %c0_44 = arith.constant 0 : index
    %122 = vector.load %arg2[%c0_43, %c0_44] : memref<128x512xbf16, #tpu.memory_space<vmem>>, vector<128x512xbf16>
    %cst_45 = arith.constant dense<0.000000e+00> : vector<8x512xf32>
    %123 = tpu.matmul %121, %122, %cst_45 {dimension_numbers = #tpu.dot_dimension_numbers<[1], [0], [0], [1], [0, 0, 1, 1], [], []>} : vector<8x128xbf16>, vector<128x512xbf16>, vector<8x512xf32> -> vector<8x512xf32>
    %124 = arith.addf %120, %123 : vector<8x512xf32>
    %125 = vector.extract_strided_slice %124 {offsets = [0, 0], sizes = [8, 384], strides = [1, 1]} : vector<8x512xf32> to vector<8x384xf32>
    %126 = arith.negf %125 : vector<8x384xf32>
    %127 = math.exp %126 : vector<8x384xf32>
    %cst_46 = arith.constant 1.000000e+00 : f32
    %128 = vector.broadcast %cst_46 : f32 to vector<8x384xf32>
    %129 = arith.addf %128, %127 : vector<8x384xf32>
    %130 = arith.divf %128, %129 : vector<8x384xf32>
    %131 = vector.extract_strided_slice %124 {offsets = [0, 384], sizes = [8, 128], strides = [1, 1]} : vector<8x512xf32> to vector<8x128xf32>
    %132 = math.tanh %131 : vector<8x128xf32>
    %133 = vector.extract_strided_slice %130 {offsets = [0, 0], sizes = [8, 128], strides = [1, 1]} : vector<8x384xf32> to vector<8x128xf32>
    %134 = vector.extract_strided_slice %130 {offsets = [0, 128], sizes = [8, 128], strides = [1, 1]} : vector<8x384xf32> to vector<8x128xf32>
    %135 = vector.extract_strided_slice %130 {offsets = [0, 256], sizes = [8, 128], strides = [1, 1]} : vector<8x384xf32> to vector<8x128xf32>
    %136 = arith.mulf %134, %111 : vector<8x128xf32>
    %137 = arith.mulf %133, %132 : vector<8x128xf32>
    %138 = arith.addf %136, %137 : vector<8x128xf32>
    %139 = math.tanh %138 : vector<8x128xf32>
    %140 = arith.mulf %135, %139 : vector<8x128xf32>
    %141 = arith.index_cast %c4_i32 : i32 to index
    %c0_47 = arith.constant 0 : index
    %c0_48 = arith.constant 0 : index
    %142 = vector.load %arg11[%141, %c0_47, %c0_48] : memref<8x8x128xf32, #tpu.memory_space<vmem>>, vector<1x8x128xf32>
    %143 = vector.shape_cast %142 : vector<1x8x128xf32> to vector<8x128xf32>
    %144 = vector.shape_cast %140 : vector<8x128xf32> to vector<1x8x128xf32>
    tpu.vector_store %arg11[%141, %c0_47, %c0_48], %144 {strides = array<i32>} : memref<8x8x128xf32, #tpu.memory_space<vmem>>, vector<1x8x128xf32>,
    %c5_i32 = arith.constant 5 : i32
    %145 = arith.index_cast %c5_i32 : i32 to index
    %c0_49 = arith.constant 0 : index
    %c0_50 = arith.constant 0 : index
    %146 = vector.load %arg10[%145, %c0_49, %c0_50] : memref<8x8x512xf32, #tpu.memory_space<vmem>>, vector<1x8x512xf32>
    %147 = vector.shape_cast %146 : vector<1x8x512xf32> to vector<8x512xf32>
    %148 = arith.truncf %140 : vector<8x128xf32> to vector<8x128xbf16>
    %c0_51 = arith.constant 0 : index
    %c0_52 = arith.constant 0 : index
    %149 = vector.load %arg2[%c0_51, %c0_52] : memref<128x512xbf16, #tpu.memory_space<vmem>>, vector<128x512xbf16>
    %cst_53 = arith.constant dense<0.000000e+00> : vector<8x512xf32>
    %150 = tpu.matmul %148, %149, %cst_53 {dimension_numbers = #tpu.dot_dimension_numbers<[1], [0], [0], [1], [0, 0, 1, 1], [], []>} : vector<8x128xbf16>, vector<128x512xbf16>, vector<8x512xf32> -> vector<8x512xf32>
    %151 = arith.addf %147, %150 : vector<8x512xf32>
    %152 = vector.extract_strided_slice %151 {offsets = [0, 0], sizes = [8, 384], strides = [1, 1]} : vector<8x512xf32> to vector<8x384xf32>
    %153 = arith.negf %152 : vector<8x384xf32>
    %154 = math.exp %153 : vector<8x384xf32>
    %cst_54 = arith.constant 1.000000e+00 : f32
    %155 = vector.broadcast %cst_54 : f32 to vector<8x384xf32>
    %156 = arith.addf %155, %154 : vector<8x384xf32>
    %157 = arith.divf %155, %156 : vector<8x384xf32>
    %158 = vector.extract_strided_slice %151 {offsets = [0, 384], sizes = [8, 128], strides = [1, 1]} : vector<8x512xf32> to vector<8x128xf32>
    %159 = math.tanh %158 : vector<8x128xf32>
    %160 = vector.extract_strided_slice %157 {offsets = [0, 0], sizes = [8, 128], strides = [1, 1]} : vector<8x384xf32> to vector<8x128xf32>
    %161 = vector.extract_strided_slice %157 {offsets = [0, 128], sizes = [8, 128], strides = [1, 1]} : vector<8x384xf32> to vector<8x128xf32>
    %162 = vector.extract_strided_slice %157 {offsets = [0, 256], sizes = [8, 128], strides = [1, 1]} : vector<8x384xf32> to vector<8x128xf32>
    %163 = arith.mulf %161, %138 : vector<8x128xf32>
    %164 = arith.mulf %160, %159 : vector<8x128xf32>
    %165 = arith.addf %163, %164 : vector<8x128xf32>
    %166 = math.tanh %165 : vector<8x128xf32>
    %167 = arith.mulf %162, %166 : vector<8x128xf32>
    %168 = arith.index_cast %c5_i32 : i32 to index
    %c0_55 = arith.constant 0 : index
    %c0_56 = arith.constant 0 : index
    %169 = vector.load %arg11[%168, %c0_55, %c0_56] : memref<8x8x128xf32, #tpu.memory_space<vmem>>, vector<1x8x128xf32>
    %170 = vector.shape_cast %169 : vector<1x8x128xf32> to vector<8x128xf32>
    %171 = vector.shape_cast %167 : vector<8x128xf32> to vector<1x8x128xf32>
    tpu.vector_store %arg11[%168, %c0_55, %c0_56], %171 {strides = array<i32>} : memref<8x8x128xf32, #tpu.memory_space<vmem>>, vector<1x8x128xf32>,
    %c6_i32 = arith.constant 6 : i32
    %172 = arith.index_cast %c6_i32 : i32 to index
    %c0_57 = arith.constant 0 : index
    %c0_58 = arith.constant 0 : index
    %173 = vector.load %arg10[%172, %c0_57, %c0_58] : memref<8x8x512xf32, #tpu.memory_space<vmem>>, vector<1x8x512xf32>
    %174 = vector.shape_cast %173 : vector<1x8x512xf32> to vector<8x512xf32>
    %175 = arith.truncf %167 : vector<8x128xf32> to vector<8x128xbf16>
    %c0_59 = arith.constant 0 : index
    %c0_60 = arith.constant 0 : index
    %176 = vector.load %arg2[%c0_59, %c0_60] : memref<128x512xbf16, #tpu.memory_space<vmem>>, vector<128x512xbf16>
    %cst_61 = arith.constant dense<0.000000e+00> : vector<8x512xf32>
    %177 = tpu.matmul %175, %176, %cst_61 {dimension_numbers = #tpu.dot_dimension_numbers<[1], [0], [0], [1], [0, 0, 1, 1], [], []>} : vector<8x128xbf16>, vector<128x512xbf16>, vector<8x512xf32> -> vector<8x512xf32>
    %178 = arith.addf %174, %177 : vector<8x512xf32>
    %179 = vector.extract_strided_slice %178 {offsets = [0, 0], sizes = [8, 384], strides = [1, 1]} : vector<8x512xf32> to vector<8x384xf32>
    %180 = arith.negf %179 : vector<8x384xf32>
    %181 = math.exp %180 : vector<8x384xf32>
    %cst_62 = arith.constant 1.000000e+00 : f32
    %182 = vector.broadcast %cst_62 : f32 to vector<8x384xf32>
    %183 = arith.addf %182, %181 : vector<8x384xf32>
    %184 = arith.divf %182, %183 : vector<8x384xf32>
    %185 = vector.extract_strided_slice %178 {offsets = [0, 384], sizes = [8, 128], strides = [1, 1]} : vector<8x512xf32> to vector<8x128xf32>
    %186 = math.tanh %185 : vector<8x128xf32>
    %187 = vector.extract_strided_slice %184 {offsets = [0, 0], sizes = [8, 128], strides = [1, 1]} : vector<8x384xf32> to vector<8x128xf32>
    %188 = vector.extract_strided_slice %184 {offsets = [0, 128], sizes = [8, 128], strides = [1, 1]} : vector<8x384xf32> to vector<8x128xf32>
    %189 = vector.extract_strided_slice %184 {offsets = [0, 256], sizes = [8, 128], strides = [1, 1]} : vector<8x384xf32> to vector<8x128xf32>
    %190 = arith.mulf %188, %165 : vector<8x128xf32>
    %191 = arith.mulf %187, %186 : vector<8x128xf32>
    %192 = arith.addf %190, %191 : vector<8x128xf32>
    %193 = math.tanh %192 : vector<8x128xf32>
    %194 = arith.mulf %189, %193 : vector<8x128xf32>
    %195 = arith.index_cast %c6_i32 : i32 to index
    %c0_63 = arith.constant 0 : index
    %c0_64 = arith.constant 0 : index
    %196 = vector.load %arg11[%195, %c0_63, %c0_64] : memref<8x8x128xf32, #tpu.memory_space<vmem>>, vector<1x8x128xf32>
    %197 = vector.shape_cast %196 : vector<1x8x128xf32> to vector<8x128xf32>
    %198 = vector.shape_cast %194 : vector<8x128xf32> to vector<1x8x128xf32>
    tpu.vector_store %arg11[%195, %c0_63, %c0_64], %198 {strides = array<i32>} : memref<8x8x128xf32, #tpu.memory_space<vmem>>, vector<1x8x128xf32>,
    %c7_i32 = arith.constant 7 : i32
    %199 = arith.index_cast %c7_i32 : i32 to index
    %c0_65 = arith.constant 0 : index
    %c0_66 = arith.constant 0 : index
    %200 = vector.load %arg10[%199, %c0_65, %c0_66] : memref<8x8x512xf32, #tpu.memory_space<vmem>>, vector<1x8x512xf32>
    %201 = vector.shape_cast %200 : vector<1x8x512xf32> to vector<8x512xf32>
    %202 = arith.truncf %194 : vector<8x128xf32> to vector<8x128xbf16>
    %c0_67 = arith.constant 0 : index
    %c0_68 = arith.constant 0 : index
    %203 = vector.load %arg2[%c0_67, %c0_68] : memref<128x512xbf16, #tpu.memory_space<vmem>>, vector<128x512xbf16>
    %cst_69 = arith.constant dense<0.000000e+00> : vector<8x512xf32>
    %204 = tpu.matmul %202, %203, %cst_69 {dimension_numbers = #tpu.dot_dimension_numbers<[1], [0], [0], [1], [0, 0, 1, 1], [], []>} : vector<8x128xbf16>, vector<128x512xbf16>, vector<8x512xf32> -> vector<8x512xf32>
    %205 = arith.addf %201, %204 : vector<8x512xf32>
    %206 = vector.extract_strided_slice %205 {offsets = [0, 0], sizes = [8, 384], strides = [1, 1]} : vector<8x512xf32> to vector<8x384xf32>
    %207 = arith.negf %206 : vector<8x384xf32>
    %208 = math.exp %207 : vector<8x384xf32>
    %cst_70 = arith.constant 1.000000e+00 : f32
    %209 = vector.broadcast %cst_70 : f32 to vector<8x384xf32>
    %210 = arith.addf %209, %208 : vector<8x384xf32>
    %211 = arith.divf %209, %210 : vector<8x384xf32>
    %212 = vector.extract_strided_slice %205 {offsets = [0, 384], sizes = [8, 128], strides = [1, 1]} : vector<8x512xf32> to vector<8x128xf32>
    %213 = math.tanh %212 : vector<8x128xf32>
    %214 = vector.extract_strided_slice %211 {offsets = [0, 0], sizes = [8, 128], strides = [1, 1]} : vector<8x384xf32> to vector<8x128xf32>
    %215 = vector.extract_strided_slice %211 {offsets = [0, 128], sizes = [8, 128], strides = [1, 1]} : vector<8x384xf32> to vector<8x128xf32>
    %216 = vector.extract_strided_slice %211 {offsets = [0, 256], sizes = [8, 128], strides = [1, 1]} : vector<8x384xf32> to vector<8x128xf32>
    %217 = arith.mulf %215, %192 : vector<8x128xf32>
    %218 = arith.mulf %214, %213 : vector<8x128xf32>
    %219 = arith.addf %217, %218 : vector<8x128xf32>
    %220 = math.tanh %219 : vector<8x128xf32>
    %221 = arith.mulf %216, %220 : vector<8x128xf32>
    %222 = arith.index_cast %c7_i32 : i32 to index
    %c0_71 = arith.constant 0 : index
    %c0_72 = arith.constant 0 : index
    %223 = vector.load %arg11[%222, %c0_71, %c0_72] : memref<8x8x128xf32, #tpu.memory_space<vmem>>, vector<1x8x128xf32>
    %224 = vector.shape_cast %223 : vector<1x8x128xf32> to vector<8x128xf32>
    %225 = vector.shape_cast %221 : vector<8x128xf32> to vector<1x8x128xf32>
    tpu.vector_store %arg11[%222, %c0_71, %c0_72], %225 {strides = array<i32>} : memref<8x8x128xf32, #tpu.memory_space<vmem>>, vector<1x8x128xf32>,
    %c8_i32 = arith.constant 8 : i32
    %c0_73 = arith.constant 0 : index
    %c0_74 = arith.constant 0 : index
    %c0_75 = arith.constant 0 : index
    %226 = vector.load %arg11[%c0_73, %c0_74, %c0_75] : memref<8x8x128xf32, #tpu.memory_space<vmem>>, vector<8x8x128xf32>
    %227 = vector.shape_cast %226 : vector<8x8x128xf32> to vector<64x128xf32>
    %228 = arith.truncf %227 : vector<64x128xf32> to vector<64x128xbf16>
    %c0_76 = arith.constant 0 : index
    %c0_77 = arith.constant 0 : index
    %229 = vector.load %arg4[%c0_76, %c0_77] : memref<128x512xbf16, #tpu.memory_space<vmem>>, vector<128x512xbf16>
    %cst_78 = arith.constant dense<0.000000e+00> : vector<64x512xf32>
    %230 = tpu.matmul %228, %229, %cst_78 {dimension_numbers = #tpu.dot_dimension_numbers<[1], [0], [0], [1], [0, 0, 1, 1], [], []>} : vector<64x128xbf16>, vector<128x512xbf16>, vector<64x512xf32> -> vector<64x512xf32>
    %c0_79 = arith.constant 0 : index
    %c0_80 = arith.constant 0 : index
    %231 = vector.load %arg6[%c0_79, %c0_80] : memref<1x512xf32, #tpu.memory_space<vmem>>, vector<1x512xf32>
    %232 = vector.broadcast %231 : vector<1x512xf32> to vector<64x512xf32>
    %233 = arith.addf %230, %232 : vector<64x512xf32>
    %234 = vector.shape_cast %233 : vector<64x512xf32> to vector<8x8x512xf32>
    %c0_81 = arith.constant 0 : index
    %c0_82 = arith.constant 0 : index
    %c0_83 = arith.constant 0 : index
    %235 = vector.load %arg10[%c0_81, %c0_82, %c0_83] : memref<8x8x512xf32, #tpu.memory_space<vmem>>, vector<8x8x512xf32>
    tpu.vector_store %arg10[%c0_81, %c0_82, %c0_83], %234 {strides = array<i32>} : memref<8x8x512xf32, #tpu.memory_space<vmem>>, vector<8x8x512xf32>,
    %c0_i32_84 = arith.constant 0 : i32
    %236 = arith.index_cast %c0_i32_84 : i32 to index
    %c0_85 = arith.constant 0 : index
    %c0_86 = arith.constant 0 : index
    %237 = vector.load %arg10[%236, %c0_85, %c0_86] : memref<8x8x512xf32, #tpu.memory_space<vmem>>, vector<1x8x512xf32>
    %238 = vector.shape_cast %237 : vector<1x8x512xf32> to vector<8x512xf32>
    %239 = arith.truncf %0 : vector<8x128xf32> to vector<8x128xbf16>
    %c0_87 = arith.constant 0 : index
    %c0_88 = arith.constant 0 : index
    %240 = vector.load %arg5[%c0_87, %c0_88] : memref<128x512xbf16, #tpu.memory_space<vmem>>, vector<128x512xbf16>
    %cst_89 = arith.constant dense<0.000000e+00> : vector<8x512xf32>
    %241 = tpu.matmul %239, %240, %cst_89 {dimension_numbers = #tpu.dot_dimension_numbers<[1], [0], [0], [1], [0, 0, 1, 1], [], []>} : vector<8x128xbf16>, vector<128x512xbf16>, vector<8x512xf32> -> vector<8x512xf32>
    %242 = arith.addf %238, %241 : vector<8x512xf32>
    %243 = vector.extract_strided_slice %242 {offsets = [0, 0], sizes = [8, 384], strides = [1, 1]} : vector<8x512xf32> to vector<8x384xf32>
    %244 = arith.negf %243 : vector<8x384xf32>
    %245 = math.exp %244 : vector<8x384xf32>
    %cst_90 = arith.constant 1.000000e+00 : f32
    %246 = vector.broadcast %cst_90 : f32 to vector<8x384xf32>
    %247 = arith.addf %246, %245 : vector<8x384xf32>
    %248 = arith.divf %246, %247 : vector<8x384xf32>
    %249 = vector.extract_strided_slice %242 {offsets = [0, 384], sizes = [8, 128], strides = [1, 1]} : vector<8x512xf32> to vector<8x128xf32>
    %250 = math.tanh %249 : vector<8x128xf32>
    %251 = vector.extract_strided_slice %248 {offsets = [0, 0], sizes = [8, 128], strides = [1, 1]} : vector<8x384xf32> to vector<8x128xf32>
    %252 = vector.extract_strided_slice %248 {offsets = [0, 128], sizes = [8, 128], strides = [1, 1]} : vector<8x384xf32> to vector<8x128xf32>
    %253 = vector.extract_strided_slice %248 {offsets = [0, 256], sizes = [8, 128], strides = [1, 1]} : vector<8x384xf32> to vector<8x128xf32>
    %254 = arith.mulf %252, %0 : vector<8x128xf32>
    %255 = arith.mulf %251, %250 : vector<8x128xf32>
    %256 = arith.addf %254, %255 : vector<8x128xf32>
    %257 = math.tanh %256 : vector<8x128xf32>
    %258 = arith.mulf %253, %257 : vector<8x128xf32>
    %c1_i32_91 = arith.constant 1 : i32
    %259 = arith.index_cast %c1_i32_91 : i32 to index
    %c0_92 = arith.constant 0 : index
    %c0_93 = arith.constant 0 : index
    %260 = vector.load %arg10[%259, %c0_92, %c0_93] : memref<8x8x512xf32, #tpu.memory_space<vmem>>, vector<1x8x512xf32>
    %261 = vector.shape_cast %260 : vector<1x8x512xf32> to vector<8x512xf32>
    %262 = arith.truncf %258 : vector<8x128xf32> to vector<8x128xbf16>
    %c0_94 = arith.constant 0 : index
    %c0_95 = arith.constant 0 : index
    %263 = vector.load %arg5[%c0_94, %c0_95] : memref<128x512xbf16, #tpu.memory_space<vmem>>, vector<128x512xbf16>
    %cst_96 = arith.constant dense<0.000000e+00> : vector<8x512xf32>
    %264 = tpu.matmul %262, %263, %cst_96 {dimension_numbers = #tpu.dot_dimension_numbers<[1], [0], [0], [1], [0, 0, 1, 1], [], []>} : vector<8x128xbf16>, vector<128x512xbf16>, vector<8x512xf32> -> vector<8x512xf32>
    %265 = arith.addf %261, %264 : vector<8x512xf32>
    %266 = vector.extract_strided_slice %265 {offsets = [0, 0], sizes = [8, 384], strides = [1, 1]} : vector<8x512xf32> to vector<8x384xf32>
    %267 = arith.negf %266 : vector<8x384xf32>
    %268 = math.exp %267 : vector<8x384xf32>
    %cst_97 = arith.constant 1.000000e+00 : f32
    %269 = vector.broadcast %cst_97 : f32 to vector<8x384xf32>
    %270 = arith.addf %269, %268 : vector<8x384xf32>
    %271 = arith.divf %269, %270 : vector<8x384xf32>
    %272 = vector.extract_strided_slice %265 {offsets = [0, 384], sizes = [8, 128], strides = [1, 1]} : vector<8x512xf32> to vector<8x128xf32>
    %273 = math.tanh %272 : vector<8x128xf32>
    %274 = vector.extract_strided_slice %271 {offsets = [0, 0], sizes = [8, 128], strides = [1, 1]} : vector<8x384xf32> to vector<8x128xf32>
    %275 = vector.extract_strided_slice %271 {offsets = [0, 128], sizes = [8, 128], strides = [1, 1]} : vector<8x384xf32> to vector<8x128xf32>
    %276 = vector.extract_strided_slice %271 {offsets = [0, 256], sizes = [8, 128], strides = [1, 1]} : vector<8x384xf32> to vector<8x128xf32>
    %277 = arith.mulf %275, %256 : vector<8x128xf32>
    %278 = arith.mulf %274, %273 : vector<8x128xf32>
    %279 = arith.addf %277, %278 : vector<8x128xf32>
    %280 = math.tanh %279 : vector<8x128xf32>
    %281 = arith.mulf %276, %280 : vector<8x128xf32>
    %c2_i32_98 = arith.constant 2 : i32
    %282 = arith.index_cast %c2_i32_98 : i32 to index
    %c0_99 = arith.constant 0 : index
    %c0_100 = arith.constant 0 : index
    %283 = vector.load %arg10[%282, %c0_99, %c0_100] : memref<8x8x512xf32, #tpu.memory_space<vmem>>, vector<1x8x512xf32>
    %284 = vector.shape_cast %283 : vector<1x8x512xf32> to vector<8x512xf32>
    %285 = arith.truncf %281 : vector<8x128xf32> to vector<8x128xbf16>
    %c0_101 = arith.constant 0 : index
    %c0_102 = arith.constant 0 : index
    %286 = vector.load %arg5[%c0_101, %c0_102] : memref<128x512xbf16, #tpu.memory_space<vmem>>, vector<128x512xbf16>
    %cst_103 = arith.constant dense<0.000000e+00> : vector<8x512xf32>
    %287 = tpu.matmul %285, %286, %cst_103 {dimension_numbers = #tpu.dot_dimension_numbers<[1], [0], [0], [1], [0, 0, 1, 1], [], []>} : vector<8x128xbf16>, vector<128x512xbf16>, vector<8x512xf32> -> vector<8x512xf32>
    %288 = arith.addf %284, %287 : vector<8x512xf32>
    %289 = vector.extract_strided_slice %288 {offsets = [0, 0], sizes = [8, 384], strides = [1, 1]} : vector<8x512xf32> to vector<8x384xf32>
    %290 = arith.negf %289 : vector<8x384xf32>
    %291 = math.exp %290 : vector<8x384xf32>
    %cst_104 = arith.constant 1.000000e+00 : f32
    %292 = vector.broadcast %cst_104 : f32 to vector<8x384xf32>
    %293 = arith.addf %292, %291 : vector<8x384xf32>
    %294 = arith.divf %292, %293 : vector<8x384xf32>
    %295 = vector.extract_strided_slice %288 {offsets = [0, 384], sizes = [8, 128], strides = [1, 1]} : vector<8x512xf32> to vector<8x128xf32>
    %296 = math.tanh %295 : vector<8x128xf32>
    %297 = vector.extract_strided_slice %294 {offsets = [0, 0], sizes = [8, 128], strides = [1, 1]} : vector<8x384xf32> to vector<8x128xf32>
    %298 = vector.extract_strided_slice %294 {offsets = [0, 128], sizes = [8, 128], strides = [1, 1]} : vector<8x384xf32> to vector<8x128xf32>
    %299 = vector.extract_strided_slice %294 {offsets = [0, 256], sizes = [8, 128], strides = [1, 1]} : vector<8x384xf32> to vector<8x128xf32>
    %300 = arith.mulf %298, %279 : vector<8x128xf32>
    %301 = arith.mulf %297, %296 : vector<8x128xf32>
    %302 = arith.addf %300, %301 : vector<8x128xf32>
    %303 = math.tanh %302 : vector<8x128xf32>
    %304 = arith.mulf %299, %303 : vector<8x128xf32>
    %c3_i32_105 = arith.constant 3 : i32
    %305 = arith.index_cast %c3_i32_105 : i32 to index
    %c0_106 = arith.constant 0 : index
    %c0_107 = arith.constant 0 : index
    %306 = vector.load %arg10[%305, %c0_106, %c0_107] : memref<8x8x512xf32, #tpu.memory_space<vmem>>, vector<1x8x512xf32>
    %307 = vector.shape_cast %306 : vector<1x8x512xf32> to vector<8x512xf32>
    %308 = arith.truncf %304 : vector<8x128xf32> to vector<8x128xbf16>
    %c0_108 = arith.constant 0 : index
    %c0_109 = arith.constant 0 : index
    %309 = vector.load %arg5[%c0_108, %c0_109] : memref<128x512xbf16, #tpu.memory_space<vmem>>, vector<128x512xbf16>
    %cst_110 = arith.constant dense<0.000000e+00> : vector<8x512xf32>
    %310 = tpu.matmul %308, %309, %cst_110 {dimension_numbers = #tpu.dot_dimension_numbers<[1], [0], [0], [1], [0, 0, 1, 1], [], []>} : vector<8x128xbf16>, vector<128x512xbf16>, vector<8x512xf32> -> vector<8x512xf32>
    %311 = arith.addf %307, %310 : vector<8x512xf32>
    %312 = vector.extract_strided_slice %311 {offsets = [0, 0], sizes = [8, 384], strides = [1, 1]} : vector<8x512xf32> to vector<8x384xf32>
    %313 = arith.negf %312 : vector<8x384xf32>
    %314 = math.exp %313 : vector<8x384xf32>
    %cst_111 = arith.constant 1.000000e+00 : f32
    %315 = vector.broadcast %cst_111 : f32 to vector<8x384xf32>
    %316 = arith.addf %315, %314 : vector<8x384xf32>
    %317 = arith.divf %315, %316 : vector<8x384xf32>
    %318 = vector.extract_strided_slice %311 {offsets = [0, 384], sizes = [8, 128], strides = [1, 1]} : vector<8x512xf32> to vector<8x128xf32>
    %319 = math.tanh %318 : vector<8x128xf32>
    %320 = vector.extract_strided_slice %317 {offsets = [0, 0], sizes = [8, 128], strides = [1, 1]} : vector<8x384xf32> to vector<8x128xf32>
    %321 = vector.extract_strided_slice %317 {offsets = [0, 128], sizes = [8, 128], strides = [1, 1]} : vector<8x384xf32> to vector<8x128xf32>
    %322 = vector.extract_strided_slice %317 {offsets = [0, 256], sizes = [8, 128], strides = [1, 1]} : vector<8x384xf32> to vector<8x128xf32>
    %323 = arith.mulf %321, %302 : vector<8x128xf32>
    %324 = arith.mulf %320, %319 : vector<8x128xf32>
    %325 = arith.addf %323, %324 : vector<8x128xf32>
    %326 = math.tanh %325 : vector<8x128xf32>
    %327 = arith.mulf %322, %326 : vector<8x128xf32>
    %c4_i32_112 = arith.constant 4 : i32
    %328 = arith.index_cast %c4_i32_112 : i32 to index
    %c0_113 = arith.constant 0 : index
    %c0_114 = arith.constant 0 : index
    %329 = vector.load %arg10[%328, %c0_113, %c0_114] : memref<8x8x512xf32, #tpu.memory_space<vmem>>, vector<1x8x512xf32>
    %330 = vector.shape_cast %329 : vector<1x8x512xf32> to vector<8x512xf32>
    %331 = arith.truncf %327 : vector<8x128xf32> to vector<8x128xbf16>
    %c0_115 = arith.constant 0 : index
    %c0_116 = arith.constant 0 : index
    %332 = vector.load %arg5[%c0_115, %c0_116] : memref<128x512xbf16, #tpu.memory_space<vmem>>, vector<128x512xbf16>
    %cst_117 = arith.constant dense<0.000000e+00> : vector<8x512xf32>
    %333 = tpu.matmul %331, %332, %cst_117 {dimension_numbers = #tpu.dot_dimension_numbers<[1], [0], [0], [1], [0, 0, 1, 1], [], []>} : vector<8x128xbf16>, vector<128x512xbf16>, vector<8x512xf32> -> vector<8x512xf32>
    %334 = arith.addf %330, %333 : vector<8x512xf32>
    %335 = vector.extract_strided_slice %334 {offsets = [0, 0], sizes = [8, 384], strides = [1, 1]} : vector<8x512xf32> to vector<8x384xf32>
    %336 = arith.negf %335 : vector<8x384xf32>
    %337 = math.exp %336 : vector<8x384xf32>
    %cst_118 = arith.constant 1.000000e+00 : f32
    %338 = vector.broadcast %cst_118 : f32 to vector<8x384xf32>
    %339 = arith.addf %338, %337 : vector<8x384xf32>
    %340 = arith.divf %338, %339 : vector<8x384xf32>
    %341 = vector.extract_strided_slice %334 {offsets = [0, 384], sizes = [8, 128], strides = [1, 1]} : vector<8x512xf32> to vector<8x128xf32>
    %342 = math.tanh %341 : vector<8x128xf32>
    %343 = vector.extract_strided_slice %340 {offsets = [0, 0], sizes = [8, 128], strides = [1, 1]} : vector<8x384xf32> to vector<8x128xf32>
    %344 = vector.extract_strided_slice %340 {offsets = [0, 128], sizes = [8, 128], strides = [1, 1]} : vector<8x384xf32> to vector<8x128xf32>
    %345 = vector.extract_strided_slice %340 {offsets = [0, 256], sizes = [8, 128], strides = [1, 1]} : vector<8x384xf32> to vector<8x128xf32>
    %346 = arith.mulf %344, %325 : vector<8x128xf32>
    %347 = arith.mulf %343, %342 : vector<8x128xf32>
    %348 = arith.addf %346, %347 : vector<8x128xf32>
    %349 = math.tanh %348 : vector<8x128xf32>
    %350 = arith.mulf %345, %349 : vector<8x128xf32>
    %c5_i32_119 = arith.constant 5 : i32
    %351 = arith.index_cast %c5_i32_119 : i32 to index
    %c0_120 = arith.constant 0 : index
    %c0_121 = arith.constant 0 : index
    %352 = vector.load %arg10[%351, %c0_120, %c0_121] : memref<8x8x512xf32, #tpu.memory_space<vmem>>, vector<1x8x512xf32>
    %353 = vector.shape_cast %352 : vector<1x8x512xf32> to vector<8x512xf32>
    %354 = arith.truncf %350 : vector<8x128xf32> to vector<8x128xbf16>
    %c0_122 = arith.constant 0 : index
    %c0_123 = arith.constant 0 : index
    %355 = vector.load %arg5[%c0_122, %c0_123] : memref<128x512xbf16, #tpu.memory_space<vmem>>, vector<128x512xbf16>
    %cst_124 = arith.constant dense<0.000000e+00> : vector<8x512xf32>
    %356 = tpu.matmul %354, %355, %cst_124 {dimension_numbers = #tpu.dot_dimension_numbers<[1], [0], [0], [1], [0, 0, 1, 1], [], []>} : vector<8x128xbf16>, vector<128x512xbf16>, vector<8x512xf32> -> vector<8x512xf32>
    %357 = arith.addf %353, %356 : vector<8x512xf32>
    %358 = vector.extract_strided_slice %357 {offsets = [0, 0], sizes = [8, 384], strides = [1, 1]} : vector<8x512xf32> to vector<8x384xf32>
    %359 = arith.negf %358 : vector<8x384xf32>
    %360 = math.exp %359 : vector<8x384xf32>
    %cst_125 = arith.constant 1.000000e+00 : f32
    %361 = vector.broadcast %cst_125 : f32 to vector<8x384xf32>
    %362 = arith.addf %361, %360 : vector<8x384xf32>
    %363 = arith.divf %361, %362 : vector<8x384xf32>
    %364 = vector.extract_strided_slice %357 {offsets = [0, 384], sizes = [8, 128], strides = [1, 1]} : vector<8x512xf32> to vector<8x128xf32>
    %365 = math.tanh %364 : vector<8x128xf32>
    %366 = vector.extract_strided_slice %363 {offsets = [0, 0], sizes = [8, 128], strides = [1, 1]} : vector<8x384xf32> to vector<8x128xf32>
    %367 = vector.extract_strided_slice %363 {offsets = [0, 128], sizes = [8, 128], strides = [1, 1]} : vector<8x384xf32> to vector<8x128xf32>
    %368 = vector.extract_strided_slice %363 {offsets = [0, 256], sizes = [8, 128], strides = [1, 1]} : vector<8x384xf32> to vector<8x128xf32>
    %369 = arith.mulf %367, %348 : vector<8x128xf32>
    %370 = arith.mulf %366, %365 : vector<8x128xf32>
    %371 = arith.addf %369, %370 : vector<8x128xf32>
    %372 = math.tanh %371 : vector<8x128xf32>
    %373 = arith.mulf %368, %372 : vector<8x128xf32>
    %c6_i32_126 = arith.constant 6 : i32
    %374 = arith.index_cast %c6_i32_126 : i32 to index
    %c0_127 = arith.constant 0 : index
    %c0_128 = arith.constant 0 : index
    %375 = vector.load %arg10[%374, %c0_127, %c0_128] : memref<8x8x512xf32, #tpu.memory_space<vmem>>, vector<1x8x512xf32>
    %376 = vector.shape_cast %375 : vector<1x8x512xf32> to vector<8x512xf32>
    %377 = arith.truncf %373 : vector<8x128xf32> to vector<8x128xbf16>
    %c0_129 = arith.constant 0 : index
    %c0_130 = arith.constant 0 : index
    %378 = vector.load %arg5[%c0_129, %c0_130] : memref<128x512xbf16, #tpu.memory_space<vmem>>, vector<128x512xbf16>
    %cst_131 = arith.constant dense<0.000000e+00> : vector<8x512xf32>
    %379 = tpu.matmul %377, %378, %cst_131 {dimension_numbers = #tpu.dot_dimension_numbers<[1], [0], [0], [1], [0, 0, 1, 1], [], []>} : vector<8x128xbf16>, vector<128x512xbf16>, vector<8x512xf32> -> vector<8x512xf32>
    %380 = arith.addf %376, %379 : vector<8x512xf32>
    %381 = vector.extract_strided_slice %380 {offsets = [0, 0], sizes = [8, 384], strides = [1, 1]} : vector<8x512xf32> to vector<8x384xf32>
    %382 = arith.negf %381 : vector<8x384xf32>
    %383 = math.exp %382 : vector<8x384xf32>
    %cst_132 = arith.constant 1.000000e+00 : f32
    %384 = vector.broadcast %cst_132 : f32 to vector<8x384xf32>
    %385 = arith.addf %384, %383 : vector<8x384xf32>
    %386 = arith.divf %384, %385 : vector<8x384xf32>
    %387 = vector.extract_strided_slice %380 {offsets = [0, 384], sizes = [8, 128], strides = [1, 1]} : vector<8x512xf32> to vector<8x128xf32>
    %388 = math.tanh %387 : vector<8x128xf32>
    %389 = vector.extract_strided_slice %386 {offsets = [0, 0], sizes = [8, 128], strides = [1, 1]} : vector<8x384xf32> to vector<8x128xf32>
    %390 = vector.extract_strided_slice %386 {offsets = [0, 128], sizes = [8, 128], strides = [1, 1]} : vector<8x384xf32> to vector<8x128xf32>
    %391 = vector.extract_strided_slice %386 {offsets = [0, 256], sizes = [8, 128], strides = [1, 1]} : vector<8x384xf32> to vector<8x128xf32>
    %392 = arith.mulf %390, %371 : vector<8x128xf32>
    %393 = arith.mulf %389, %388 : vector<8x128xf32>
    %394 = arith.addf %392, %393 : vector<8x128xf32>
    %395 = math.tanh %394 : vector<8x128xf32>
    %396 = arith.mulf %391, %395 : vector<8x128xf32>
    %c7_i32_133 = arith.constant 7 : i32
    %397 = arith.index_cast %c7_i32_133 : i32 to index
    %c0_134 = arith.constant 0 : index
    %c0_135 = arith.constant 0 : index
    %398 = vector.load %arg10[%397, %c0_134, %c0_135] : memref<8x8x512xf32, #tpu.memory_space<vmem>>, vector<1x8x512xf32>
    %399 = vector.shape_cast %398 : vector<1x8x512xf32> to vector<8x512xf32>
    %400 = arith.truncf %396 : vector<8x128xf32> to vector<8x128xbf16>
    %c0_136 = arith.constant 0 : index
    %c0_137 = arith.constant 0 : index
    %401 = vector.load %arg5[%c0_136, %c0_137] : memref<128x512xbf16, #tpu.memory_space<vmem>>, vector<128x512xbf16>
    %cst_138 = arith.constant dense<0.000000e+00> : vector<8x512xf32>
    %402 = tpu.matmul %400, %401, %cst_138 {dimension_numbers = #tpu.dot_dimension_numbers<[1], [0], [0], [1], [0, 0, 1, 1], [], []>} : vector<8x128xbf16>, vector<128x512xbf16>, vector<8x512xf32> -> vector<8x512xf32>
    %403 = arith.addf %399, %402 : vector<8x512xf32>
    %404 = vector.extract_strided_slice %403 {offsets = [0, 0], sizes = [8, 384], strides = [1, 1]} : vector<8x512xf32> to vector<8x384xf32>
    %405 = arith.negf %404 : vector<8x384xf32>
    %406 = math.exp %405 : vector<8x384xf32>
    %cst_139 = arith.constant 1.000000e+00 : f32
    %407 = vector.broadcast %cst_139 : f32 to vector<8x384xf32>
    %408 = arith.addf %407, %406 : vector<8x384xf32>
    %409 = arith.divf %407, %408 : vector<8x384xf32>
    %410 = vector.extract_strided_slice %403 {offsets = [0, 384], sizes = [8, 128], strides = [1, 1]} : vector<8x512xf32> to vector<8x128xf32>
    %411 = math.tanh %410 : vector<8x128xf32>
    %412 = vector.extract_strided_slice %409 {offsets = [0, 0], sizes = [8, 128], strides = [1, 1]} : vector<8x384xf32> to vector<8x128xf32>
    %413 = vector.extract_strided_slice %409 {offsets = [0, 128], sizes = [8, 128], strides = [1, 1]} : vector<8x384xf32> to vector<8x128xf32>
    %414 = vector.extract_strided_slice %409 {offsets = [0, 256], sizes = [8, 128], strides = [1, 1]} : vector<8x384xf32> to vector<8x128xf32>
    %415 = arith.mulf %413, %394 : vector<8x128xf32>
    %416 = arith.mulf %412, %411 : vector<8x128xf32>
    %417 = arith.addf %415, %416 : vector<8x128xf32>
    %418 = math.tanh %417 : vector<8x128xf32>
    %419 = arith.mulf %414, %418 : vector<8x128xf32>
    %c8_i32_140 = arith.constant 8 : i32
    %c0_141 = arith.constant 0 : index
    %c0_142 = arith.constant 0 : index
    %420 = vector.load %arg7[%c0_141, %c0_142] : memref<1x128xf32, #tpu.memory_space<vmem>>, vector<1x128xf32>
    %421 = vector.broadcast %420 : vector<1x128xf32> to vector<8x128xf32>
    %422 = arith.mulf %419, %421 : vector<8x128xf32>
    %cst_143 = arith.constant dense<0.000000e+00> : vector<8xf32>
    %423 = vector.multi_reduction <add>, %422, %cst_143 [1] : vector<8x128xf32> to vector<8xf32>
    %424 = vector.shape_cast %423 : vector<8xf32> to vector<8x1xf32>
    %c0_144 = arith.constant 0 : index
    %c0_145 = arith.constant 0 : index
    %425 = vector.load %arg8[%c0_144, %c0_145] : memref<1x1xf32, #tpu.memory_space<vmem>>, vector<1x1xf32>
    %426 = vector.broadcast %425 : vector<1x1xf32> to vector<8x1xf32>
    %427 = arith.addf %424, %426 : vector<8x1xf32>
    %c0_146 = arith.constant 0 : index
    %c0_147 = arith.constant 0 : index
    %428 = vector.load %arg9[%c0_146, %c0_147] : memref<8x1xf32, #tpu.memory_space<vmem>>, vector<8x1xf32>
    tpu.vector_store %arg9[%c0_146, %c0_147], %427 {strides = array<i32>} : memref<8x1xf32, #tpu.memory_space<vmem>>, vector<8x1xf32>,
    return
  }
}

</mosaic_0001>

<bundles_post_ra>
// kernel: tpu_custom_call.1
= control target key start
LH: loop header
LB: loop body
LE: loop exit
PB: predicated region body
PF: predicated region fallthrough
CT: control target
= control target key end

     0   :  { %s6898_s0 = inlined_call_operand.hbm [shape: f32[64,128], index: 0, kind: input, shape index: {}]   ;;  %s6899_s1 = inlined_call_operand.hbm [shape: bf16[128,512], index: 1, kind: input, shape index: {}]   ;;  %s6900_s2 = inlined_call_operand.hbm [shape: bf16[128,512], index: 2, kind: input, shape index: {}]   ;;  %s6901_s3 = inlined_call_operand.vmem [shape: f32[1,512], index: 3, kind: input, shape index: {}]   ;;  %s6902_s4 = inlined_call_operand.hbm [shape: bf16[128,512], index: 4, kind: input, shape index: {}]   ;;  %s6903_s5 = inlined_call_operand.hbm [shape: bf16[128,512], index: 5, kind: input, shape index: {}]   ;;  %s6904_s6 = inlined_call_operand.vmem [shape: f32[1,512], index: 6, kind: input, shape index: {}]   ;;  %s6905_s7 = inlined_call_operand.vmem [shape: f32[1,128], index: 7, kind: input, shape index: {}]   ;;  %s6906_s8 = inlined_call_operand.<no memory space> [shape: f32[1,1], index: 8, kind: input, shape index: {}]   ;;  %s6907_s9 = inlined_call_operand.vmem [shape: f32[8,1], index: 9, kind: output, shape index: {}]  }
   0x1   :  { %v14_v0 = vstv %s6906_s8 }
   0x2   :  { %15 = vst [vmem:[#allocation4] sm:$0x1] %v14_v0 }
   0x3   :  { %16 = vsyncpa [#allocation6], 0 }
   0x4   :  { %17 = vsyncpa [#allocation8], 0 }
   0x5   :  { %18 = vsyncpa [#allocation11], 0  ;;  %s5582_s11 = smov [#allocation7]   ;;  %s5466_s15 = scalar_lea.hbm %s6899_s1, 4096 }
   0x6   :  { %s36_s12 = sshll.u32 %s5582_s11, 4  ;;  %p5467_p0 = scmp.ne.s32.totalorder %s6899_s1, %s5466_s15  ;;  %s37_s12 = int_to_ptr.vmem [resolvable:$true] %s36_s12 }
   0x7   :  { %p5470_p1 = scmp.lt.u32.totalorder %s5466_s15, %s6899_s1 }
   0x9   :  { %p5472_p2 = pnand %p5470_p1, %p5467_p0 }
   0xb   :  { %5475 = shalt.err (!%p5472_p2)
}
   0xc   :  { %s5476_s8 = scalar_lea.vmem %s37_s12, 4096  ;;  %p5481_p4 = scmp.lt.s32.totalorder %s37_s12, %s37_s12 }
   0xd   :  { %p5477_p3 = scmp.ne.s32.totalorder %s37_s12, %s5476_s8  ;;  %p5482_p5 = scmp.lt.s32.totalorder %s5476_s8, %s5476_s8 }
   0xf   :  { %p5483_p6 = por %p5482_p5, %p5481_p4 }
  0x11   :  { %p5484_p7 = pnand %p5483_p6, %p5477_p3 }
  0x13   :  { %5487 = shalt.err (!%p5484_p7)
}
  0x14   :  { %s5583_s20 = smov 256   ;;  %s5584_s21 = smov 16  }
  0x15   :  { %42 = dma.hbm_to_vmem [thread:$0]  %s6899_s1, 4096, %s37_s12, [#allocation8], %s5583_s20, %s5583_s20, %s5584_s21  }
  0x16   :  { %s5585_s24 = smov [#allocation10]   ;;  %s5586_s26 = smov [#allocation5]  }
  0x17   :  { %s62_s25 = sshll.u32 %s5585_s24, 4  ;;  %s24_s27 = sshll.u32 %s5586_s26, 4  ;;  %s63_s25 = int_to_ptr.vmem [resolvable:$true] %s62_s25  ;;  %s25_s27 = int_to_ptr.vmem [resolvable:$true] %s24_s27 }
  0x18   :  { %s5488_s30 = scalar_lea.hbm %s6902_s4, 4096 }
  0x19   :  { %p5489_p8 = scmp.ne.s32.totalorder %s6902_s4, %s5488_s30  ;;  %p5492_p9 = scmp.lt.u32.totalorder %s5488_s30, %s6902_s4 }
  0x1b   :  { %p5494_p10 = pnand %p5492_p9, %p5489_p8 }
  0x1d   :  { %5497 = shalt.err (!%p5494_p10)
}
  0x1e   :  { %s5498_s1 = scalar_lea.vmem %s63_s25, 4096  ;;  %p5503_p12 = scmp.lt.s32.totalorder %s63_s25, %s63_s25 }
  0x1f   :  { %p5499_p11 = scmp.ne.s32.totalorder %s63_s25, %s5498_s1  ;;  %p5504_p13 = scmp.lt.s32.totalorder %s5498_s1, %s5498_s1 }
  0x21   :  { %p5505_p0 = por %p5504_p13, %p5503_p12 }
  0x23   :  { %p5506_p1 = pnand %p5505_p0, %p5499_p11 }
  0x25   :  { %5509 = shalt.err (!%p5506_p1)
}
  0x26   :  { %68 = dma.hbm_to_vmem [thread:$0]  %s6902_s4, 4096, %s63_s25, [#allocation11], %s5583_s20, %s5583_s20, %s5584_s21  }
  0x27   :  { %s5510_s18 = scalar_lea.hbm %s6898_s0, 1024 }
  0x28   :  { %p5511_p2 = scmp.ne.s32.totalorder %s6898_s0, %s5510_s18  ;;  %p5514_p3 = scmp.lt.u32.totalorder %s5510_s18, %s6898_s0 }
  0x2a   :  { %p5516_p4 = pnand %p5514_p3, %p5511_p2 }
  0x2c   :  { %5519 = shalt.err (!%p5516_p4)
}
  0x2d   :  { %s5520_s24 = scalar_lea.vmem %s25_s27, 1024  ;;  %p5525_p6 = scmp.lt.s32.totalorder %s25_s27, %s25_s27 }
  0x2e   :  { %p5521_p5 = scmp.ne.s32.totalorder %s25_s27, %s5520_s24  ;;  %p5526_p7 = scmp.lt.s32.totalorder %s5520_s24, %s5520_s24 }
  0x30   :  { %p5527_p8 = por %p5526_p7, %p5525_p6 }
  0x32   :  { %p5528_p9 = pnand %p5527_p8, %p5521_p5 }
  0x34   :  { %5531 = shalt.err (!%p5528_p9)
}
  0x35   :  { %s5587_s4 = smov 128   ;;  %s5588_s25 = smov 8  }
  0x36   :  { %30 = dma.hbm_to_vmem [thread:$0]  %s6898_s0, 1024, %s25_s27, [#allocation6], %s5587_s4, %s5587_s4, %s5588_s25  }
  0x37   :  { %s5589_s29 = smov [#allocation9]   ;;  %s5590_s10 = smov [#allocation12]  }
  0x38   :  { %s48_s30 = sshll.u32 %s5589_s29, 4  ;;  %s74_s11 = sshll.u32 %s5590_s10, 4  ;;  %s49_s30 = int_to_ptr.vmem [resolvable:$true] %s48_s30  ;;  %s75_s11 = int_to_ptr.vmem [resolvable:$true] %s74_s11 }
  0x39   :  { %s5532_s1 = scalar_lea.hbm %s6900_s2, 4096 }
  0x3a   :  { %p5533_p10 = scmp.ne.s32.totalorder %s6900_s2, %s5532_s1  ;;  %p5536_p11 = scmp.lt.u32.totalorder %s5532_s1, %s6900_s2 }
  0x3c   :  { %p5538_p12 = pnand %p5536_p11, %p5533_p10 }
  0x3e   :  { %5541 = shalt.err (!%p5538_p12)
}
  0x3f   :  { %s5542_s0 = scalar_lea.vmem %s49_s30, 4096  ;;  %p5547_p0 = scmp.lt.s32.totalorder %s49_s30, %s49_s30 }
  0x40   :  { %p5543_p13 = scmp.ne.s32.totalorder %s49_s30, %s5542_s0  ;;  %p5548_p1 = scmp.lt.s32.totalorder %s5542_s0, %s5542_s0 }
  0x42   :  { %p5549_p2 = por %p5548_p1, %p5547_p0 }
  0x44   :  { %p5550_p3 = pnand %p5549_p2, %p5543_p13 }
  0x46   :  { %5553 = shalt.err (!%p5550_p3)
}
  0x47   :  { %54 = dma.hbm_to_vmem [thread:$0]  %s6900_s2, 4096, %s49_s30, [#allocation8], %s5583_s20, %s5583_s20, %s5584_s21  }
  0x48   :  { %s5554_s22 = scalar_lea.hbm %s6903_s5, 4096 }
  0x49   :  { %p5555_p4 = scmp.ne.s32.totalorder %s6903_s5, %s5554_s22  ;;  %p5558_p5 = scmp.lt.u32.totalorder %s5554_s22, %s6903_s5 }
  0x4b   :  { %p5560_p6 = pnand %p5558_p5, %p5555_p4 }
  0x4d   :  { %5563 = shalt.err (!%p5560_p6)
}
  0x4e   :  { %s5564_s26 = scalar_lea.vmem %s75_s11, 4096  ;;  %p5569_p8 = scmp.lt.s32.totalorder %s75_s11, %s75_s11 }
  0x4f   :  { %p5565_p7 = scmp.ne.s32.totalorder %s75_s11, %s5564_s26  ;;  %p5570_p9 = scmp.lt.s32.totalorder %s5564_s26, %s5564_s26 }
  0x51   :  { %p5571_p10 = por %p5570_p9, %p5569_p8 }
  0x53   :  { %p5572_p11 = pnand %p5571_p10, %p5565_p7 }
  0x55   :  { %5575 = shalt.err (!%p5572_p11)
}
  0x56   :  { %80 = dma.hbm_to_vmem [thread:$0]  %s6903_s5, 4096, %s75_s11, [#allocation11], %s5583_s20, %s5583_s20, %s5584_s21  }
  0x57   :  { %5576 = dma.done.wait [#allocation6], 1024  }
  0x58   :  { %5577 = vsyncadd [#allocation6], 4294966272 }
  0x59   :  { %5578 = dma.done.wait [#allocation8], 8192  }
  0x5a   :  { %5579 = vsyncadd [#allocation8], 4294959104 }
  0x5b   :  { %5580 = dma.done.wait [#allocation11], 8192  }
  0x5c   :  { %5581 = vsyncadd [#allocation11], 4294959104  ;;  %v6912_v1 = vmov 0   ;;  %v4938_v2 = vld [vmem:[#allocation7 + $0x4] ss:$16 sps:$4 sm:$0xff]   ;;  %v104_v35 = vld [vmem:[#allocation5 + $0x8] sm:$0xff] }
  0x5d   :  { %361 = vmatprep.mubr.bf16.mxu0 %v6912_v1  ;;  %434 = vmatprep.mubr.bf16.mxu1 %v6912_v1  ;;  %v4940_v3 = vld [vmem:[#allocation7 + $0xc] ss:$16 sps:$4 sm:$0xff]   ;;  %v4942_v4 = vld [vmem:[#allocation7] ss:$16 sps:$4 sm:$0xff]   ;;  %v4943_v5 = vld [vmem:[#allocation7 + $0x8] ss:$16 sps:$4 sm:$0xff]  }
  0x5e   :  { %329 = vmatprep.subr.bf16.mxu0 %v4938_v2  ;;  %402 = vmatprep.subr.bf16.mxu1 %v4940_v3  ;;  %v4944_v6 = vld [vmem:[#allocation7 + $0x24] ss:$16 sps:$4 sm:$0xff]   ;;  %v4946_v7 = vld [vmem:[#allocation7 + $0x2c] ss:$16 sps:$4 sm:$0xff]   ;;  %v4948_v8 = vld [vmem:[#allocation7 + $0x20] ss:$16 sps:$4 sm:$0xff]  }
  0x5f   :  { %330 = vmatpush1.bf16.msra.mxu0 %v4942_v4  ;;  %403 = vmatpush1.bf16.msra.mxu1 %v4943_v5  ;;  %v4949_v9 = vld [vmem:[#allocation7 + $0x28] ss:$16 sps:$4 sm:$0xff]   ;;  %v4950_v10 = vld [vmem:[#allocation7 + $0x44] ss:$16 sps:$4 sm:$0xff]   ;;  %v4952_v11 = vld [vmem:[#allocation7 + $0x4c] ss:$16 sps:$4 sm:$0xff]  }
  0x60   :  { %331 = vmatprep.subr.bf16.mxu0 %v4944_v6  ;;  %404 = vmatprep.subr.bf16.mxu1 %v4946_v7  ;;  %v4954_v12 = vld [vmem:[#allocation7 + $0x40] ss:$16 sps:$4 sm:$0xff]   ;;  %v4955_v13 = vld [vmem:[#allocation7 + $0x48] ss:$16 sps:$4 sm:$0xff]   ;;  %v4956_v14 = vld [vmem:[#allocation7 + $0x64] ss:$16 sps:$4 sm:$0xff]  }
  0x61   :  { %v4958_v15 = vld [vmem:[#allocation7 + $0x6c] ss:$16 sps:$4 sm:$0xff]   ;;  %v4960_v16 = vld [vmem:[#allocation7 + $0x60] ss:$16 sps:$4 sm:$0xff]   ;;  %v4961_v17 = vld [vmem:[#allocation7 + $0x68] ss:$16 sps:$4 sm:$0xff]  }
  0x62   :  { %v4962_v18 = vld [vmem:[#allocation7 + $0x84] ss:$16 sps:$4 sm:$0xff]   ;;  %v4964_v19 = vld [vmem:[#allocation7 + $0x8c] ss:$16 sps:$4 sm:$0xff]   ;;  %v4966_v20 = vld [vmem:[#allocation7 + $0x80] ss:$16 sps:$4 sm:$0xff]  }
  0x63   :  { %332 = vmatpush1.bf16.msra.mxu0 %v4948_v8  ;;  %405 = vmatpush1.bf16.msra.mxu1 %v4949_v9  ;;  %v4967_v21 = vld [vmem:[#allocation7 + $0x88] ss:$16 sps:$4 sm:$0xff]   ;;  %v4968_v22 = vld [vmem:[#allocation7 + $0xa4] ss:$16 sps:$4 sm:$0xff]   ;;  %v4970_v23 = vld [vmem:[#allocation7 + $0xac] ss:$16 sps:$4 sm:$0xff]  }
  0x64   :  { %333 = vmatprep.subr.bf16.mxu0 %v4950_v10  ;;  %406 = vmatprep.subr.bf16.mxu1 %v4952_v11  ;;  %v4972_v24 = vld [vmem:[#allocation7 + $0xa0] ss:$16 sps:$4 sm:$0xff]   ;;  %v4973_v25 = vld [vmem:[#allocation7 + $0xa8] ss:$16 sps:$4 sm:$0xff]   ;;  %v4974_v26 = vld [vmem:[#allocation7 + $0xc4] ss:$16 sps:$4 sm:$0xff]  }
  0x65   :  { %v4976_v27 = vld [vmem:[#allocation7 + $0xcc] ss:$16 sps:$4 sm:$0xff]   ;;  %v4978_v28 = vld [vmem:[#allocation7 + $0xc0] ss:$16 sps:$4 sm:$0xff]   ;;  %v4979_v29 = vld [vmem:[#allocation7 + $0xc8] ss:$16 sps:$4 sm:$0xff]  }
  0x66   :  { %v4980_v30 = vld [vmem:[#allocation7 + $0xe4] ss:$16 sps:$4 sm:$0xff]   ;;  %v4982_v31 = vld [vmem:[#allocation7 + $0xec] ss:$16 sps:$4 sm:$0xff]   ;;  %v4984_v32 = vld [vmem:[#allocation7 + $0xe0] ss:$16 sps:$4 sm:$0xff]  }
  0x67   :  { %334 = vmatpush1.bf16.msra.mxu0 %v4954_v12  ;;  %407 = vmatpush1.bf16.msra.mxu1 %v4955_v13  ;;  %v4985_v33 = vld [vmem:[#allocation7 + $0xe8] ss:$16 sps:$4 sm:$0xff]   ;;  %v103_v34 = vld [vmem:[#allocation5] sm:$0xff]  ;;  %v5721_v37 = vld [vmem:[#allocation9 + $0xc] ss:$16 sps:$4 sm:$0xff]   ;;  %vm4517_vm0 = vcmask 7168  }
  0x68   :  { %335 = vmatprep.subr.bf16.mxu0 %v4956_v14  ;;  %408 = vmatprep.subr.bf16.mxu1 %v4958_v15  ;;  %v5719_v36 = vld [vmem:[#allocation9 + $0x4] ss:$16 sps:$4 sm:$0xff]   ;;  %v111_v38 = vpack.c.bf16 %v104_v35, %v103_v34  ;;  %v5723_v39 = vld [vmem:[#allocation9] ss:$16 sps:$4 sm:$0xff]   ;;  %v5725_v40 = vld [vmem:[#allocation9 + $0x8] ss:$16 sps:$4 sm:$0xff]   ;;  %v149_v15 = vlaneseq }
  0x69   :  { %v5729_v41 = vld [vmem:[#allocation9 + $0x24] ss:$16 sps:$4 sm:$0xff]   ;;  %v5731_v42 = vld [vmem:[#allocation9 + $0x2c] ss:$16 sps:$4 sm:$0xff]   ;;  %v5733_v43 = vld [vmem:[#allocation9 + $0x20] ss:$16 sps:$4 sm:$0xff]  }
  0x6a   :  { %v5735_v44 = vld [vmem:[#allocation9 + $0x28] ss:$16 sps:$4 sm:$0xff]   ;;  %v105_v45 = vld [vmem:[#allocation5 + $0x10] sm:$0xff]  ;;  %v5743_v48 = vld [vmem:[#allocation9 + $0x4c] ss:$16 sps:$4 sm:$0xff]  }
  0x6b   :  { %336 = vmatpush1.bf16.msra.mxu0 %v4960_v16  ;;  %409 = vmatpush1.bf16.msra.mxu1 %v4961_v17  ;;  %v106_v46 = vld [vmem:[#allocation5 + $0x18] sm:$0xff]  ;;  %v5741_v47 = vld [vmem:[#allocation9 + $0x44] ss:$16 sps:$4 sm:$0xff]   ;;  %v5747_v50 = vld [vmem:[#allocation9 + $0x40] ss:$16 sps:$4 sm:$0xff]   ;;  %v5861_v16 = vshrl.u32 %v149_v15, 7 }
  0x6c   :  { %337 = vmatprep.subr.bf16.mxu0 %v4962_v18  ;;  %410 = vmatprep.subr.bf16.mxu1 %v4964_v19  ;;  %v112_v49 = vpack.c.bf16 %v106_v46, %v105_v45  ;;  %v5749_v51 = vld [vmem:[#allocation9 + $0x48] ss:$16 sps:$4 sm:$0xff]   ;;  %v5753_v52 = vld [vmem:[#allocation9 + $0x64] ss:$16 sps:$4 sm:$0xff]   ;;  %v5757_v53 = vld [vmem:[#allocation9 + $0x6c] ss:$16 sps:$4 sm:$0xff]  }
  0x6d   :  { %v5759_v54 = vld [vmem:[#allocation9 + $0x60] ss:$16 sps:$4 sm:$0xff]   ;;  %v5761_v55 = vld [vmem:[#allocation9 + $0x68] ss:$16 sps:$4 sm:$0xff]   ;;  %v5767_v58 = vld [vmem:[#allocation9 + $0x84] ss:$16 sps:$4 sm:$0xff]  }
  0x6e   :  { %v107_v56 = vld [vmem:[#allocation5 + $0x20] sm:$0xff]  ;;  %v108_v57 = vld [vmem:[#allocation5 + $0x28] sm:$0xff]  ;;  %v109_v4 = vld [vmem:[#allocation5 + $0x30] sm:$0xff]  ;;  %6916 = vst [vmem:[#allocation16_spill] sm:$0xff] %v5861_v16  ;;  %v6910_v17 = vsub.s32 2, %v5861_v16  ;;  %v6908_v18 = vsub.s32 3, %v5861_v16 }
  0x6f   :  { %338 = vmatpush1.bf16.msra.mxu0 %v4966_v20  ;;  %411 = vmatpush1.bf16.msra.mxu1 %v4967_v21  ;;  %v5769_v59 = vld [vmem:[#allocation9 + $0x8c] ss:$16 sps:$4 sm:$0xff]   ;;  %v5773_v60 = vld [vmem:[#allocation9 + $0x80] ss:$16 sps:$4 sm:$0xff]   ;;  %v5775_v61 = vld [vmem:[#allocation9 + $0x88] ss:$16 sps:$4 sm:$0xff]   ;;  %v113_v62 = vpack.c.bf16 %v108_v57, %v107_v56 }
  0x70   :  { %339 = vmatprep.subr.bf16.mxu0 %v4968_v22  ;;  %412 = vmatprep.subr.bf16.mxu1 %v4970_v23  ;;  %v5777_v63 = vld [vmem:[#allocation9 + $0xa4] ss:$16 sps:$4 sm:$0xff]   ;;  %v5779_v0 = vld [vmem:[#allocation9 + $0xac] ss:$16 sps:$4 sm:$0xff]   ;;  %v5785_v2 = vld [vmem:[#allocation9 + $0xa0] ss:$16 sps:$4 sm:$0xff]  }
  0x71   :  { %v5787_v3 = vld [vmem:[#allocation9 + $0xa8] ss:$16 sps:$4 sm:$0xff]   ;;  %v5789_v6 = vld [vmem:[#allocation9 + $0xc4] ss:$16 sps:$4 sm:$0xff]   ;;  %v5791_v7 = vld [vmem:[#allocation9 + $0xcc] ss:$16 sps:$4 sm:$0xff]  }
  0x72   :  { %v110_v5 = vld [vmem:[#allocation5 + $0x38] sm:$0xff]  ;;  %v5799_v8 = vld [vmem:[#allocation9 + $0xc0] ss:$16 sps:$4 sm:$0xff]   ;;  %v5803_v11 = vld [vmem:[#allocation9 + $0xe4] ss:$16 sps:$4 sm:$0xff]   ;;  %v6911_v19 = vsub.s32 0, %v5861_v16 }
  0x73   :  { %340 = vmatpush1.bf16.msra.mxu0 %v4972_v24  ;;  %413 = vmatpush1.bf16.msra.mxu1 %v4973_v25  ;;  %v5801_v9 = vld [vmem:[#allocation9 + $0xc8] ss:$16 sps:$4 sm:$0xff]   ;;  %v114_v10 = vpack.c.bf16 %v110_v5, %v109_v4  ;;  %v5805_v12 = vld [vmem:[#allocation9 + $0xec] ss:$16 sps:$4 sm:$0xff]   ;;  %v5811_v13 = vld [vmem:[#allocation9 + $0xe0] ss:$16 sps:$4 sm:$0xff]  }
  0x74   :  { %341 = vmatprep.subr.bf16.mxu0 %v4974_v26  ;;  %414 = vmatprep.subr.bf16.mxu1 %v4976_v27  ;;  %v5813_v14 = vld [vmem:[#allocation9 + $0xe8] ss:$16 sps:$4 sm:$0xff]   ;;  %v147_v20 = vld [vmem:[%s6901_s3] sm:$0xf]  ;;  %v6909_v21 = vsub.s32 1, %v5861_v16 }
  0x75   :  { %v5872_v22 = vrot.slane %v147_v20, %v6910_v17  ;;  %v5880_v25 = vrot.slane %v147_v20, %v6908_v18  ;;  %v152_v26 = vrot.slane %v147_v20, %v6911_v19 }
  0x77   :  { %342 = vmatpush1.bf16.msra.mxu0 %v4978_v28  ;;  %415 = vmatpush1.bf16.msra.mxu1 %v4979_v29  ;;  %v156_v29 = vrot.slane %v147_v20, %v6909_v21 }
  0x78   :  { %343 = vmatprep.subr.bf16.mxu0 %v4980_v30  ;;  %416 = vmatprep.subr.bf16.mxu1 %v4982_v31 }
  0x7b   :  { %344 = vmatpush1.bf16.msra.mxu0 %v4984_v32  ;;  %417 = vmatpush1.bf16.msra.mxu1 %v4985_v33 }
  0x7c   :  { %703 = vmatprep.subr.bf16.mxu0 %v5719_v36  ;;  %744 = vmatprep.subr.bf16.mxu1 %v5721_v37 }
  0x7e   :  { %362 = vmatmul.mubr.bf16.vlgmr.msra.gmra.mrb[0].mxu0 %v111_v38  ;;  %435 = vmatmul.mubr.bf16.vlgmr.msra.gmra.mrb[0].mxu1 %v111_v38 }
  0x7f   :  { %704 = vmatpush1.bf16.msra.mxu0 %v5723_v39  ;;  %745 = vmatpush1.bf16.msra.mxu1 %v5725_v40 }
  0x80   :  { %705 = vmatprep.subr.bf16.mxu0 %v5729_v41  ;;  %746 = vmatprep.subr.bf16.mxu1 %v5731_v42 }
  0x81   :  { %371 = vmatprep.mubr.bf16.mxu0 %v6912_v1  ;;  %444 = vmatprep.mubr.bf16.mxu1 %v6912_v1 }
  0x83   :  { %706 = vmatpush1.bf16.msra.mxu0 %v5733_v43  ;;  %747 = vmatpush1.bf16.msra.mxu1 %v5735_v44 }
  0x84   :  { %707 = vmatprep.subr.bf16.mxu0 %v5741_v47  ;;  %748 = vmatprep.subr.bf16.mxu1 %v5743_v48 }
  0x86   :  { %372 = vmatmul.mubr.bf16.gmra.mrb[4].mxu0 %v112_v49  ;;  %445 = vmatmul.mubr.bf16.gmra.mrb[4].mxu1 %v112_v49 }
  0x87   :  { %708 = vmatpush1.bf16.msra.mxu0 %v5747_v50  ;;  %749 = vmatpush1.bf16.msra.mxu1 %v5749_v51 }
  0x88   :  { %709 = vmatprep.subr.bf16.mxu0 %v5753_v52  ;;  %750 = vmatprep.subr.bf16.mxu1 %v5757_v53 }
  0x89   :  { %381 = vmatprep.mubr.bf16.mxu0 %v6912_v1  ;;  %454 = vmatprep.mubr.bf16.mxu1 %v6912_v1 }
  0x8b   :  { %710 = vmatpush1.bf16.msra.mxu0 %v5759_v54  ;;  %751 = vmatpush1.bf16.msra.mxu1 %v5761_v55 }
  0x8c   :  { %711 = vmatprep.subr.bf16.mxu0 %v5767_v58  ;;  %752 = vmatprep.subr.bf16.mxu1 %v5769_v59 }
  0x8e   :  { %382 = vmatmul.mubr.bf16.gmra.mrb[8].mxu0 %v113_v62  ;;  %455 = vmatmul.mubr.bf16.gmra.mrb[8].mxu1 %v113_v62 }
  0x8f   :  { %712 = vmatpush1.bf16.msra.mxu0 %v5773_v60  ;;  %753 = vmatpush1.bf16.msra.mxu1 %v5775_v61 }
  0x90   :  { %713 = vmatprep.subr.bf16.mxu0 %v5777_v63  ;;  %754 = vmatprep.subr.bf16.mxu1 %v5779_v0 }
  0x91   :  { %391 = vmatprep.mubr.bf16.mxu0 %v6912_v1  ;;  %464 = vmatprep.mubr.bf16.mxu1 %v6912_v1 }
  0x93   :  { %714 = vmatpush1.bf16.msra.mxu0 %v5785_v2  ;;  %755 = vmatpush1.bf16.msra.mxu1 %v5787_v3 }
  0x94   :  { %715 = vmatprep.subr.bf16.mxu0 %v5789_v6  ;;  %756 = vmatprep.subr.bf16.mxu1 %v5791_v7 }
  0x96   :  { %392 = vmatmul.mubr.bf16.gmra.mrb[12].mxu0 %v114_v10  ;;  %465 = vmatmul.mubr.bf16.gmra.mrb[12].mxu1 %v114_v10 }
  0x97   :  { %716 = vmatpush1.bf16.msra.mxu0 %v5799_v8  ;;  %757 = vmatpush1.bf16.msra.mxu1 %v5801_v9 }
  0x98   :  { %717 = vmatprep.subr.bf16.mxu0 %v5803_v11  ;;  %758 = vmatprep.subr.bf16.mxu1 %v5805_v12 }
  0x99   :  { %735 = vmatprep.mubr.bf16.mxu0 %v6912_v1  ;;  %776 = vmatprep.mubr.bf16.mxu1 %v6912_v1 }
  0x9b   :  { %718 = vmatpush1.bf16.msra.mxu0 %v5811_v13  ;;  %759 = vmatpush1.bf16.msra.mxu1 %v5813_v14 }
  0x9c   :  { %1012 = vmatprep.subr.bf16.mxu0 %v5719_v36  ;;  %1053 = vmatprep.subr.bf16.mxu1 %v5721_v37 }
  0x9e   :  { %736 = vmatmul.mubr.bf16.vlgmr.msra.gmra.mrb[16].mxu0 %v6912_v1  ;;  %777 = vmatmul.mubr.bf16.vlgmr.msra.gmra.mrb[16].mxu1 %v6912_v1 }
  0x9f   :  { %1013 = vmatpush1.bf16.msra.mxu0 %v5723_v39  ;;  %1054 = vmatpush1.bf16.msra.mxu1 %v5725_v40 }
  0xa0   :  { %1014 = vmatprep.subr.bf16.mxu0 %v5729_v41  ;;  %1055 = vmatprep.subr.bf16.mxu1 %v5731_v42 }
  0xa1   :  { %1044 = vmatprep.mubr.bf16.mxu0 %v6912_v1  ;;  %1085 = vmatprep.mubr.bf16.mxu1 %v6912_v1 }
  0xa3   :  { %1015 = vmatpush1.bf16.msra.mxu0 %v5733_v43  ;;  %1056 = vmatpush1.bf16.msra.mxu1 %v5735_v44 }
  0xa4   :  { %1016 = vmatprep.subr.bf16.mxu0 %v5741_v47  ;;  %1057 = vmatprep.subr.bf16.mxu1 %v5743_v48 }
  0xa7   :  { %1017 = vmatpush1.bf16.msra.mxu0 %v5747_v50  ;;  %1058 = vmatpush1.bf16.msra.mxu1 %v5749_v51 }
  0xa8   :  { %1018 = vmatprep.subr.bf16.mxu0 %v5753_v52  ;;  %1059 = vmatprep.subr.bf16.mxu1 %v5757_v53 }
  0xab   :  { %1019 = vmatpush1.bf16.msra.mxu0 %v5759_v54  ;;  %1060 = vmatpush1.bf16.msra.mxu1 %v5761_v55 }
  0xac   :  { %1020 = vmatprep.subr.bf16.mxu0 %v5767_v58  ;;  %1061 = vmatprep.subr.bf16.mxu1 %v5769_v59 }
  0xaf   :  { %1021 = vmatpush1.bf16.msra.mxu0 %v5773_v60  ;;  %1062 = vmatpush1.bf16.msra.mxu1 %v5775_v61 }
  0xb0   :  { %1022 = vmatprep.subr.bf16.mxu0 %v5777_v63  ;;  %1063 = vmatprep.subr.bf16.mxu1 %v5779_v0 }
  0xb3   :  { %1023 = vmatpush1.bf16.msra.mxu0 %v5785_v2  ;;  %1064 = vmatpush1.bf16.msra.mxu1 %v5787_v3 }
  0xb4   :  { %1024 = vmatprep.subr.bf16.mxu0 %v5789_v6  ;;  %1065 = vmatprep.subr.bf16.mxu1 %v5791_v7 }
  0xb7   :  { %1025 = vmatpush1.bf16.msra.mxu0 %v5799_v8  ;;  %1066 = vmatpush1.bf16.msra.mxu1 %v5801_v9 }
  0xb8   :  { %1026 = vmatprep.subr.bf16.mxu0 %v5803_v11  ;;  %1067 = vmatprep.subr.bf16.mxu1 %v5805_v12 }
  0xbb   :  { %1027 = vmatpush1.bf16.msra.mxu0 %v5811_v13  ;;  %1068 = vmatpush1.bf16.msra.mxu1 %v5813_v14 }
  0xbc   :  { %1322 = vmatprep.subr.bf16.mxu0 %v5719_v36  ;;  %1363 = vmatprep.subr.bf16.mxu1 %v5721_v37 }
 0x151   :  { %v5874_v23 = vpop.f32.mrb[0].mxu0  ;;  %v5876_v24 = vpop.f32.mrb[0].mxu1 }
 0x152   :  { %v365_v27 = vpop.f32.mrb[1].mxu0  ;;  %v438_v28 = vpop.f32.mrb[1].mxu1 }
 0x153   :  { %v367_v30 = vpop.f32.mrb[2].mxu0  ;;  %v440_v31 = vpop.f32.mrb[2].mxu1 }
 0x154   :  { %v5886_v32 = vadd.f32 %v367_v30, %v152_v26  ;;  %v369_v33 = vpop.f32.mrb[3].mxu0  ;;  %v5889_v34 = vadd.f32 %v440_v31, %v5872_v22  ;;  %v442_v35 = vpop.f32.mrb[3].mxu1 }
 0x155   :  { %v5891_v38 = vadd.f32 %v369_v33, %v156_v29  ;;  %v5894_v45 = vadd.f32 %v442_v35, %v5880_v25 }
 0x159   :  { %v373_v46 = vpop.f32.mrb[4].mxu0  ;;  %v446_v49 = vpop.f32.mrb[4].mxu1 }
 0x15a   :  { %v5896_v56 = vadd.f32 %v373_v46, %v152_v26  ;;  %v375_v57 = vpop.f32.mrb[5].mxu0  ;;  %v5899_v62 = vadd.f32 %v446_v49, %v5872_v22  ;;  %v448_v4 = vpop.f32.mrb[5].mxu1 }
 0x15b   :  { %v5901_v5 = vadd.f32 %v375_v57, %v156_v29  ;;  %v377_v10 = vpop.f32.mrb[6].mxu0  ;;  %v5904_v15 = vadd.f32 %v448_v4, %v5880_v25  ;;  %v450_v20 = vpop.f32.mrb[6].mxu1 }
 0x15c   :  { %v5906_v30 = vadd.f32 %v377_v10, %v152_v26  ;;  %v379_v31 = vpop.f32.mrb[7].mxu0  ;;  %v5909_v33 = vadd.f32 %v450_v20, %v5872_v22  ;;  %v452_v35 = vpop.f32.mrb[7].mxu1 }
 0x15d   :  { %6917 = vst [vmem:[#allocation17_spill] sm:$0xff] %v5904_v15  ;;  %v5911_v46 = vadd.f32 %v379_v31, %v156_v29  ;;  %v5914_v49 = vadd.f32 %v452_v35, %v5880_v25 }
 0x15e   :  { %6918 = vst [vmem:[#allocation18_spill] sm:$0xff] %v5906_v30  ;;  %6919 = vst [vmem:[#allocation19_spill] sm:$0xff] %v5909_v33 }
 0x15f   :  { %6920 = vst [vmem:[#allocation20_spill] sm:$0xff] %v5911_v46  ;;  %6921 = vst [vmem:[#allocation21_spill] sm:$0xff] %v5914_v49 }
 0x161   :  { %v383_v18 = vpop.f32.mrb[8].mxu0  ;;  %v456_v57 = vpop.f32.mrb[8].mxu1 }
 0x162   :  { %v5916_v21 = vadd.f32 %v383_v18, %v152_v26  ;;  %v385_v17 = vpop.f32.mrb[9].mxu0  ;;  %v5919_v4 = vadd.f32 %v456_v57, %v5872_v22  ;;  %v458_v10 = vpop.f32.mrb[9].mxu1 }
 0x163   :  { %v5921_v19 = vadd.f32 %v385_v17, %v156_v29  ;;  %v387_v1 = vpop.f32.mrb[10].mxu0  ;;  %v5924_v20 = vadd.f32 %v458_v10, %v5880_v25  ;;  %v460_v31 = vpop.f32.mrb[10].mxu1 }
 0x164   :  { %6922 = vst [vmem:[#allocation22_spill] sm:$0xff] %v5916_v21  ;;  %6923 = vst [vmem:[#allocation23_spill] sm:$0xff] %v5919_v4  ;;  %v5926_v16 = vadd.f32 %v387_v1, %v152_v26  ;;  %v389_v35 = vpop.f32.mrb[11].mxu0  ;;  %v5929_v49 = vadd.f32 %v460_v31, %v5872_v22  ;;  %v462_v18 = vpop.f32.mrb[11].mxu1 }
 0x165   :  { %6924 = vst [vmem:[#allocation24_spill] sm:$0xff] %v5921_v19  ;;  %6925 = vst [vmem:[#allocation25_spill] sm:$0xff] %v5924_v20  ;;  %v5931_v21 = vadd.f32 %v389_v35, %v156_v29  ;;  %v5934_v57 = vadd.f32 %v462_v18, %v5880_v25 }
 0x166   :  { %6926 = vst [vmem:[#allocation26_spill] sm:$0xff] %v5926_v16  ;;  %6927 = vst [vmem:[#allocation27_spill] sm:$0xff] %v5929_v49 }
 0x167   :  { %6928 = vst [vmem:[#allocation28_spill] sm:$0xff] %v5931_v21  ;;  %6929 = vst [vmem:[#allocation29_spill] sm:$0xff] %v5934_v57 }
 0x169   :  { %v393_v4 = vpop.f32.mrb[12].mxu0  ;;  %v466_v17 = vpop.f32.mrb[12].mxu1 }
 0x16a   :  { %v5936_v19 = vadd.f32 %v393_v4, %v152_v26  ;;  %v395_v46 = vpop.f32.mrb[13].mxu0  ;;  %v5939_v10 = vadd.f32 %v466_v17, %v5872_v22  ;;  %v468_v1 = vpop.f32.mrb[13].mxu1 }
 0x16b   :  { %v5941_v16 = vadd.f32 %v395_v46, %v156_v29  ;;  %v397_v20 = vpop.f32.mrb[14].mxu0  ;;  %v5944_v31 = vadd.f32 %v468_v1, %v5880_v25  ;;  %v470_v35 = vpop.f32.mrb[14].mxu1  ;;  %v364_v46 = vadd.f32 %v5874_v23, %v152_v26  ;;  %v366_v1 = vadd.f32 %v365_v27, %v156_v29 }
 0x16c   :  { %6930 = vst [vmem:[#allocation30_spill] sm:$0xff] %v5936_v19  ;;  %6931 = vst [vmem:[#allocation31_spill] sm:$0xff] %v5939_v10  ;;  %v5946_v21 = vadd.f32 %v397_v20, %v152_v26  ;;  %v399_v18 = vpop.f32.mrb[15].mxu0  ;;  %v5949_v57 = vadd.f32 %v470_v35, %v5872_v22  ;;  %v472_v4 = vpop.f32.mrb[15].mxu1 }
 0x16d   :  { %6932 = vst [vmem:[#allocation32_spill] sm:$0xff] %v5941_v16  ;;  %6933 = vst [vmem:[#allocation33_spill] sm:$0xff] %v5944_v31  ;;  %v5951_v19 = vadd.f32 %v399_v18, %v156_v29  ;;  %v5954_v17 = vadd.f32 %v472_v4, %v5880_v25  ;;  %v437_v16 = vadd.f32 %v5876_v24, %v5872_v22 }
 0x16e   :  { %6934 = vst [vmem:[#allocation34_spill] sm:$0xff] %v5946_v21  ;;  %6935 = vst [vmem:[#allocation35_spill] sm:$0xff] %v5949_v57  ;;  %v439_v31 = vadd.f32 %v438_v28, %v5880_v25 }
 0x16f   :  { %6936 = vst [vmem:[#allocation36_spill] sm:$0xff] %v5951_v19  ;;  %6937 = vst [vmem:[#allocation37_spill] sm:$0xff] %v5954_v17 }
 0x171   :  { %v737_v20 = vpop.f32.mrb[16].mxu0  ;;  %v778_v21 = vpop.f32.mrb[16].mxu1 }
 0x172   :  { %v785_v10 = vadd.f32 %v737_v20, %v364_v46  ;;  %v787_v49 = vadd.f32 %v778_v21, %v437_v16  ;;  %v739_v35 = vpop.f32.mrb[17].mxu0  ;;  %v780_v57 = vpop.f32.mrb[17].mxu1 }
 0x173   :  { %v786_v33 = vadd.f32 %v739_v35, %v366_v1  ;;  %v788_v18 = vadd.f32 %v780_v57, %v439_v31  ;;  %v741_v19 = vpop.f32.mrb[18].mxu0  ;;  %v782_v30 = vpop.f32.mrb[18].mxu1 }
 0x174   :  { %v4590_v4 = vmul.f32 -1.442695, %v785_v10  ;;  %v742_v17 = vpop.f32.mrb[19].mxu0  ;;  %v783_v15 = vpop.f32.mrb[19].mxu1  ;;  %v4592_v22 = vmul.f32 -1.442695, %v787_v49 }
 0x175   :  { %v4591_v23 = vmul.f32 -1.442695, %v786_v33  ;;  %v6938_v17 = vmov 0  }
 0x176   :  { %5178 = vpow2.f32 %v4590_v4 }
 0x177   :  { %5180 = vpow2.f32 %v4591_v23 }
 0x178   :  { %5182 = vtanh.f32 %v788_v18 }
 0x179   :  { %5184 = vpow2.f32 %v4592_v22 }
 0x180   :  { %v5179_v24 = vpop.eup %5178 }
 0x181   :  { %v798_v26 = vadd.f32 1.0, %v5179_v24  ;;  %v5181_v25 = vpop.eup %5180 }
 0x182   :  { %v799_v16 = vadd.f32 1.0, %v5181_v25  ;;  %v5183_v21 = vpop.eup %5182 }
 0x183   :  { %5186 = vrcp.f32 %v798_v26  ;;  %v5185_v27 = vpop.eup %5184 }
 0x184   :  { %5188 = vrcp.f32 %v799_v16  ;;  %v800_v30 = vadd.f32 1.0, %v5185_v27 }
 0x186   :  { %5190 = vrcp.f32 %v800_v30 }
 0x18d   :  { %v5187_v28 = vpop.eup %5186 }
 0x18e   :  { %v809_v19 = vmul.f32 %v5187_v28, %v5183_v21  ;;  %v5189_v29 = vpop.eup %5188 }
 0x18f   :  { %v808_v57 = vmul.f32 0.0, %v5189_v29 }
 0x190   :  { %v5191_v33 = vpop.eup %5190 }
 0x191   :  { %v5960_v15 = vadd.f32 %v809_v19, %v808_v57 }
 0x193   :  { %5192 = vtanh.f32 %v5960_v15 }
 0x19d   :  { %v5193_v49 = vpop.eup %5192 }
 0x19e   :  { %v5963_v10 = vmul.f32 %v5193_v49, %v5191_v33 }
 0x1a0   :  { %v819_v31 = vpack.c.bf16 %v5963_v10, %v5963_v10 }
 0x1a2   :  { %1045 = vmatmul.mubr.bf16.vlgmr.msra.gmra.mrb[20].mxu0 %v819_v31  ;;  %1086 = vmatmul.mubr.bf16.vlgmr.msra.gmra.mrb[20].mxu1 %v819_v31 }
 0x1a3   :  { %1323 = vmatpush1.bf16.msra.mxu0 %v5723_v39  ;;  %1364 = vmatpush1.bf16.msra.mxu1 %v5725_v40 }
 0x1a4   :  { %1324 = vmatprep.subr.bf16.mxu0 %v5729_v41  ;;  %1365 = vmatprep.subr.bf16.mxu1 %v5731_v42 }
 0x1a5   :  { %1354 = vmatprep.mubr.bf16.mxu0 %v6938_v17  ;;  %1395 = vmatprep.mubr.bf16.mxu1 %v6938_v17 }
 0x1a7   :  { %1325 = vmatpush1.bf16.msra.mxu0 %v5733_v43  ;;  %1366 = vmatpush1.bf16.msra.mxu1 %v5735_v44 }
 0x1a8   :  { %1326 = vmatprep.subr.bf16.mxu0 %v5741_v47  ;;  %1367 = vmatprep.subr.bf16.mxu1 %v5743_v48 }
 0x1ab   :  { %1327 = vmatpush1.bf16.msra.mxu0 %v5747_v50  ;;  %1368 = vmatpush1.bf16.msra.mxu1 %v5749_v51 }
 0x1ac   :  { %1328 = vmatprep.subr.bf16.mxu0 %v5753_v52  ;;  %1369 = vmatprep.subr.bf16.mxu1 %v5757_v53 }
 0x1af   :  { %1329 = vmatpush1.bf16.msra.mxu0 %v5759_v54  ;;  %1370 = vmatpush1.bf16.msra.mxu1 %v5761_v55 }
 0x1b0   :  { %1330 = vmatprep.subr.bf16.mxu0 %v5767_v58  ;;  %1371 = vmatprep.subr.bf16.mxu1 %v5769_v59 }
 0x1b3   :  { %1331 = vmatpush1.bf16.msra.mxu0 %v5773_v60  ;;  %1372 = vmatpush1.bf16.msra.mxu1 %v5775_v61 }
 0x1b4   :  { %1332 = vmatprep.subr.bf16.mxu0 %v5777_v63  ;;  %1373 = vmatprep.subr.bf16.mxu1 %v5779_v0 }
 0x1b7   :  { %1333 = vmatpush1.bf16.msra.mxu0 %v5785_v2  ;;  %1374 = vmatpush1.bf16.msra.mxu1 %v5787_v3 }
 0x1b8   :  { %1334 = vmatprep.subr.bf16.mxu0 %v5789_v6  ;;  %1375 = vmatprep.subr.bf16.mxu1 %v5791_v7 }
 0x1bb   :  { %1335 = vmatpush1.bf16.msra.mxu0 %v5799_v8  ;;  %1376 = vmatpush1.bf16.msra.mxu1 %v5801_v9 }
 0x1bc   :  { %1336 = vmatprep.subr.bf16.mxu0 %v5803_v11  ;;  %1377 = vmatprep.subr.bf16.mxu1 %v5805_v12 }
 0x1bf   :  { %1337 = vmatpush1.bf16.msra.mxu0 %v5811_v13  ;;  %1378 = vmatpush1.bf16.msra.mxu1 %v5813_v14 }
 0x1c0   :  { %1632 = vmatprep.subr.bf16.mxu0 %v5719_v36  ;;  %1673 = vmatprep.subr.bf16.mxu1 %v5721_v37 }
 0x275   :  { %v1046_v46 = vpop.f32.mrb[20].mxu0  ;;  %v1087_v1 = vpop.f32.mrb[20].mxu1 }
 0x276   :  { %v1094_v20 = vadd.f32 %v1046_v46, %v5886_v32  ;;  %v1096_v35 = vadd.f32 %v1087_v1, %v5889_v34  ;;  %v1048_v18 = vpop.f32.mrb[21].mxu0  ;;  %v1089_v4 = vpop.f32.mrb[21].mxu1 }
 0x277   :  { %v1095_v23 = vadd.f32 %v1048_v18, %v5891_v38  ;;  %v1097_v22 = vadd.f32 %v1089_v4, %v5894_v45  ;;  %v1050_v24 = vpop.f32.mrb[22].mxu0  ;;  %v1091_v26 = vpop.f32.mrb[22].mxu1  ;;  %v6065_v18 = vld [vmem:[#allocation9 + $0x8] ss:$16 sps:$4 sm:$0xff]   ;;  %v6071_v4 = vld [vmem:[#allocation9 + $0x24] ss:$16 sps:$4 sm:$0xff]  }
 0x278   :  { %v4625_v25 = vmul.f32 -1.442695, %v1094_v20  ;;  %v1051_v16 = vpop.f32.mrb[23].mxu0  ;;  %v1092_v21 = vpop.f32.mrb[23].mxu1  ;;  %v4627_v37 = vmul.f32 -1.442695, %v1096_v35 }
 0x279   :  { %v4626_v36 = vmul.f32 -1.442695, %v1095_v23  ;;  %v6063_v35 = vld [vmem:[#allocation9] ss:$16 sps:$4 sm:$0xff]   ;;  %v6073_v23 = vld [vmem:[#allocation9 + $0x2c] ss:$16 sps:$4 sm:$0xff]  }
 0x27a   :  { %5194 = vpow2.f32 %v4625_v25  ;;  %v6077_v24 = vld [vmem:[#allocation9 + $0x28] ss:$16 sps:$4 sm:$0xff]   ;;  %v6083_v26 = vld [vmem:[#allocation9 + $0x44] ss:$16 sps:$4 sm:$0xff]   ;;  %v6085_v25 = vld [vmem:[#allocation9 + $0x4c] ss:$16 sps:$4 sm:$0xff]  }
 0x27b   :  { %5196 = vpow2.f32 %v4626_v36  ;;  %v6087_v16 = vld [vmem:[#allocation9 + $0x40] ss:$16 sps:$4 sm:$0xff]   ;;  %v6089_v21 = vld [vmem:[#allocation9 + $0x48] ss:$16 sps:$4 sm:$0xff]   ;;  %v6095_v36 = vld [vmem:[#allocation9 + $0x64] ss:$16 sps:$4 sm:$0xff]  }
 0x27c   :  { %5198 = vtanh.f32 %v1097_v22  ;;  %v6075_v22 = vld [vmem:[#allocation9 + $0x20] ss:$16 sps:$4 sm:$0xff]  }
 0x27d   :  { %5200 = vpow2.f32 %v4627_v37  ;;  %v6097_v37 = vld [vmem:[#allocation9 + $0x6c] ss:$16 sps:$4 sm:$0xff]  }
 0x284   :  { %v5195_v27 = vpop.eup %5194 }
 0x285   :  { %v1107_v28 = vadd.f32 1.0, %v5195_v27  ;;  %v5197_v32 = vpop.eup %5196  ;;  %v6099_v27 = vld [vmem:[#allocation9 + $0x60] ss:$16 sps:$4 sm:$0xff]  }
 0x286   :  { %v1108_v34 = vadd.f32 1.0, %v5197_v32  ;;  %v5199_v38 = vpop.eup %5198  ;;  %v6107_v32 = vld [vmem:[#allocation9 + $0x84] ss:$16 sps:$4 sm:$0xff]  }
 0x287   :  { %5202 = vrcp.f32 %v1107_v28  ;;  %v5201_v19 = vpop.eup %5200  ;;  %v6101_v28 = vld [vmem:[#allocation9 + $0x68] ss:$16 sps:$4 sm:$0xff]  }
 0x288   :  { %5204 = vrcp.f32 %v1108_v34  ;;  %v1109_v57 = vadd.f32 1.0, %v5201_v19  ;;  %v6109_v34 = vld [vmem:[#allocation9 + $0x8c] ss:$16 sps:$4 sm:$0xff]   ;;  %v6113_v19 = vld [vmem:[#allocation9 + $0x88] ss:$16 sps:$4 sm:$0xff]  }
 0x28a   :  { %5206 = vrcp.f32 %v1109_v57  ;;  %v6125_v57 = vld [vmem:[#allocation9 + $0xac] ss:$16 sps:$4 sm:$0xff]  }
 0x291   :  { %v5203_v45 = vpop.eup %5202 }
 0x292   :  { %v1118_v29 = vmul.f32 %v5203_v45, %v5199_v38  ;;  %v5205_v30 = vpop.eup %5204  ;;  %v6111_v38 = vld [vmem:[#allocation9 + $0x80] ss:$16 sps:$4 sm:$0xff]  }
 0x293   :  { %v1117_v33 = vmul.f32 %v5205_v30, %v5960_v15  ;;  %v6061_v15 = vld [vmem:[#allocation9 + $0xc] ss:$16 sps:$4 sm:$0xff]   ;;  %v6119_v45 = vld [vmem:[#allocation9 + $0xa0] ss:$16 sps:$4 sm:$0xff]   ;;  %v6123_v30 = vld [vmem:[#allocation9 + $0xa8] ss:$16 sps:$4 sm:$0xff]  }
 0x294   :  { %v5207_v31 = vpop.eup %5206 }
 0x295   :  { %v6006_v49 = vadd.f32 %v1118_v29, %v1117_v33  ;;  %v6121_v29 = vld [vmem:[#allocation9 + $0xa4] ss:$16 sps:$4 sm:$0xff]  }
 0x296   :  { %v6127_v33 = vld [vmem:[#allocation9 + $0xc4] ss:$16 sps:$4 sm:$0xff]  }
 0x297   :  { %5208 = vtanh.f32 %v6006_v49 }
 0x2a1   :  { %v5209_v46 = vpop.eup %5208 }
 0x2a2   :  { %v6009_v1 = vmul.f32 %v5209_v46, %v5207_v31  ;;  %v6135_v31 = vld [vmem:[#allocation9 + $0xc0] ss:$16 sps:$4 sm:$0xff]   ;;  %v6137_v46 = vld [vmem:[#allocation9 + $0xc8] ss:$16 sps:$4 sm:$0xff]  }
 0x2a4   :  { %v1129_v20 = vpack.c.bf16 %v6009_v1, %v6009_v1 }
 0x2a6   :  { %1355 = vmatmul.mubr.bf16.vlgmr.msra.gmra.mrb[24].mxu0 %v1129_v20  ;;  %1396 = vmatmul.mubr.bf16.vlgmr.msra.gmra.mrb[24].mxu1 %v1129_v20  ;;  %v6141_v20 = vld [vmem:[#allocation9 + $0xe4] ss:$16 sps:$4 sm:$0xff]  }
 0x2a7   :  { %1633 = vmatpush1.bf16.msra.mxu0 %v5723_v39  ;;  %1674 = vmatpush1.bf16.msra.mxu1 %v5725_v40 }
 0x2a8   :  { %1634 = vmatprep.subr.bf16.mxu0 %v5729_v41  ;;  %1675 = vmatprep.subr.bf16.mxu1 %v5731_v42 }
 0x2a9   :  { %1664 = vmatprep.mubr.bf16.mxu0 %v6938_v17  ;;  %1705 = vmatprep.mubr.bf16.mxu1 %v6938_v17 }
 0x2ab   :  { %1635 = vmatpush1.bf16.msra.mxu0 %v5733_v43  ;;  %1676 = vmatpush1.bf16.msra.mxu1 %v5735_v44 }
 0x2ac   :  { %1636 = vmatprep.subr.bf16.mxu0 %v5741_v47  ;;  %1677 = vmatprep.subr.bf16.mxu1 %v5743_v48  ;;  %v6939_v48 = vld [vmem:[#allocation17_spill] sm:$0xff] }
 0x2af   :  { %1637 = vmatpush1.bf16.msra.mxu0 %v5747_v50  ;;  %1678 = vmatpush1.bf16.msra.mxu1 %v5749_v51 }
 0x2b0   :  { %1638 = vmatprep.subr.bf16.mxu0 %v5753_v52  ;;  %1679 = vmatprep.subr.bf16.mxu1 %v5757_v53 }
 0x2b3   :  { %1639 = vmatpush1.bf16.msra.mxu0 %v5759_v54  ;;  %1680 = vmatpush1.bf16.msra.mxu1 %v5761_v55 }
 0x2b4   :  { %1640 = vmatprep.subr.bf16.mxu0 %v5767_v58  ;;  %1681 = vmatprep.subr.bf16.mxu1 %v5769_v59 }
 0x2b7   :  { %1641 = vmatpush1.bf16.msra.mxu0 %v5773_v60  ;;  %1682 = vmatpush1.bf16.msra.mxu1 %v5775_v61 }
 0x2b8   :  { %1642 = vmatprep.subr.bf16.mxu0 %v5777_v63  ;;  %1683 = vmatprep.subr.bf16.mxu1 %v5779_v0 }
 0x2bb   :  { %1643 = vmatpush1.bf16.msra.mxu0 %v5785_v2  ;;  %1684 = vmatpush1.bf16.msra.mxu1 %v5787_v3 }
 0x2bc   :  { %1644 = vmatprep.subr.bf16.mxu0 %v5789_v6  ;;  %1685 = vmatprep.subr.bf16.mxu1 %v5791_v7 }
 0x2bf   :  { %1645 = vmatpush1.bf16.msra.mxu0 %v5799_v8  ;;  %1686 = vmatpush1.bf16.msra.mxu1 %v5801_v9 }
 0x2c0   :  { %1646 = vmatprep.subr.bf16.mxu0 %v5803_v11  ;;  %1687 = vmatprep.subr.bf16.mxu1 %v5805_v12 }
 0x2c3   :  { %1647 = vmatpush1.bf16.msra.mxu0 %v5811_v13  ;;  %1688 = vmatpush1.bf16.msra.mxu1 %v5813_v14 }
 0x2c4   :  { %1983 = vmatprep.subr.bf16.mxu1 %v6061_v15 }
 0x379   :  { %v1356_v39 = vpop.f32.mrb[24].mxu0  ;;  %v1397_v40 = vpop.f32.mrb[24].mxu1 }
 0x37a   :  { %v1404_v41 = vadd.f32 %v1356_v39, %v5896_v56  ;;  %v1406_v42 = vadd.f32 %v1397_v40, %v5899_v62  ;;  %v1358_v43 = vpop.f32.mrb[25].mxu0  ;;  %v1399_v44 = vpop.f32.mrb[25].mxu1  ;;  %v6143_v39 = vld [vmem:[#allocation9 + $0xec] ss:$16 sps:$4 sm:$0xff]   ;;  %v6147_v40 = vld [vmem:[#allocation9 + $0xe0] ss:$16 sps:$4 sm:$0xff]  }
 0x37b   :  { %v1405_v47 = vadd.f32 %v1358_v43, %v5901_v5  ;;  %v1407_v50 = vadd.f32 %v1399_v44, %v6939_v48  ;;  %v1360_v51 = vpop.f32.mrb[26].mxu0  ;;  %v1401_v52 = vpop.f32.mrb[26].mxu1  ;;  %v6059_v5 = vld [vmem:[#allocation9 + $0x4] ss:$16 sps:$4 sm:$0xff]   ;;  %v6941_v48 = vld [vmem:[#allocation19_spill] sm:$0xff] }
 0x37c   :  { %v4660_v53 = vmul.f32 -1.442695, %v1404_v41  ;;  %v1361_v54 = vpop.f32.mrb[27].mxu0  ;;  %v1402_v55 = vpop.f32.mrb[27].mxu1  ;;  %v4662_v59 = vmul.f32 -1.442695, %v1406_v42  ;;  %1942 = vmatprep.subr.bf16.mxu0 %v6059_v5 }
 0x37d   :  { %v4661_v58 = vmul.f32 -1.442695, %v1405_v47  ;;  %v6149_v41 = vld [vmem:[#allocation9 + $0xe8] ss:$16 sps:$4 sm:$0xff]   ;;  %v6940_v44 = vld [vmem:[#allocation18_spill] sm:$0xff] }
 0x37e   :  { %5210 = vpow2.f32 %v4660_v53  ;;  %v6942_v53 = vld [vmem:[#allocation20_spill] sm:$0xff]  ;;  %v6943_v55 = vld [vmem:[#allocation21_spill] sm:$0xff] }
 0x37f   :  { %5212 = vpow2.f32 %v4661_v58 }
 0x380   :  { %5214 = vtanh.f32 %v1407_v50 }
 0x381   :  { %5216 = vpow2.f32 %v4662_v59 }
 0x388   :  { %v5211_v60 = vpop.eup %5210 }
 0x389   :  { %v1417_v61 = vadd.f32 1.0, %v5211_v60  ;;  %v5213_v63 = vpop.eup %5212 }
 0x38a   :  { %v1418_v0 = vadd.f32 1.0, %v5213_v63  ;;  %v5215_v2 = vpop.eup %5214 }
 0x38b   :  { %5218 = vrcp.f32 %v1417_v61  ;;  %v5217_v3 = vpop.eup %5216 }
 0x38c   :  { %5220 = vrcp.f32 %v1418_v0  ;;  %v1419_v9 = vadd.f32 1.0, %v5217_v3 }
 0x38e   :  { %5222 = vrcp.f32 %v1419_v9 }
 0x395   :  { %v5219_v6 = vpop.eup %5218 }
 0x396   :  { %v1428_v7 = vmul.f32 %v5219_v6, %v5215_v2  ;;  %v5221_v8 = vpop.eup %5220 }
 0x397   :  { %v1427_v11 = vmul.f32 %v5221_v8, %v6006_v49  ;;  %v6130_v49 = vld [vmem:[#allocation9 + $0xcc] ss:$16 sps:$4 sm:$0xff]  }
 0x398   :  { %v5223_v13 = vpop.eup %5222 }
 0x399   :  { %v6050_v12 = vadd.f32 %v1428_v7, %v1427_v11 }
 0x39b   :  { %5224 = vtanh.f32 %v6050_v12 }
 0x3a5   :  { %v5225_v14 = vpop.eup %5224 }
 0x3a6   :  { %v6053_v56 = vmul.f32 %v5225_v14, %v5223_v13 }
 0x3a8   :  { %v1439_v62 = vpack.c.bf16 %v6053_v56, %v6053_v56 }
 0x3aa   :  { %1665 = vmatmul.mubr.bf16.vlgmr.msra.gmra.mrb[28].mxu0 %v1439_v62  ;;  %1706 = vmatmul.mubr.bf16.vlgmr.msra.gmra.mrb[28].mxu1 %v1439_v62 }
 0x3ab   :  { %1974 = vmatprep.mubr.bf16.mxu0 %v6938_v17  ;;  %2015 = vmatprep.mubr.bf16.mxu1 %v6938_v17 }
 0x3ac   :  { %1943 = vmatpush1.bf16.msra.mxu0 %v6063_v35  ;;  %1984 = vmatpush1.bf16.msra.mxu1 %v6065_v18 }
 0x3ad   :  { %1944 = vmatprep.subr.bf16.mxu0 %v6071_v4  ;;  %1985 = vmatprep.subr.bf16.mxu1 %v6073_v23 }
 0x3b0   :  { %1945 = vmatpush1.bf16.msra.mxu0 %v6075_v22  ;;  %1986 = vmatpush1.bf16.msra.mxu1 %v6077_v24 }
 0x3b1   :  { %1946 = vmatprep.subr.bf16.mxu0 %v6083_v26  ;;  %1987 = vmatprep.subr.bf16.mxu1 %v6085_v25 }
 0x3b4   :  { %1947 = vmatpush1.bf16.msra.mxu0 %v6087_v16  ;;  %1988 = vmatpush1.bf16.msra.mxu1 %v6089_v21 }
 0x3b5   :  { %1948 = vmatprep.subr.bf16.mxu0 %v6095_v36  ;;  %1989 = vmatprep.subr.bf16.mxu1 %v6097_v37 }
 0x3b8   :  { %1949 = vmatpush1.bf16.msra.mxu0 %v6099_v27  ;;  %1990 = vmatpush1.bf16.msra.mxu1 %v6101_v28 }
 0x3b9   :  { %1950 = vmatprep.subr.bf16.mxu0 %v6107_v32  ;;  %1991 = vmatprep.subr.bf16.mxu1 %v6109_v34 }
 0x3bc   :  { %1951 = vmatpush1.bf16.msra.mxu0 %v6111_v38  ;;  %1992 = vmatpush1.bf16.msra.mxu1 %v6113_v19 }
 0x3bd   :  { %1952 = vmatprep.subr.bf16.mxu0 %v6121_v29  ;;  %1993 = vmatprep.subr.bf16.mxu1 %v6125_v57 }
 0x3c0   :  { %1953 = vmatpush1.bf16.msra.mxu0 %v6119_v45  ;;  %1994 = vmatpush1.bf16.msra.mxu1 %v6123_v30 }
 0x3c1   :  { %1954 = vmatprep.subr.bf16.mxu0 %v6127_v33  ;;  %1995 = vmatprep.subr.bf16.mxu1 %v6130_v49 }
 0x3c4   :  { %1955 = vmatpush1.bf16.msra.mxu0 %v6135_v31  ;;  %1996 = vmatpush1.bf16.msra.mxu1 %v6137_v46 }
 0x3c5   :  { %1956 = vmatprep.subr.bf16.mxu0 %v6141_v20  ;;  %1997 = vmatprep.subr.bf16.mxu1 %v6143_v39 }
 0x3c8   :  { %1957 = vmatpush1.bf16.msra.mxu0 %v6147_v40  ;;  %1998 = vmatpush1.bf16.msra.mxu1 %v6149_v41 }
 0x3c9   :  { %2252 = vmatprep.subr.bf16.mxu0 %v6059_v5  ;;  %2293 = vmatprep.subr.bf16.mxu1 %v6061_v15 }
 0x47d   :  { %v1666_v42 = vpop.f32.mrb[28].mxu0  ;;  %v1707_v43 = vpop.f32.mrb[28].mxu1 }
 0x47e   :  { %v1714_v47 = vadd.f32 %v1666_v42, %v6940_v44  ;;  %v1716_v50 = vadd.f32 %v1707_v43, %v6941_v48  ;;  %v1668_v51 = vpop.f32.mrb[29].mxu0  ;;  %v1709_v52 = vpop.f32.mrb[29].mxu1 }
 0x47f   :  { %v1715_v54 = vadd.f32 %v1668_v51, %v6942_v53  ;;  %v1717_v58 = vadd.f32 %v1709_v52, %v6943_v55  ;;  %v1670_v59 = vpop.f32.mrb[30].mxu0  ;;  %v1711_v60 = vpop.f32.mrb[30].mxu1 }
 0x480   :  { %v4695_v61 = vmul.f32 -1.442695, %v1714_v47  ;;  %v1671_v63 = vpop.f32.mrb[31].mxu0  ;;  %v1712_v0 = vpop.f32.mrb[31].mxu1  ;;  %v4697_v3 = vmul.f32 -1.442695, %v1716_v50 }
 0x481   :  { %v4696_v2 = vmul.f32 -1.442695, %v1715_v54  ;;  %v6944_v54 = vld [vmem:[#allocation22_spill] sm:$0xff]  ;;  %v6946_v63 = vld [vmem:[#allocation24_spill] sm:$0xff] }
 0x482   :  { %5226 = vpow2.f32 %v4695_v61 }
 0x483   :  { %5228 = vpow2.f32 %v4696_v2  ;;  %v6947_v2 = vld [vmem:[#allocation25_spill] sm:$0xff] }
 0x484   :  { %5230 = vtanh.f32 %v1717_v58  ;;  %v6945_v58 = vld [vmem:[#allocation23_spill] sm:$0xff] }
 0x485   :  { %5232 = vpow2.f32 %v4697_v3 }
 0x48c   :  { %v5227_v6 = vpop.eup %5226 }
 0x48d   :  { %v1727_v7 = vadd.f32 1.0, %v5227_v6  ;;  %v5229_v8 = vpop.eup %5228 }
 0x48e   :  { %v1728_v9 = vadd.f32 1.0, %v5229_v8  ;;  %v5231_v11 = vpop.eup %5230 }
 0x48f   :  { %5234 = vrcp.f32 %v1727_v7  ;;  %v5233_v13 = vpop.eup %5232 }
 0x490   :  { %5236 = vrcp.f32 %v1728_v9  ;;  %v1729_v43 = vadd.f32 1.0, %v5233_v13 }
 0x492   :  { %5238 = vrcp.f32 %v1729_v43 }
 0x499   :  { %v5235_v14 = vpop.eup %5234 }
 0x49a   :  { %v1738_v62 = vmul.f32 %v5235_v14, %v5231_v11  ;;  %v5237_v42 = vpop.eup %5236 }
 0x49b   :  { %v1737_v44 = vmul.f32 %v5237_v42, %v6050_v12 }
 0x49c   :  { %v5239_v48 = vpop.eup %5238 }
 0x49d   :  { %v6162_v47 = vadd.f32 %v1738_v62, %v1737_v44 }
 0x49f   :  { %5240 = vtanh.f32 %v6162_v47 }
 0x4a9   :  { %v5241_v50 = vpop.eup %5240 }
 0x4aa   :  { %v6165_v51 = vmul.f32 %v5241_v50, %v5239_v48 }
 0x4ac   :  { %v1749_v52 = vpack.c.bf16 %v6165_v51, %v6165_v51 }
 0x4ae   :  { %1975 = vmatmul.mubr.bf16.vlgmr.msra.gmra.mrb[32].mxu0 %v1749_v52  ;;  %2016 = vmatmul.mubr.bf16.vlgmr.msra.gmra.mrb[32].mxu1 %v1749_v52 }
 0x4af   :  { %2253 = vmatpush1.bf16.msra.mxu0 %v6063_v35  ;;  %2294 = vmatpush1.bf16.msra.mxu1 %v6065_v18 }
 0x4b0   :  { %2254 = vmatprep.subr.bf16.mxu0 %v6071_v4  ;;  %2295 = vmatprep.subr.bf16.mxu1 %v6073_v23 }
 0x4b1   :  { %2284 = vmatprep.mubr.bf16.mxu0 %v6938_v17  ;;  %2325 = vmatprep.mubr.bf16.mxu1 %v6938_v17 }
 0x4b3   :  { %2255 = vmatpush1.bf16.msra.mxu0 %v6075_v22  ;;  %2296 = vmatpush1.bf16.msra.mxu1 %v6077_v24 }
 0x4b4   :  { %2256 = vmatprep.subr.bf16.mxu0 %v6083_v26  ;;  %2297 = vmatprep.subr.bf16.mxu1 %v6085_v25 }
 0x4b7   :  { %2257 = vmatpush1.bf16.msra.mxu0 %v6087_v16  ;;  %2298 = vmatpush1.bf16.msra.mxu1 %v6089_v21 }
 0x4b8   :  { %2258 = vmatprep.subr.bf16.mxu0 %v6095_v36  ;;  %2299 = vmatprep.subr.bf16.mxu1 %v6097_v37 }
 0x4bb   :  { %2259 = vmatpush1.bf16.msra.mxu0 %v6099_v27  ;;  %2300 = vmatpush1.bf16.msra.mxu1 %v6101_v28 }
 0x4bc   :  { %2260 = vmatprep.subr.bf16.mxu0 %v6107_v32  ;;  %2301 = vmatprep.subr.bf16.mxu1 %v6109_v34 }
 0x4bf   :  { %2261 = vmatpush1.bf16.msra.mxu0 %v6111_v38  ;;  %2302 = vmatpush1.bf16.msra.mxu1 %v6113_v19 }
 0x4c0   :  { %2262 = vmatprep.subr.bf16.mxu0 %v6121_v29  ;;  %2303 = vmatprep.subr.bf16.mxu1 %v6125_v57 }
 0x4c3   :  { %2263 = vmatpush1.bf16.msra.mxu0 %v6119_v45  ;;  %2304 = vmatpush1.bf16.msra.mxu1 %v6123_v30 }
 0x4c4   :  { %2264 = vmatprep.subr.bf16.mxu0 %v6127_v33  ;;  %2305 = vmatprep.subr.bf16.mxu1 %v6130_v49 }
 0x4c7   :  { %2265 = vmatpush1.bf16.msra.mxu0 %v6135_v31  ;;  %2306 = vmatpush1.bf16.msra.mxu1 %v6137_v46 }
 0x4c8   :  { %2266 = vmatprep.subr.bf16.mxu0 %v6141_v20  ;;  %2307 = vmatprep.subr.bf16.mxu1 %v6143_v39 }
 0x4cb   :  { %2267 = vmatpush1.bf16.msra.mxu0 %v6147_v40  ;;  %2308 = vmatpush1.bf16.msra.mxu1 %v6149_v41 }
 0x4cc   :  { %2562 = vmatprep.subr.bf16.mxu0 %v6059_v5  ;;  %2603 = vmatprep.subr.bf16.mxu1 %v6061_v15 }
 0x581   :  { %v1976_v12 = vpop.f32.mrb[32].mxu0  ;;  %v2017_v53 = vpop.f32.mrb[32].mxu1 }
 0x582   :  { %v2024_v55 = vadd.f32 %v1976_v12, %v6944_v54  ;;  %v2026_v59 = vadd.f32 %v2017_v53, %v6945_v58  ;;  %v1978_v60 = vpop.f32.mrb[33].mxu0  ;;  %v2019_v61 = vpop.f32.mrb[33].mxu1 }
 0x583   :  { %v2025_v0 = vadd.f32 %v1978_v60, %v6946_v63  ;;  %v2027_v3 = vadd.f32 %v2019_v61, %v6947_v2  ;;  %v1980_v6 = vpop.f32.mrb[34].mxu0  ;;  %v2021_v7 = vpop.f32.mrb[34].mxu1  ;;  %v6948_v2 = vld [vmem:[#allocation26_spill] sm:$0xff] }
 0x584   :  { %v4730_v8 = vmul.f32 -1.442695, %v2024_v55  ;;  %v1981_v9 = vpop.f32.mrb[35].mxu0  ;;  %v2022_v11 = vpop.f32.mrb[35].mxu1  ;;  %v4732_v14 = vmul.f32 -1.442695, %v2026_v59 }
 0x585   :  { %v4731_v13 = vmul.f32 -1.442695, %v2025_v0  ;;  %v6949_v6 = vld [vmem:[#allocation27_spill] sm:$0xff]  ;;  %v6950_v11 = vld [vmem:[#allocation28_spill] sm:$0xff] }
 0x586   :  { %5242 = vpow2.f32 %v4730_v8 }
 0x587   :  { %5244 = vpow2.f32 %v4731_v13 }
 0x588   :  { %5246 = vtanh.f32 %v2027_v3 }
 0x589   :  { %5248 = vpow2.f32 %v4732_v14  ;;  %v6951_v14 = vld [vmem:[#allocation29_spill] sm:$0xff] }
 0x590   :  { %v5243_v62 = vpop.eup %5242 }
 0x591   :  { %v2037_v42 = vadd.f32 1.0, %v5243_v62  ;;  %v5245_v43 = vpop.eup %5244 }
 0x592   :  { %v2038_v44 = vadd.f32 1.0, %v5245_v43  ;;  %v5247_v48 = vpop.eup %5246 }
 0x593   :  { %5250 = vrcp.f32 %v2037_v42  ;;  %v5249_v50 = vpop.eup %5248 }
 0x594   :  { %5252 = vrcp.f32 %v2038_v44  ;;  %v2039_v54 = vadd.f32 1.0, %v5249_v50 }
 0x596   :  { %5254 = vrcp.f32 %v2039_v54 }
 0x59d   :  { %v5251_v52 = vpop.eup %5250 }
 0x59e   :  { %v2048_v12 = vmul.f32 %v5251_v52, %v5247_v48  ;;  %v5253_v53 = vpop.eup %5252 }
 0x59f   :  { %v2047_v55 = vmul.f32 %v5253_v53, %v6162_v47 }
 0x5a0   :  { %v5255_v59 = vpop.eup %5254 }
 0x5a1   :  { %v6208_v58 = vadd.f32 %v2048_v12, %v2047_v55 }
 0x5a3   :  { %5256 = vtanh.f32 %v6208_v58 }
 0x5ad   :  { %v5257_v60 = vpop.eup %5256 }
 0x5ae   :  { %v6211_v61 = vmul.f32 %v5257_v60, %v5255_v59 }
 0x5b0   :  { %v2059_v63 = vpack.c.bf16 %v6211_v61, %v6211_v61 }
 0x5b2   :  { %2285 = vmatmul.mubr.bf16.vlgmr.msra.gmra.mrb[36].mxu0 %v2059_v63  ;;  %2326 = vmatmul.mubr.bf16.vlgmr.msra.gmra.mrb[36].mxu1 %v2059_v63 }
 0x5b3   :  { %2563 = vmatpush1.bf16.msra.mxu0 %v6063_v35  ;;  %2604 = vmatpush1.bf16.msra.mxu1 %v6065_v18 }
 0x5b4   :  { %2564 = vmatprep.subr.bf16.mxu0 %v6071_v4  ;;  %2605 = vmatprep.subr.bf16.mxu1 %v6073_v23 }
 0x5b5   :  { %2594 = vmatprep.mubr.bf16.mxu0 %v6938_v17  ;;  %2635 = vmatprep.mubr.bf16.mxu1 %v6938_v17 }
 0x5b7   :  { %2565 = vmatpush1.bf16.msra.mxu0 %v6075_v22  ;;  %2606 = vmatpush1.bf16.msra.mxu1 %v6077_v24 }
 0x5b8   :  { %2566 = vmatprep.subr.bf16.mxu0 %v6083_v26  ;;  %2607 = vmatprep.subr.bf16.mxu1 %v6085_v25 }
 0x5bb   :  { %2567 = vmatpush1.bf16.msra.mxu0 %v6087_v16  ;;  %2608 = vmatpush1.bf16.msra.mxu1 %v6089_v21 }
 0x5bc   :  { %2568 = vmatprep.subr.bf16.mxu0 %v6095_v36  ;;  %2609 = vmatprep.subr.bf16.mxu1 %v6097_v37 }
 0x5bf   :  { %2569 = vmatpush1.bf16.msra.mxu0 %v6099_v27  ;;  %2610 = vmatpush1.bf16.msra.mxu1 %v6101_v28 }
 0x5c0   :  { %2570 = vmatprep.subr.bf16.mxu0 %v6107_v32  ;;  %2611 = vmatprep.subr.bf16.mxu1 %v6109_v34 }
 0x5c3   :  { %2571 = vmatpush1.bf16.msra.mxu0 %v6111_v38  ;;  %2612 = vmatpush1.bf16.msra.mxu1 %v6113_v19 }
 0x5c4   :  { %2572 = vmatprep.subr.bf16.mxu0 %v6121_v29  ;;  %2613 = vmatprep.subr.bf16.mxu1 %v6125_v57 }
 0x5c7   :  { %2573 = vmatpush1.bf16.msra.mxu0 %v6119_v45  ;;  %2614 = vmatpush1.bf16.msra.mxu1 %v6123_v30 }
 0x5c8   :  { %2574 = vmatprep.subr.bf16.mxu0 %v6127_v33  ;;  %2615 = vmatprep.subr.bf16.mxu1 %v6130_v49 }
 0x5cb   :  { %2575 = vmatpush1.bf16.msra.mxu0 %v6135_v31  ;;  %2616 = vmatpush1.bf16.msra.mxu1 %v6137_v46 }
 0x5cc   :  { %2576 = vmatprep.subr.bf16.mxu0 %v6141_v20  ;;  %2617 = vmatprep.subr.bf16.mxu1 %v6143_v39 }
 0x5cf   :  { %2577 = vmatpush1.bf16.msra.mxu0 %v6147_v40  ;;  %2618 = vmatpush1.bf16.msra.mxu1 %v6149_v41 }
 0x5d0   :  { %2872 = vmatprep.subr.bf16.mxu0 %v6059_v5  ;;  %2913 = vmatprep.subr.bf16.mxu1 %v6061_v15 }
 0x685   :  { %v2286_v47 = vpop.f32.mrb[36].mxu0  ;;  %v2327_v0 = vpop.f32.mrb[36].mxu1 }
 0x686   :  { %v2334_v3 = vadd.f32 %v2286_v47, %v6948_v2  ;;  %v2336_v7 = vadd.f32 %v2327_v0, %v6949_v6  ;;  %v2288_v8 = vpop.f32.mrb[37].mxu0  ;;  %v2329_v9 = vpop.f32.mrb[37].mxu1 }
 0x687   :  { %v2335_v13 = vadd.f32 %v2288_v8, %v6950_v11  ;;  %v2337_v62 = vadd.f32 %v2329_v9, %v6951_v14  ;;  %v2290_v42 = vpop.f32.mrb[38].mxu0  ;;  %v2331_v43 = vpop.f32.mrb[38].mxu1 }
 0x688   :  { %v4765_v44 = vmul.f32 -1.442695, %v2334_v3  ;;  %v2291_v48 = vpop.f32.mrb[39].mxu0  ;;  %v2332_v50 = vpop.f32.mrb[39].mxu1  ;;  %v4767_v15 = vmul.f32 -1.442695, %v2336_v7 }
 0x689   :  { %v4766_v5 = vmul.f32 -1.442695, %v2335_v13  ;;  %v5082_v43 = vld [vmem:[#allocation10] ss:$16 sps:$4 sm:$0xff]   ;;  %v5090_v50 = vld [vmem:[#allocation10 + $0x24] ss:$16 sps:$4 sm:$0xff]  }
 0x68a   :  { %5258 = vpow2.f32 %v4765_v44  ;;  %v5085_v44 = vld [vmem:[#allocation10 + $0x8] ss:$16 sps:$4 sm:$0xff]  }
 0x68b   :  { %5260 = vpow2.f32 %v4766_v5  ;;  %v5093_v5 = vld [vmem:[#allocation10 + $0x2c] ss:$16 sps:$4 sm:$0xff]  }
 0x68c   :  { %5262 = vtanh.f32 %v2337_v62 }
 0x68d   :  { %5264 = vpow2.f32 %v4767_v15  ;;  %v5088_v15 = vld [vmem:[#allocation10 + $0x20] ss:$16 sps:$4 sm:$0xff]  }
 0x694   :  { %v5259_v52 = vpop.eup %5258 }
 0x695   :  { %v2347_v12 = vadd.f32 1.0, %v5259_v52  ;;  %v5261_v53 = vpop.eup %5260  ;;  %v5091_v52 = vld [vmem:[#allocation10 + $0x28] ss:$16 sps:$4 sm:$0xff]  }
 0x696   :  { %v2348_v54 = vadd.f32 1.0, %v5261_v53  ;;  %v5263_v55 = vpop.eup %5262  ;;  %v5099_v53 = vld [vmem:[#allocation10 + $0x4c] ss:$16 sps:$4 sm:$0xff]  }
 0x697   :  { %5266 = vrcp.f32 %v2347_v12  ;;  %v5265_v59 = vpop.eup %5264  ;;  %v5096_v12 = vld [vmem:[#allocation10 + $0x44] ss:$16 sps:$4 sm:$0xff]  }
 0x698   :  { %5268 = vrcp.f32 %v2348_v54  ;;  %v2349_v0 = vadd.f32 1.0, %v5265_v59  ;;  %v5094_v54 = vld [vmem:[#allocation10 + $0x40] ss:$16 sps:$4 sm:$0xff]   ;;  %v5102_v59 = vld [vmem:[#allocation10 + $0x64] ss:$16 sps:$4 sm:$0xff]  }
 0x69a   :  { %5270 = vrcp.f32 %v2349_v0  ;;  %v5108_v0 = vld [vmem:[#allocation10 + $0x84] ss:$16 sps:$4 sm:$0xff]  }
 0x6a1   :  { %v5267_v60 = vpop.eup %5266 }
 0x6a2   :  { %v2358_v63 = vmul.f32 %v5267_v60, %v5263_v55  ;;  %v5269_v47 = vpop.eup %5268  ;;  %v5097_v55 = vld [vmem:[#allocation10 + $0x48] ss:$16 sps:$4 sm:$0xff]   ;;  %v5105_v60 = vld [vmem:[#allocation10 + $0x6c] ss:$16 sps:$4 sm:$0xff]  }
 0x6a3   :  { %v2357_v2 = vmul.f32 %v5269_v47, %v6208_v58  ;;  %v5103_v47 = vld [vmem:[#allocation10 + $0x68] ss:$16 sps:$4 sm:$0xff]  }
 0x6a4   :  { %v5271_v6 = vpop.eup %5270 }
 0x6a5   :  { %v6254_v3 = vadd.f32 %v2358_v63, %v2357_v2  ;;  %v5100_v63 = vld [vmem:[#allocation10 + $0x60] ss:$16 sps:$4 sm:$0xff]   ;;  %v5111_v2 = vld [vmem:[#allocation10 + $0x8c] ss:$16 sps:$4 sm:$0xff]  }
 0x6a7   :  { %5272 = vtanh.f32 %v6254_v3 }
 0x6b1   :  { %v5273_v7 = vpop.eup %5272 }
 0x6b2   :  { %v6257_v8 = vmul.f32 %v5273_v7, %v5271_v6  ;;  %v5109_v6 = vld [vmem:[#allocation10 + $0x88] ss:$16 sps:$4 sm:$0xff]   ;;  %v5114_v7 = vld [vmem:[#allocation10 + $0xa4] ss:$16 sps:$4 sm:$0xff]  }
 0x6b4   :  { %v2369_v9 = vpack.c.bf16 %v6257_v8, %v6257_v8 }
 0x6b6   :  { %2595 = vmatmul.mubr.bf16.vlgmr.msra.gmra.mrb[40].mxu0 %v2369_v9  ;;  %2636 = vmatmul.mubr.bf16.vlgmr.msra.gmra.mrb[40].mxu1 %v2369_v9  ;;  %v5117_v9 = vld [vmem:[#allocation10 + $0xac] ss:$16 sps:$4 sm:$0xff]  }
 0x6b7   :  { %2873 = vmatpush1.bf16.msra.mxu0 %v6063_v35  ;;  %2914 = vmatpush1.bf16.msra.mxu1 %v6065_v18  ;;  %v5084_v35 = vld [vmem:[#allocation10 + $0x4] ss:$16 sps:$4 sm:$0xff]   ;;  %v5087_v18 = vld [vmem:[#allocation10 + $0xc] ss:$16 sps:$4 sm:$0xff]  }
 0x6b8   :  { %2874 = vmatprep.subr.bf16.mxu0 %v6071_v4  ;;  %2915 = vmatprep.subr.bf16.mxu1 %v6073_v23 }
 0x6b9   :  { %2904 = vmatprep.mubr.bf16.mxu0 %v6938_v17  ;;  %2945 = vmatprep.mubr.bf16.mxu1 %v6938_v17 }
 0x6bb   :  { %2875 = vmatpush1.bf16.msra.mxu0 %v6075_v22  ;;  %2916 = vmatpush1.bf16.msra.mxu1 %v6077_v24  ;;  %v6952_v22 = vld [vmem:[#allocation30_spill] sm:$0xff] }
 0x6bc   :  { %2876 = vmatprep.subr.bf16.mxu0 %v6083_v26  ;;  %2917 = vmatprep.subr.bf16.mxu1 %v6085_v25  ;;  %v6953_v26 = vld [vmem:[#allocation31_spill] sm:$0xff] }
 0x6bf   :  { %2877 = vmatpush1.bf16.msra.mxu0 %v6087_v16  ;;  %2918 = vmatpush1.bf16.msra.mxu1 %v6089_v21 }
 0x6c0   :  { %2878 = vmatprep.subr.bf16.mxu0 %v6095_v36  ;;  %2919 = vmatprep.subr.bf16.mxu1 %v6097_v37  ;;  %v6954_v36 = vld [vmem:[#allocation32_spill] sm:$0xff] }
 0x6c3   :  { %2879 = vmatpush1.bf16.msra.mxu0 %v6099_v27  ;;  %2920 = vmatpush1.bf16.msra.mxu1 %v6101_v28  ;;  %v6955_v27 = vld [vmem:[#allocation33_spill] sm:$0xff] }
 0x6c4   :  { %2880 = vmatprep.subr.bf16.mxu0 %v6107_v32  ;;  %2921 = vmatprep.subr.bf16.mxu1 %v6109_v34 }
 0x6c7   :  { %2881 = vmatpush1.bf16.msra.mxu0 %v6111_v38  ;;  %2922 = vmatpush1.bf16.msra.mxu1 %v6113_v19 }
 0x6c8   :  { %2882 = vmatprep.subr.bf16.mxu0 %v6121_v29  ;;  %2923 = vmatprep.subr.bf16.mxu1 %v6125_v57 }
 0x6cb   :  { %2883 = vmatpush1.bf16.msra.mxu0 %v6119_v45  ;;  %2924 = vmatpush1.bf16.msra.mxu1 %v6123_v30 }
 0x6cc   :  { %2884 = vmatprep.subr.bf16.mxu0 %v6127_v33  ;;  %2925 = vmatprep.subr.bf16.mxu1 %v6130_v49 }
 0x6cf   :  { %2885 = vmatpush1.bf16.msra.mxu0 %v6135_v31  ;;  %2926 = vmatpush1.bf16.msra.mxu1 %v6137_v46 }
 0x6d0   :  { %2886 = vmatprep.subr.bf16.mxu0 %v6141_v20  ;;  %2927 = vmatprep.subr.bf16.mxu1 %v6143_v39 }
 0x6d3   :  { %2887 = vmatpush1.bf16.msra.mxu0 %v6147_v40  ;;  %2928 = vmatpush1.bf16.msra.mxu1 %v6149_v41 }
 0x6d4   :  { %3210 = vmatprep.subr.bf16.mxu0 %v5084_v35  ;;  %3283 = vmatprep.subr.bf16.mxu1 %v5087_v18  ;;  %v5112_v35 = vld [vmem:[#allocation10 + $0xa0] ss:$16 sps:$4 sm:$0xff]   ;;  %v5115_v18 = vld [vmem:[#allocation10 + $0xa8] ss:$16 sps:$4 sm:$0xff]  }
 0x789   :  { %v2596_v4 = vpop.f32.mrb[40].mxu0  ;;  %v2637_v23 = vpop.f32.mrb[40].mxu1 }
 0x78a   :  { %v2644_v24 = vadd.f32 %v2596_v4, %v6952_v22  ;;  %v2646_v25 = vadd.f32 %v2637_v23, %v6953_v26  ;;  %v2598_v16 = vpop.f32.mrb[41].mxu0  ;;  %v2639_v21 = vpop.f32.mrb[41].mxu1  ;;  %v5120_v4 = vld [vmem:[#allocation10 + $0xc4] ss:$16 sps:$4 sm:$0xff]   ;;  %v5123_v23 = vld [vmem:[#allocation10 + $0xcc] ss:$16 sps:$4 sm:$0xff]  }
 0x78b   :  { %v2645_v37 = vadd.f32 %v2598_v16, %v6954_v36  ;;  %v2647_v28 = vadd.f32 %v2639_v21, %v6955_v27  ;;  %v2600_v32 = vpop.f32.mrb[42].mxu0  ;;  %v2641_v34 = vpop.f32.mrb[42].mxu1  ;;  %v5118_v22 = vld [vmem:[#allocation10 + $0xc0] ss:$16 sps:$4 sm:$0xff]   ;;  %v5126_v26 = vld [vmem:[#allocation10 + $0xe4] ss:$16 sps:$4 sm:$0xff]   ;;  %v2992_v36 = vpack.c.bf16 %v6009_v1, %v5963_v10  ;;  %v2994_v27 = vpack.c.bf16 %v6257_v8, %v6211_v61 }
 0x78c   :  { %v4800_v38 = vmul.f32 -1.442695, %v2644_v24  ;;  %v2601_v19 = vpop.f32.mrb[43].mxu0  ;;  %v2642_v45 = vpop.f32.mrb[43].mxu1  ;;  %v4802_v30 = vmul.f32 -1.442695, %v2646_v25 }
 0x78d   :  { %v4801_v29 = vmul.f32 -1.442695, %v2645_v37  ;;  %v5121_v24 = vld [vmem:[#allocation10 + $0xc8] ss:$16 sps:$4 sm:$0xff]   ;;  %v5129_v25 = vld [vmem:[#allocation10 + $0xec] ss:$16 sps:$4 sm:$0xff]   ;;  %v2993_v37 = vpack.c.bf16 %v6165_v51, %v6053_v56 }
 0x78e   :  { %5274 = vpow2.f32 %v4800_v38  ;;  %v5124_v16 = vld [vmem:[#allocation10 + $0xe0] ss:$16 sps:$4 sm:$0xff]   ;;  %v5127_v21 = vld [vmem:[#allocation10 + $0xe8] ss:$16 sps:$4 sm:$0xff]   ;;  %v6319_v10 = vld [vmem:[#allocation12 + $0x4] ss:$16 sps:$4 sm:$0xff]  }
 0x78f   :  { %5276 = vpow2.f32 %v4801_v29  ;;  %v6321_v1 = vld [vmem:[#allocation12 + $0xc] ss:$16 sps:$4 sm:$0xff]   ;;  %v6323_v56 = vld [vmem:[#allocation12] ss:$16 sps:$4 sm:$0xff]   ;;  %v6325_v51 = vld [vmem:[#allocation12 + $0x8] ss:$16 sps:$4 sm:$0xff]  }
 0x790   :  { %5278 = vtanh.f32 %v2647_v28  ;;  %v6331_v61 = vld [vmem:[#allocation12 + $0x24] ss:$16 sps:$4 sm:$0xff]   ;;  %v6333_v8 = vld [vmem:[#allocation12 + $0x2c] ss:$16 sps:$4 sm:$0xff]   ;;  %v6335_v28 = vld [vmem:[#allocation12 + $0x20] ss:$16 sps:$4 sm:$0xff]  }
 0x791   :  { %5280 = vpow2.f32 %v4802_v30  ;;  %v6337_v32 = vld [vmem:[#allocation12 + $0x28] ss:$16 sps:$4 sm:$0xff]   ;;  %v6343_v34 = vld [vmem:[#allocation12 + $0x44] ss:$16 sps:$4 sm:$0xff]   ;;  %v6345_v38 = vld [vmem:[#allocation12 + $0x4c] ss:$16 sps:$4 sm:$0xff]  }
 0x792   :  { %v6347_v19 = vld [vmem:[#allocation12 + $0x40] ss:$16 sps:$4 sm:$0xff]   ;;  %v6349_v45 = vld [vmem:[#allocation12 + $0x48] ss:$16 sps:$4 sm:$0xff]   ;;  %v6355_v29 = vld [vmem:[#allocation12 + $0x64] ss:$16 sps:$4 sm:$0xff]  }
 0x793   :  { %v6357_v30 = vld [vmem:[#allocation12 + $0x6c] ss:$16 sps:$4 sm:$0xff]  }
 0x798   :  { %v5275_v57 = vpop.eup %5274 }
 0x799   :  { %v2657_v33 = vadd.f32 1.0, %v5275_v57  ;;  %v5277_v49 = vpop.eup %5276  ;;  %v6359_v57 = vld [vmem:[#allocation12 + $0x60] ss:$16 sps:$4 sm:$0xff]  }
 0x79a   :  { %v2658_v31 = vadd.f32 1.0, %v5277_v49  ;;  %v5279_v46 = vpop.eup %5278  ;;  %v6367_v49 = vld [vmem:[#allocation12 + $0x84] ss:$16 sps:$4 sm:$0xff]  }
 0x79b   :  { %5282 = vrcp.f32 %v2657_v33  ;;  %v5281_v20 = vpop.eup %5280  ;;  %v6361_v33 = vld [vmem:[#allocation12 + $0x68] ss:$16 sps:$4 sm:$0xff]  }
 0x79c   :  { %5284 = vrcp.f32 %v2658_v31  ;;  %v2659_v58 = vadd.f32 1.0, %v5281_v20  ;;  %v6369_v31 = vld [vmem:[#allocation12 + $0x8c] ss:$16 sps:$4 sm:$0xff]   ;;  %v6373_v20 = vld [vmem:[#allocation12 + $0x88] ss:$16 sps:$4 sm:$0xff]  }
 0x79e   :  { %5286 = vrcp.f32 %v2659_v58  ;;  %v6385_v58 = vld [vmem:[#allocation12 + $0xa8] ss:$16 sps:$4 sm:$0xff]  }
 0x7a5   :  { %v5283_v39 = vpop.eup %5282 }
 0x7a6   :  { %v2668_v40 = vmul.f32 %v5283_v39, %v5279_v46  ;;  %v5285_v41 = vpop.eup %5284  ;;  %v6371_v46 = vld [vmem:[#allocation12 + $0x80] ss:$16 sps:$4 sm:$0xff]   ;;  %v6379_v39 = vld [vmem:[#allocation12 + $0xa4] ss:$16 sps:$4 sm:$0xff]  }
 0x7a7   :  { %v2667_v11 = vmul.f32 %v5285_v41, %v6254_v3  ;;  %v5106_v3 = vld [vmem:[#allocation10 + $0x80] ss:$16 sps:$4 sm:$0xff]  }
 0x7a8   :  { %v5287_v14 = vpop.eup %5286  ;;  %v6383_v41 = vld [vmem:[#allocation12 + $0xa0] ss:$16 sps:$4 sm:$0xff]  }
 0x7a9   :  { %v6298_v13 = vadd.f32 %v2668_v40, %v2667_v11  ;;  %v6381_v40 = vld [vmem:[#allocation12 + $0xac] ss:$16 sps:$4 sm:$0xff]   ;;  %v6391_v11 = vld [vmem:[#allocation12 + $0xc4] ss:$16 sps:$4 sm:$0xff]  }
 0x7ab   :  { %5288 = vtanh.f32 %v6298_v13 }
 0x7b5   :  { %v5289_v62 = vpop.eup %5288 }
 0x7b6   :  { %v6301_v42 = vmul.f32 %v5289_v62, %v5287_v14  ;;  %v6393_v14 = vld [vmem:[#allocation12 + $0xcc] ss:$16 sps:$4 sm:$0xff]   ;;  %v6395_v62 = vld [vmem:[#allocation12 + $0xc0] ss:$16 sps:$4 sm:$0xff]  }
 0x7b8   :  { %v2679_v48 = vpack.c.bf16 %v6301_v42, %v6301_v42 }
 0x7ba   :  { %2905 = vmatmul.mubr.bf16.vlgmr.msra.gmra.mrb[44].mxu0 %v2679_v48  ;;  %2946 = vmatmul.mubr.bf16.vlgmr.msra.gmra.mrb[44].mxu1 %v2679_v48  ;;  %v6405_v48 = vld [vmem:[#allocation12 + $0xec] ss:$16 sps:$4 sm:$0xff]  }
 0x7bb   :  { %3211 = vmatpush1.bf16.msra.mxu0 %v5082_v43  ;;  %3284 = vmatpush1.bf16.msra.mxu1 %v5085_v44  ;;  %v6397_v43 = vld [vmem:[#allocation12 + $0xc8] ss:$16 sps:$4 sm:$0xff]   ;;  %v6403_v44 = vld [vmem:[#allocation12 + $0xe4] ss:$16 sps:$4 sm:$0xff]  }
 0x7bc   :  { %3212 = vmatprep.subr.bf16.mxu0 %v5090_v50  ;;  %3285 = vmatprep.subr.bf16.mxu1 %v5093_v5  ;;  %v6407_v50 = vld [vmem:[#allocation12 + $0xe0] ss:$16 sps:$4 sm:$0xff]   ;;  %v6409_v5 = vld [vmem:[#allocation12 + $0xe8] ss:$16 sps:$4 sm:$0xff]  }
 0x7bd   :  { %3242 = vmatprep.mubr.bf16.mxu0 %v6938_v17  ;;  %3315 = vmatprep.mubr.bf16.mxu1 %v6938_v17 }
 0x7bf   :  { %3213 = vmatpush1.bf16.msra.mxu0 %v5088_v15  ;;  %3286 = vmatpush1.bf16.msra.mxu1 %v5091_v52 }
 0x7c0   :  { %3214 = vmatprep.subr.bf16.mxu0 %v5096_v12  ;;  %3287 = vmatprep.subr.bf16.mxu1 %v5099_v53  ;;  %v6956_v12 = vld [vmem:[#allocation34_spill] sm:$0xff] }
 0x7c3   :  { %3215 = vmatpush1.bf16.msra.mxu0 %v5094_v54  ;;  %3288 = vmatpush1.bf16.msra.mxu1 %v5097_v55  ;;  %v6957_v54 = vld [vmem:[#allocation35_spill] sm:$0xff] }
 0x7c4   :  { %3216 = vmatprep.subr.bf16.mxu0 %v5102_v59  ;;  %3289 = vmatprep.subr.bf16.mxu1 %v5105_v60 }
 0x7c7   :  { %3217 = vmatpush1.bf16.msra.mxu0 %v5100_v63  ;;  %3290 = vmatpush1.bf16.msra.mxu1 %v5103_v47  ;;  %v6958_v63 = vld [vmem:[#allocation36_spill] sm:$0xff] }
 0x7c8   :  { %3218 = vmatprep.subr.bf16.mxu0 %v5108_v0  ;;  %3291 = vmatprep.subr.bf16.mxu1 %v5111_v2  ;;  %v6959_v0 = vld [vmem:[#allocation37_spill] sm:$0xff] }
 0x7cb   :  { %3219 = vmatpush1.bf16.msra.mxu0 %v5106_v3  ;;  %3292 = vmatpush1.bf16.msra.mxu1 %v5109_v6 }
 0x7cc   :  { %3220 = vmatprep.subr.bf16.mxu0 %v5114_v7  ;;  %3293 = vmatprep.subr.bf16.mxu1 %v5117_v9 }
 0x7cf   :  { %3221 = vmatpush1.bf16.msra.mxu0 %v5112_v35  ;;  %3294 = vmatpush1.bf16.msra.mxu1 %v5115_v18 }
 0x7d0   :  { %3222 = vmatprep.subr.bf16.mxu0 %v5120_v4  ;;  %3295 = vmatprep.subr.bf16.mxu1 %v5123_v23 }
 0x7d3   :  { %3223 = vmatpush1.bf16.msra.mxu0 %v5118_v22  ;;  %3296 = vmatpush1.bf16.msra.mxu1 %v5121_v24 }
 0x7d4   :  { %3224 = vmatprep.subr.bf16.mxu0 %v5126_v26  ;;  %3297 = vmatprep.subr.bf16.mxu1 %v5129_v25 }
 0x7d7   :  { %3225 = vmatpush1.bf16.msra.mxu0 %v5124_v16  ;;  %3298 = vmatpush1.bf16.msra.mxu1 %v5127_v21 }
 0x7d8   :  { %3584 = vmatprep.subr.bf16.mxu0 %v6319_v10  ;;  %3625 = vmatprep.subr.bf16.mxu1 %v6321_v1 }
 0x7da   :  { %3243 = vmatmul.mubr.bf16.vlgmr.msra.gmra.mrb[48].mxu0 %v2992_v36  ;;  %3316 = vmatmul.mubr.bf16.vlgmr.msra.gmra.mrb[48].mxu1 %v2992_v36 }
 0x7db   :  { %3252 = vmatprep.mubr.bf16.mxu0 %v6938_v17  ;;  %3325 = vmatprep.mubr.bf16.mxu1 %v6938_v17 }
 0x7dc   :  { %3585 = vmatpush1.bf16.msra.mxu0 %v6323_v56  ;;  %3626 = vmatpush1.bf16.msra.mxu1 %v6325_v51 }
 0x7dd   :  { %3586 = vmatprep.subr.bf16.mxu0 %v6331_v61  ;;  %3627 = vmatprep.subr.bf16.mxu1 %v6333_v8 }
 0x7e0   :  { %3587 = vmatpush1.bf16.msra.mxu0 %v6335_v28  ;;  %3628 = vmatpush1.bf16.msra.mxu1 %v6337_v32 }
 0x7e1   :  { %3588 = vmatprep.subr.bf16.mxu0 %v6343_v34  ;;  %3629 = vmatprep.subr.bf16.mxu1 %v6345_v38 }
 0x7e2   :  { %3253 = vmatmul.mubr.bf16.gmra.mrb[52].mxu0 %v2993_v37  ;;  %3326 = vmatmul.mubr.bf16.gmra.mrb[52].mxu1 %v2993_v37 }
 0x7e3   :  { %3262 = vmatprep.mubr.bf16.mxu0 %v6938_v17  ;;  %3335 = vmatprep.mubr.bf16.mxu1 %v6938_v17 }
 0x7e4   :  { %3589 = vmatpush1.bf16.msra.mxu0 %v6347_v19  ;;  %3630 = vmatpush1.bf16.msra.mxu1 %v6349_v45 }
 0x7e5   :  { %3590 = vmatprep.subr.bf16.mxu0 %v6355_v29  ;;  %3631 = vmatprep.subr.bf16.mxu1 %v6357_v30 }
 0x7e8   :  { %3591 = vmatpush1.bf16.msra.mxu0 %v6359_v57  ;;  %3632 = vmatpush1.bf16.msra.mxu1 %v6361_v33 }
 0x7e9   :  { %3592 = vmatprep.subr.bf16.mxu0 %v6367_v49  ;;  %3633 = vmatprep.subr.bf16.mxu1 %v6369_v31 }
 0x7ea   :  { %3263 = vmatmul.mubr.bf16.gmra.mrb[56].mxu0 %v2994_v27  ;;  %3336 = vmatmul.mubr.bf16.gmra.mrb[56].mxu1 %v2994_v27 }
 0x7eb   :  { %3272 = vmatprep.mubr.bf16.mxu0 %v6938_v17  ;;  %3345 = vmatprep.mubr.bf16.mxu1 %v6938_v17 }
 0x7ec   :  { %3593 = vmatpush1.bf16.msra.mxu0 %v6371_v46  ;;  %3634 = vmatpush1.bf16.msra.mxu1 %v6373_v20 }
 0x7ed   :  { %3594 = vmatprep.subr.bf16.mxu0 %v6379_v39  ;;  %3635 = vmatprep.subr.bf16.mxu1 %v6381_v40 }
 0x7f0   :  { %3595 = vmatpush1.bf16.msra.mxu0 %v6383_v41  ;;  %3636 = vmatpush1.bf16.msra.mxu1 %v6385_v58 }
 0x7f1   :  { %3596 = vmatprep.subr.bf16.mxu0 %v6391_v11  ;;  %3637 = vmatprep.subr.bf16.mxu1 %v6393_v14 }
 0x7f4   :  { %3597 = vmatpush1.bf16.msra.mxu0 %v6395_v62  ;;  %3638 = vmatpush1.bf16.msra.mxu1 %v6397_v43 }
 0x7f5   :  { %3598 = vmatprep.subr.bf16.mxu0 %v6403_v44  ;;  %3639 = vmatprep.subr.bf16.mxu1 %v6405_v48 }
 0x7f8   :  { %3599 = vmatpush1.bf16.msra.mxu0 %v6407_v50  ;;  %3640 = vmatpush1.bf16.msra.mxu1 %v6409_v5 }
 0x7f9   :  { %3699 = vmatprep.subr.bf16.mxu0 %v6319_v10  ;;  %3740 = vmatprep.subr.bf16.mxu1 %v6321_v1 }
 0x88d   :  { %v2906_v15 = vpop.f32.mrb[44].mxu0  ;;  %v2947_v52 = vpop.f32.mrb[44].mxu1 }
 0x88e   :  { %v2954_v53 = vadd.f32 %v2906_v15, %v6956_v12  ;;  %v2956_v55 = vadd.f32 %v2947_v52, %v6957_v54  ;;  %v2908_v59 = vpop.f32.mrb[45].mxu0  ;;  %v2949_v60 = vpop.f32.mrb[45].mxu1 }
 0x88f   :  { %v2955_v47 = vadd.f32 %v2908_v59, %v6958_v63  ;;  %v2957_v2 = vadd.f32 %v2949_v60, %v6959_v0  ;;  %v2910_v3 = vpop.f32.mrb[46].mxu0  ;;  %v2951_v6 = vpop.f32.mrb[46].mxu1 }
 0x890   :  { %v4835_v7 = vmul.f32 -1.442695, %v2954_v53  ;;  %v2911_v9 = vpop.f32.mrb[47].mxu0  ;;  %v2952_v35 = vpop.f32.mrb[47].mxu1  ;;  %v4837_v4 = vmul.f32 -1.442695, %v2956_v55 }
 0x891   :  { %v4836_v18 = vmul.f32 -1.442695, %v2955_v47 }
 0x892   :  { %5290 = vpow2.f32 %v4835_v7 }
 0x893   :  { %5292 = vpow2.f32 %v4836_v18 }
 0x894   :  { %5294 = vtanh.f32 %v2957_v2 }
 0x895   :  { %5296 = vpow2.f32 %v4837_v4 }
 0x89c   :  { %v5291_v23 = vpop.eup %5290 }
 0x89d   :  { %v2967_v22 = vadd.f32 1.0, %v5291_v23  ;;  %v5293_v24 = vpop.eup %5292 }
 0x89e   :  { %v2968_v26 = vadd.f32 1.0, %v5293_v24  ;;  %v5295_v25 = vpop.eup %5294 }
 0x89f   :  { %5298 = vrcp.f32 %v2967_v22  ;;  %v5297_v16 = vpop.eup %5296 }
 0x8a0   :  { %5300 = vrcp.f32 %v2968_v26  ;;  %v2969_v27 = vadd.f32 1.0, %v5297_v16 }
 0x8a2   :  { %5302 = vrcp.f32 %v2969_v27 }
 0x8a9   :  { %v5299_v21 = vpop.eup %5298 }
 0x8aa   :  { %v2978_v36 = vmul.f32 %v5299_v21, %v5295_v25  ;;  %v5301_v37 = vpop.eup %5300 }
 0x8ab   :  { %v2977_v15 = vmul.f32 %v5301_v37, %v6298_v13 }
 0x8ac   :  { %v5303_v18 = vpop.eup %5302 }
 0x8ad   :  { %v6422_v52 = vpop.f32.mrb[48].mxu0  ;;  %v6424_v12 = vpop.f32.mrb[48].mxu1  ;;  %v2979_v53 = vadd.f32 %v2978_v36, %v2977_v15 }
 0x8ae   :  { %v6426_v54 = vpop.f32.mrb[49].mxu0  ;;  %v6428_v55 = vpop.f32.mrb[49].mxu1 }
 0x8af   :  { %v6430_v59 = vpop.f32.mrb[50].mxu0  ;;  %v6432_v60 = vpop.f32.mrb[50].mxu1  ;;  %5304 = vtanh.f32 %v2979_v53 }
 0x8b0   :  { %v6434_v63 = vpop.f32.mrb[51].mxu0  ;;  %v6436_v47 = vpop.f32.mrb[51].mxu1 }
 0x8b5   :  { %v6438_v13 = vpop.f32.mrb[52].mxu0  ;;  %v6440_v0 = vpop.f32.mrb[52].mxu1 }
 0x8b6   :  { %6960 = vst [vmem:[#allocation17_spill] sm:$0xff] %v6440_v0  ;;  %v6442_v2 = vpop.f32.mrb[53].mxu0  ;;  %v6444_v3 = vpop.f32.mrb[53].mxu1 }
 0x8b7   :  { %6961 = vst [vmem:[#allocation18_spill] sm:$0xff] %v6442_v2  ;;  %6962 = vst [vmem:[#allocation19_spill] sm:$0xff] %v6444_v3  ;;  %v6446_v6 = vpop.f32.mrb[54].mxu0  ;;  %v6448_v7 = vpop.f32.mrb[54].mxu1 }
 0x8b8   :  { %6963 = vst [vmem:[#allocation20_spill] sm:$0xff] %v6446_v6  ;;  %6964 = vst [vmem:[#allocation21_spill] sm:$0xff] %v6448_v7  ;;  %v6450_v9 = vpop.f32.mrb[55].mxu0  ;;  %v6452_v35 = vpop.f32.mrb[55].mxu1 }
 0x8b9   :  { %6965 = vst [vmem:[#allocation22_spill] sm:$0xff] %v6450_v9  ;;  %6966 = vst [vmem:[#allocation23_spill] sm:$0xff] %v6452_v35  ;;  %v5305_v4 = vpop.eup %5304 }
 0x8ba   :  { %v2981_v23 = vmul.f32 %v5305_v4, %v5303_v18 }
 0x8bc   :  { %v2995_v26 = vpack.c.bf16 %v2981_v23, %v6301_v42  ;;  %v3028_v42 = vld [vmem:[%s6904_s6] sm:$0xf] }
 0x8bd   :  { %v6454_v22 = vpop.f32.mrb[56].mxu0  ;;  %v6456_v24 = vpop.f32.mrb[56].mxu1 }
 0x8be   :  { %6967 = vst [vmem:[#allocation24_spill] sm:$0xff] %v6454_v22  ;;  %6968 = vst [vmem:[#allocation25_spill] sm:$0xff] %v6456_v24  ;;  %v6459_v25 = vpop.f32.mrb[57].mxu0  ;;  %v6461_v16 = vpop.f32.mrb[57].mxu1  ;;  %3273 = vmatmul.mubr.bf16.gmra.mrb[60].mxu0 %v2995_v26  ;;  %3346 = vmatmul.mubr.bf16.gmra.mrb[60].mxu1 %v2995_v26 }
 0x8bf   :  { %6969 = vst [vmem:[#allocation26_spill] sm:$0xff] %v6459_v25  ;;  %6970 = vst [vmem:[#allocation27_spill] sm:$0xff] %v6461_v16  ;;  %v6463_v21 = vpop.f32.mrb[58].mxu0  ;;  %v6465_v36 = vpop.f32.mrb[58].mxu1  ;;  %3616 = vmatprep.mubr.bf16.mxu0 %v6938_v17  ;;  %3657 = vmatprep.mubr.bf16.mxu1 %v6938_v17 }
 0x8c0   :  { %6971 = vst [vmem:[#allocation28_spill] sm:$0xff] %v6463_v21  ;;  %6972 = vst [vmem:[#allocation29_spill] sm:$0xff] %v6465_v36  ;;  %v6467_v37 = vpop.f32.mrb[59].mxu0  ;;  %v6469_v27 = vpop.f32.mrb[59].mxu1 }
 0x8c1   :  { %6973 = vst [vmem:[#allocation30_spill] sm:$0xff] %v6467_v37  ;;  %6974 = vst [vmem:[#allocation31_spill] sm:$0xff] %v6469_v27  ;;  %v6981_v27 = vld [vmem:[#allocation16_spill] sm:$0xff] }
 0x8c2   :  { %v6982_v37 = vsub.s32 0, %v6981_v27  ;;  %v6983_v21 = vsub.s32 2, %v6981_v27 }
 0x8c4   :  { %v6526_v36 = vrot.slane %v3028_v42, %v6982_v37  ;;  %v6530_v16 = vrot.slane %v3028_v42, %v6983_v21 }
 0x8c6   :  { %3617 = vmatmul.mubr.bf16.vlgmr.msra.gmra.mrb[64].mxu0 %v6938_v17  ;;  %3658 = vmatmul.mubr.bf16.vlgmr.msra.gmra.mrb[64].mxu1 %v6938_v17  ;;  %v3245_v37 = vadd.f32 %v6422_v52, %v6526_v36 }
 0x8c7   :  { %3700 = vmatpush1.bf16.msra.mxu0 %v6323_v56  ;;  %3741 = vmatpush1.bf16.msra.mxu1 %v6325_v51 }
 0x8c8   :  { %3701 = vmatprep.subr.bf16.mxu0 %v6331_v61  ;;  %3742 = vmatprep.subr.bf16.mxu1 %v6333_v8 }
 0x8c9   :  { %3731 = vmatprep.mubr.bf16.mxu0 %v6938_v17  ;;  %3772 = vmatprep.mubr.bf16.mxu1 %v6938_v17 }
 0x8cb   :  { %3702 = vmatpush1.bf16.msra.mxu0 %v6335_v28  ;;  %3743 = vmatpush1.bf16.msra.mxu1 %v6337_v32 }
 0x8cc   :  { %3703 = vmatprep.subr.bf16.mxu0 %v6343_v34  ;;  %3744 = vmatprep.subr.bf16.mxu1 %v6345_v38 }
 0x8cf   :  { %3704 = vmatpush1.bf16.msra.mxu0 %v6347_v19  ;;  %3745 = vmatpush1.bf16.msra.mxu1 %v6349_v45 }
 0x8d0   :  { %3705 = vmatprep.subr.bf16.mxu0 %v6355_v29  ;;  %3746 = vmatprep.subr.bf16.mxu1 %v6357_v30 }
 0x8d3   :  { %3706 = vmatpush1.bf16.msra.mxu0 %v6359_v57  ;;  %3747 = vmatpush1.bf16.msra.mxu1 %v6361_v33 }
 0x8d4   :  { %3707 = vmatprep.subr.bf16.mxu0 %v6367_v49  ;;  %3748 = vmatprep.subr.bf16.mxu1 %v6369_v31 }
 0x8d7   :  { %3708 = vmatpush1.bf16.msra.mxu0 %v6371_v46  ;;  %3749 = vmatpush1.bf16.msra.mxu1 %v6373_v20 }
 0x8d8   :  { %3709 = vmatprep.subr.bf16.mxu0 %v6379_v39  ;;  %3750 = vmatprep.subr.bf16.mxu1 %v6381_v40 }
 0x8db   :  { %3710 = vmatpush1.bf16.msra.mxu0 %v6383_v41  ;;  %3751 = vmatpush1.bf16.msra.mxu1 %v6385_v58 }
 0x8dc   :  { %3711 = vmatprep.subr.bf16.mxu0 %v6391_v11  ;;  %3752 = vmatprep.subr.bf16.mxu1 %v6393_v14 }
 0x8df   :  { %3712 = vmatpush1.bf16.msra.mxu0 %v6395_v62  ;;  %3753 = vmatpush1.bf16.msra.mxu1 %v6397_v43 }
 0x8e0   :  { %3713 = vmatprep.subr.bf16.mxu0 %v6403_v44  ;;  %3754 = vmatprep.subr.bf16.mxu1 %v6405_v48 }
 0x8e3   :  { %3714 = vmatpush1.bf16.msra.mxu0 %v6407_v50  ;;  %3755 = vmatpush1.bf16.msra.mxu1 %v6409_v5 }
 0x8e4   :  { %3814 = vmatprep.subr.bf16.mxu0 %v6319_v10  ;;  %3855 = vmatprep.subr.bf16.mxu1 %v6321_v1 }
 0x991   :  { %v6512_v15 = vpop.f32.mrb[60].mxu0  ;;  %v6514_v53 = vpop.f32.mrb[60].mxu1 }
 0x992   :  { %6975 = vst [vmem:[#allocation32_spill] sm:$0xff] %v6512_v15  ;;  %6976 = vst [vmem:[#allocation33_spill] sm:$0xff] %v6514_v53  ;;  %v6516_v18 = vpop.f32.mrb[61].mxu0  ;;  %v6518_v4 = vpop.f32.mrb[61].mxu1 }
 0x993   :  { %6977 = vst [vmem:[#allocation34_spill] sm:$0xff] %v6516_v18  ;;  %6978 = vst [vmem:[#allocation35_spill] sm:$0xff] %v6518_v4  ;;  %v6520_v23 = vpop.f32.mrb[62].mxu0  ;;  %v6522_v26 = vpop.f32.mrb[62].mxu1  ;;  %v6986_v18 = vsub.s32 1, %v6981_v27 }
 0x994   :  { %6979 = vst [vmem:[#allocation36_spill] sm:$0xff] %v6520_v23  ;;  %6980 = vst [vmem:[#allocation37_spill] sm:$0xff] %v6522_v26  ;;  %v6532_v25 = vpop.f32.mrb[63].mxu0  ;;  %v6534_v15 = vpop.f32.mrb[63].mxu1  ;;  %v6987_v23 = vsub.s32 3, %v6981_v27  ;;  %v3318_v26 = vadd.f32 %v6424_v12, %v6530_v16 }
 0x995   :  { %6984 = vst [vmem:[#allocation16_spill] sm:$0xff] %v6532_v25  ;;  %6985 = vst [vmem:[#allocation38_spill] sm:$0xff] %v6534_v15  ;;  %v6538_v53 = vrot.slane %v3028_v42, %v6986_v18 }
 0x996   :  { %v6542_v4 = vrot.slane %v3028_v42, %v6987_v23 }
 0x997   :  { %v3247_v21 = vadd.f32 %v6426_v54, %v6538_v53 }
 0x998   :  { %v3320_v15 = vadd.f32 %v6428_v55, %v6542_v4 }
 0x999   :  { %v3618_v25 = vpop.f32.mrb[64].mxu0  ;;  %v3659_v24 = vpop.f32.mrb[64].mxu1 }
 0x99a   :  { %v3666_v18 = vadd.f32 %v3618_v25, %v3245_v37  ;;  %v3668_v22 = vadd.f32 %v3659_v24, %v3318_v26  ;;  %v3620_v35 = vpop.f32.mrb[65].mxu0  ;;  %v3661_v27 = vpop.f32.mrb[65].mxu1 }
 0x99b   :  { %v3667_v42 = vadd.f32 %v3620_v35, %v3247_v21  ;;  %v3669_v23 = vadd.f32 %v3661_v27, %v3320_v15  ;;  %v3622_v9 = vpop.f32.mrb[66].mxu0  ;;  %v3663_v7 = vpop.f32.mrb[66].mxu1  ;;  %v3251_v27 = vadd.f32 %v6434_v63, %v6538_v53 }
 0x99c   :  { %v4902_v52 = vmul.f32 -1.442695, %v3666_v18  ;;  %v3623_v6 = vpop.f32.mrb[67].mxu0  ;;  %v3664_v3 = vpop.f32.mrb[67].mxu1  ;;  %v4904_v54 = vmul.f32 -1.442695, %v3668_v22  ;;  %v3322_v18 = vadd.f32 %v6432_v60, %v6530_v16 }
 0x99d   :  { %v4903_v12 = vmul.f32 -1.442695, %v3667_v42  ;;  %v3324_v42 = vadd.f32 %v6436_v47, %v6542_v4 }
 0x99e   :  { %5306 = vpow2.f32 %v4902_v52 }
 0x99f   :  { %5308 = vpow2.f32 %v4903_v12 }
 0x9a0   :  { %5310 = vtanh.f32 %v3669_v23 }
 0x9a1   :  { %5312 = vpow2.f32 %v4904_v54 }
 0x9a8   :  { %v5307_v2 = vpop.eup %5306 }
 0x9a9   :  { %v3679_v0 = vadd.f32 1.0, %v5307_v2  ;;  %v5309_v55 = vpop.eup %5308 }
 0x9aa   :  { %v3680_v24 = vadd.f32 1.0, %v5309_v55  ;;  %v5311_v25 = vpop.eup %5310 }
 0x9ab   :  { %5314 = vrcp.f32 %v3679_v0  ;;  %v5313_v35 = vpop.eup %5312  ;;  %v3249_v0 = vadd.f32 %v6430_v59, %v6526_v36 }
 0x9ac   :  { %5316 = vrcp.f32 %v3680_v24  ;;  %v3681_v26 = vadd.f32 1.0, %v5313_v35 }
 0x9ae   :  { %5318 = vrcp.f32 %v3681_v26 }
 0x9b5   :  { %v5315_v15 = vpop.eup %5314 }
 0x9b6   :  { %v3690_v9 = vmul.f32 %v5315_v15, %v5311_v25  ;;  %v5317_v7 = vpop.eup %5316 }
 0x9b7   :  { %v3689_v6 = vmul.f32 0.0, %v5317_v7 }
 0x9b8   :  { %v5319_v22 = vpop.eup %5318 }
 0x9b9   :  { %v6552_v3 = vadd.f32 %v3690_v9, %v3689_v6 }
 0x9bb   :  { %5320 = vtanh.f32 %v6552_v3 }
 0x9c5   :  { %v5321_v2 = vpop.eup %5320 }
 0x9c6   :  { %v3693_v37 = vmul.f32 %v5321_v2, %v5319_v22 }
 0x9c8   :  { %v3698_v21 = vpack.c.bf16 %v3693_v37, %v3693_v37 }
 0x9ca   :  { %3732 = vmatmul.mubr.bf16.vlgmr.msra.gmra.mrb[68].mxu0 %v3698_v21  ;;  %3773 = vmatmul.mubr.bf16.vlgmr.msra.gmra.mrb[68].mxu1 %v3698_v21 }
 0x9cb   :  { %3815 = vmatpush1.bf16.msra.mxu0 %v6323_v56  ;;  %3856 = vmatpush1.bf16.msra.mxu1 %v6325_v51 }
 0x9cc   :  { %3816 = vmatprep.subr.bf16.mxu0 %v6331_v61  ;;  %3857 = vmatprep.subr.bf16.mxu1 %v6333_v8 }
 0x9cd   :  { %3846 = vmatprep.mubr.bf16.mxu0 %v6938_v17  ;;  %3887 = vmatprep.mubr.bf16.mxu1 %v6938_v17 }
 0x9cf   :  { %3817 = vmatpush1.bf16.msra.mxu0 %v6335_v28  ;;  %3858 = vmatpush1.bf16.msra.mxu1 %v6337_v32 }
 0x9d0   :  { %3818 = vmatprep.subr.bf16.mxu0 %v6343_v34  ;;  %3859 = vmatprep.subr.bf16.mxu1 %v6345_v38 }
 0x9d3   :  { %3819 = vmatpush1.bf16.msra.mxu0 %v6347_v19  ;;  %3860 = vmatpush1.bf16.msra.mxu1 %v6349_v45 }
 0x9d4   :  { %3820 = vmatprep.subr.bf16.mxu0 %v6355_v29  ;;  %3861 = vmatprep.subr.bf16.mxu1 %v6357_v30 }
 0x9d7   :  { %3821 = vmatpush1.bf16.msra.mxu0 %v6359_v57  ;;  %3862 = vmatpush1.bf16.msra.mxu1 %v6361_v33 }
 0x9d8   :  { %3822 = vmatprep.subr.bf16.mxu0 %v6367_v49  ;;  %3863 = vmatprep.subr.bf16.mxu1 %v6369_v31 }
 0x9db   :  { %3823 = vmatpush1.bf16.msra.mxu0 %v6371_v46  ;;  %3864 = vmatpush1.bf16.msra.mxu1 %v6373_v20 }
 0x9dc   :  { %3824 = vmatprep.subr.bf16.mxu0 %v6379_v39  ;;  %3865 = vmatprep.subr.bf16.mxu1 %v6381_v40 }
 0x9df   :  { %3825 = vmatpush1.bf16.msra.mxu0 %v6383_v41  ;;  %3866 = vmatpush1.bf16.msra.mxu1 %v6385_v58 }
 0x9e0   :  { %3826 = vmatprep.subr.bf16.mxu0 %v6391_v11  ;;  %3867 = vmatprep.subr.bf16.mxu1 %v6393_v14 }
 0x9e3   :  { %3827 = vmatpush1.bf16.msra.mxu0 %v6395_v62  ;;  %3868 = vmatpush1.bf16.msra.mxu1 %v6397_v43 }
 0x9e4   :  { %3828 = vmatprep.subr.bf16.mxu0 %v6403_v44  ;;  %3869 = vmatprep.subr.bf16.mxu1 %v6405_v48 }
 0x9e7   :  { %3829 = vmatpush1.bf16.msra.mxu0 %v6407_v50  ;;  %3870 = vmatpush1.bf16.msra.mxu1 %v6409_v5 }
 0x9e8   :  { %3929 = vmatprep.subr.bf16.mxu0 %v6319_v10  ;;  %3970 = vmatprep.subr.bf16.mxu1 %v6321_v1 }
 0xa9d   :  { %v3733_v23 = vpop.f32.mrb[68].mxu0  ;;  %v3774_v52 = vpop.f32.mrb[68].mxu1 }
 0xa9e   :  { %v3781_v12 = vadd.f32 %v3733_v23, %v3249_v0  ;;  %v3783_v54 = vadd.f32 %v3774_v52, %v3322_v18  ;;  %v3735_v55 = vpop.f32.mrb[69].mxu0  ;;  %v3776_v24 = vpop.f32.mrb[69].mxu1 }
 0xa9f   :  { %v3782_v25 = vadd.f32 %v3735_v55, %v3251_v27  ;;  %v3784_v35 = vadd.f32 %v3776_v24, %v3324_v42  ;;  %v3737_v15 = vpop.f32.mrb[70].mxu0  ;;  %v3778_v9 = vpop.f32.mrb[70].mxu1 }
 0xaa0   :  { %v4905_v59 = vmul.f32 -1.442695, %v3781_v12  ;;  %v3738_v7 = vpop.f32.mrb[71].mxu0  ;;  %v3779_v26 = vpop.f32.mrb[71].mxu1  ;;  %v4907_v63 = vmul.f32 -1.442695, %v3783_v54 }
 0xaa1   :  { %v4906_v60 = vmul.f32 -1.442695, %v3782_v25  ;;  %v6988_v25 = vld [vmem:[#allocation17_spill] sm:$0xff]  ;;  %v6989_v15 = vld [vmem:[#allocation18_spill] sm:$0xff] }
 0xaa2   :  { %5322 = vpow2.f32 %v4905_v59  ;;  %v3257_v9 = vadd.f32 %v6989_v15, %v6538_v53  ;;  %v6990_v59 = vld [vmem:[#allocation19_spill] sm:$0xff] }
 0xaa3   :  { %5324 = vpow2.f32 %v4906_v60  ;;  %v3330_v7 = vadd.f32 %v6990_v59, %v6542_v4 }
 0xaa4   :  { %5326 = vtanh.f32 %v3784_v35  ;;  %v3328_v35 = vadd.f32 %v6988_v25, %v6530_v16 }
 0xaa5   :  { %5328 = vpow2.f32 %v4907_v63 }
 0xaac   :  { %v5323_v6 = vpop.eup %5322 }
 0xaad   :  { %v3794_v22 = vadd.f32 1.0, %v5323_v6  ;;  %v5325_v47 = vpop.eup %5324 }
 0xaae   :  { %v3795_v2 = vadd.f32 1.0, %v5325_v47  ;;  %v5327_v37 = vpop.eup %5326 }
 0xaaf   :  { %5330 = vrcp.f32 %v3794_v22  ;;  %v5329_v21 = vpop.eup %5328 }
 0xab0   :  { %5332 = vrcp.f32 %v3795_v2  ;;  %v3796_v42 = vadd.f32 1.0, %v5329_v21 }
 0xab2   :  { %5334 = vrcp.f32 %v3796_v42 }
 0xab9   :  { %v5331_v0 = vpop.eup %5330 }
 0xaba   :  { %v3805_v18 = vmul.f32 %v5331_v0, %v5327_v37  ;;  %v5333_v27 = vpop.eup %5332 }
 0xabb   :  { %v3804_v23 = vmul.f32 %v5333_v27, %v6552_v3  ;;  %v3255_v3 = vadd.f32 %v6438_v13, %v6526_v36 }
 0xabc   :  { %v5335_v12 = vpop.eup %5334 }
 0xabd   :  { %v6598_v52 = vadd.f32 %v3805_v18, %v3804_v23 }
 0xabf   :  { %5336 = vtanh.f32 %v6598_v52 }
 0xac9   :  { %v5337_v54 = vpop.eup %5336 }
 0xaca   :  { %v3808_v55 = vmul.f32 %v5337_v54, %v5335_v12 }
 0xacc   :  { %v3813_v24 = vpack.c.bf16 %v3808_v55, %v3808_v55 }
 0xace   :  { %3847 = vmatmul.mubr.bf16.vlgmr.msra.gmra.mrb[72].mxu0 %v3813_v24  ;;  %3888 = vmatmul.mubr.bf16.vlgmr.msra.gmra.mrb[72].mxu1 %v3813_v24 }
 0xacf   :  { %3930 = vmatpush1.bf16.msra.mxu0 %v6323_v56  ;;  %3971 = vmatpush1.bf16.msra.mxu1 %v6325_v51 }
 0xad0   :  { %3931 = vmatprep.subr.bf16.mxu0 %v6331_v61  ;;  %3972 = vmatprep.subr.bf16.mxu1 %v6333_v8 }
 0xad1   :  { %3961 = vmatprep.mubr.bf16.mxu0 %v6938_v17  ;;  %4002 = vmatprep.mubr.bf16.mxu1 %v6938_v17 }
 0xad3   :  { %3932 = vmatpush1.bf16.msra.mxu0 %v6335_v28  ;;  %3973 = vmatpush1.bf16.msra.mxu1 %v6337_v32 }
 0xad4   :  { %3933 = vmatprep.subr.bf16.mxu0 %v6343_v34  ;;  %3974 = vmatprep.subr.bf16.mxu1 %v6345_v38 }
 0xad7   :  { %3934 = vmatpush1.bf16.msra.mxu0 %v6347_v19  ;;  %3975 = vmatpush1.bf16.msra.mxu1 %v6349_v45 }
 0xad8   :  { %3935 = vmatprep.subr.bf16.mxu0 %v6355_v29  ;;  %3976 = vmatprep.subr.bf16.mxu1 %v6357_v30 }
 0xadb   :  { %3936 = vmatpush1.bf16.msra.mxu0 %v6359_v57  ;;  %3977 = vmatpush1.bf16.msra.mxu1 %v6361_v33 }
 0xadc   :  { %3937 = vmatprep.subr.bf16.mxu0 %v6367_v49  ;;  %3978 = vmatprep.subr.bf16.mxu1 %v6369_v31 }
 0xadf   :  { %3938 = vmatpush1.bf16.msra.mxu0 %v6371_v46  ;;  %3979 = vmatpush1.bf16.msra.mxu1 %v6373_v20 }
 0xae0   :  { %3939 = vmatprep.subr.bf16.mxu0 %v6379_v39  ;;  %3980 = vmatprep.subr.bf16.mxu1 %v6381_v40 }
 0xae3   :  { %3940 = vmatpush1.bf16.msra.mxu0 %v6383_v41  ;;  %3981 = vmatpush1.bf16.msra.mxu1 %v6385_v58 }
 0xae4   :  { %3941 = vmatprep.subr.bf16.mxu0 %v6391_v11  ;;  %3982 = vmatprep.subr.bf16.mxu1 %v6393_v14 }
 0xae7   :  { %3942 = vmatpush1.bf16.msra.mxu0 %v6395_v62  ;;  %3983 = vmatpush1.bf16.msra.mxu1 %v6397_v43 }
 0xae8   :  { %3943 = vmatprep.subr.bf16.mxu0 %v6403_v44  ;;  %3984 = vmatprep.subr.bf16.mxu1 %v6405_v48 }
 0xaeb   :  { %3944 = vmatpush1.bf16.msra.mxu0 %v6407_v50  ;;  %3985 = vmatpush1.bf16.msra.mxu1 %v6409_v5 }
 0xaec   :  { %4044 = vmatprep.subr.bf16.mxu0 %v6319_v10  ;;  %4085 = vmatprep.subr.bf16.mxu1 %v6321_v1 }
 0xba1   :  { %v3848_v26 = vpop.f32.mrb[72].mxu0  ;;  %v3889_v60 = vpop.f32.mrb[72].mxu1 }
 0xba2   :  { %v3896_v63 = vadd.f32 %v3848_v26, %v3255_v3  ;;  %v3898_v6 = vadd.f32 %v3889_v60, %v3328_v35  ;;  %v3850_v22 = vpop.f32.mrb[73].mxu0  ;;  %v3891_v47 = vpop.f32.mrb[73].mxu1 }
 0xba3   :  { %v3897_v2 = vadd.f32 %v3850_v22, %v3257_v9  ;;  %v3899_v37 = vadd.f32 %v3891_v47, %v3330_v7  ;;  %v3852_v21 = vpop.f32.mrb[74].mxu0  ;;  %v3893_v0 = vpop.f32.mrb[74].mxu1 }
 0xba4   :  { %v4908_v13 = vmul.f32 -1.442695, %v3896_v63  ;;  %v3853_v18 = vpop.f32.mrb[75].mxu0  ;;  %v3894_v27 = vpop.f32.mrb[75].mxu1  ;;  %v4910_v23 = vmul.f32 -1.442695, %v3898_v6 }
 0xba5   :  { %v4909_v42 = vmul.f32 -1.442695, %v3897_v2  ;;  %v6992_v2 = vld [vmem:[#allocation21_spill] sm:$0xff]  ;;  %v6993_v21 = vld [vmem:[#allocation22_spill] sm:$0xff] }
 0xba6   :  { %5338 = vpow2.f32 %v4908_v13  ;;  %v3261_v0 = vadd.f32 %v6993_v21, %v6538_v53  ;;  %v6994_v13 = vld [vmem:[#allocation23_spill] sm:$0xff] }
 0xba7   :  { %5340 = vpow2.f32 %v4909_v42  ;;  %v3334_v18 = vadd.f32 %v6994_v13, %v6542_v4 }
 0xba8   :  { %5342 = vtanh.f32 %v3899_v37  ;;  %v3332_v37 = vadd.f32 %v6992_v2, %v6530_v16 }
 0xba9   :  { %5344 = vpow2.f32 %v4910_v23 }
 0xbb0   :  { %v5339_v12 = vpop.eup %5338 }
 0xbb1   :  { %v3909_v54 = vadd.f32 1.0, %v5339_v12  ;;  %v5341_v55 = vpop.eup %5340 }
 0xbb2   :  { %v3910_v24 = vadd.f32 1.0, %v5341_v55  ;;  %v5343_v3 = vpop.eup %5342 }
 0xbb3   :  { %5346 = vrcp.f32 %v3909_v54  ;;  %v5345_v25 = vpop.eup %5344 }
 0xbb4   :  { %5348 = vrcp.f32 %v3910_v24  ;;  %v3911_v59 = vadd.f32 1.0, %v5345_v25 }
 0xbb6   :  { %5350 = vrcp.f32 %v3911_v59 }
 0xbbd   :  { %v5347_v35 = vpop.eup %5346 }
 0xbbe   :  { %v3920_v15 = vmul.f32 %v5347_v35, %v5343_v3  ;;  %v5349_v9 = vpop.eup %5348 }
 0xbbf   :  { %v3919_v7 = vmul.f32 %v5349_v9, %v6598_v52  ;;  %v6991_v52 = vld [vmem:[#allocation20_spill] sm:$0xff] }
 0xbc0   :  { %v5351_v60 = vpop.eup %5350  ;;  %v3259_v47 = vadd.f32 %v6991_v52, %v6526_v36 }
 0xbc1   :  { %v6644_v26 = vadd.f32 %v3920_v15, %v3919_v7 }
 0xbc3   :  { %5352 = vtanh.f32 %v6644_v26 }
 0xbcd   :  { %v5353_v63 = vpop.eup %5352 }
 0xbce   :  { %v3923_v6 = vmul.f32 %v5353_v63, %v5351_v60 }
 0xbd0   :  { %v3928_v22 = vpack.c.bf16 %v3923_v6, %v3923_v6 }
 0xbd2   :  { %3962 = vmatmul.mubr.bf16.vlgmr.msra.gmra.mrb[76].mxu0 %v3928_v22  ;;  %4003 = vmatmul.mubr.bf16.vlgmr.msra.gmra.mrb[76].mxu1 %v3928_v22 }
 0xbd3   :  { %4045 = vmatpush1.bf16.msra.mxu0 %v6323_v56  ;;  %4086 = vmatpush1.bf16.msra.mxu1 %v6325_v51 }
 0xbd4   :  { %4046 = vmatprep.subr.bf16.mxu0 %v6331_v61  ;;  %4087 = vmatprep.subr.bf16.mxu1 %v6333_v8 }
 0xbd5   :  { %4076 = vmatprep.mubr.bf16.mxu0 %v6938_v17  ;;  %4117 = vmatprep.mubr.bf16.mxu1 %v6938_v17 }
 0xbd7   :  { %4047 = vmatpush1.bf16.msra.mxu0 %v6335_v28  ;;  %4088 = vmatpush1.bf16.msra.mxu1 %v6337_v32 }
 0xbd8   :  { %4048 = vmatprep.subr.bf16.mxu0 %v6343_v34  ;;  %4089 = vmatprep.subr.bf16.mxu1 %v6345_v38 }
 0xbdb   :  { %4049 = vmatpush1.bf16.msra.mxu0 %v6347_v19  ;;  %4090 = vmatpush1.bf16.msra.mxu1 %v6349_v45 }
 0xbdc   :  { %4050 = vmatprep.subr.bf16.mxu0 %v6355_v29  ;;  %4091 = vmatprep.subr.bf16.mxu1 %v6357_v30 }
 0xbdf   :  { %4051 = vmatpush1.bf16.msra.mxu0 %v6359_v57  ;;  %4092 = vmatpush1.bf16.msra.mxu1 %v6361_v33 }
 0xbe0   :  { %4052 = vmatprep.subr.bf16.mxu0 %v6367_v49  ;;  %4093 = vmatprep.subr.bf16.mxu1 %v6369_v31 }
 0xbe3   :  { %4053 = vmatpush1.bf16.msra.mxu0 %v6371_v46  ;;  %4094 = vmatpush1.bf16.msra.mxu1 %v6373_v20 }
 0xbe4   :  { %4054 = vmatprep.subr.bf16.mxu0 %v6379_v39  ;;  %4095 = vmatprep.subr.bf16.mxu1 %v6381_v40 }
 0xbe7   :  { %4055 = vmatpush1.bf16.msra.mxu0 %v6383_v41  ;;  %4096 = vmatpush1.bf16.msra.mxu1 %v6385_v58 }
 0xbe8   :  { %4056 = vmatprep.subr.bf16.mxu0 %v6391_v11  ;;  %4097 = vmatprep.subr.bf16.mxu1 %v6393_v14 }
 0xbeb   :  { %4057 = vmatpush1.bf16.msra.mxu0 %v6395_v62  ;;  %4098 = vmatpush1.bf16.msra.mxu1 %v6397_v43 }
 0xbec   :  { %4058 = vmatprep.subr.bf16.mxu0 %v6403_v44  ;;  %4099 = vmatprep.subr.bf16.mxu1 %v6405_v48 }
 0xbef   :  { %4059 = vmatpush1.bf16.msra.mxu0 %v6407_v50  ;;  %4100 = vmatpush1.bf16.msra.mxu1 %v6409_v5 }
 0xbf0   :  { %4159 = vmatprep.subr.bf16.mxu0 %v6319_v10  ;;  %4200 = vmatprep.subr.bf16.mxu1 %v6321_v1 }
 0xca5   :  { %v3963_v27 = vpop.f32.mrb[76].mxu0  ;;  %v4004_v42 = vpop.f32.mrb[76].mxu1 }
 0xca6   :  { %v4011_v23 = vadd.f32 %v3963_v27, %v3259_v47  ;;  %v4013_v12 = vadd.f32 %v4004_v42, %v3332_v37  ;;  %v3965_v54 = vpop.f32.mrb[77].mxu0  ;;  %v4006_v55 = vpop.f32.mrb[77].mxu1 }
 0xca7   :  { %v4012_v24 = vadd.f32 %v3965_v54, %v3261_v0  ;;  %v4014_v3 = vadd.f32 %v4006_v55, %v3334_v18  ;;  %v3967_v25 = vpop.f32.mrb[78].mxu0  ;;  %v4008_v35 = vpop.f32.mrb[78].mxu1 }
 0xca8   :  { %v4911_v15 = vmul.f32 -1.442695, %v4011_v23  ;;  %v3968_v9 = vpop.f32.mrb[79].mxu0  ;;  %v4009_v59 = vpop.f32.mrb[79].mxu1  ;;  %v4913_v60 = vmul.f32 -1.442695, %v4013_v12 }
 0xca9   :  { %v4912_v7 = vmul.f32 -1.442695, %v4012_v24  ;;  %v6739_v9 = vld [vmem:[#allocation12] ss:$16 sps:$4 sm:$0xff]   ;;  %v6742_v59 = vld [vmem:[#allocation12 + $0x8] ss:$16 sps:$4 sm:$0xff]  }
 0xcaa   :  { %5354 = vpow2.f32 %v4911_v15 }
 0xcab   :  { %5356 = vpow2.f32 %v4912_v7  ;;  %v6745_v7 = vld [vmem:[#allocation12 + $0x24] ss:$16 sps:$4 sm:$0xff]  }
 0xcac   :  { %5358 = vtanh.f32 %v4014_v3 }
 0xcad   :  { %5360 = vpow2.f32 %v4913_v60  ;;  %v6748_v60 = vld [vmem:[#allocation12 + $0x2c] ss:$16 sps:$4 sm:$0xff]  }
 0xcb4   :  { %v5355_v63 = vpop.eup %5354 }
 0xcb5   :  { %v4024_v6 = vadd.f32 1.0, %v5355_v63  ;;  %v5357_v22 = vpop.eup %5356  ;;  %v6753_v63 = vld [vmem:[#allocation12 + $0x20] ss:$16 sps:$4 sm:$0xff]  }
 0xcb6   :  { %v4025_v52 = vadd.f32 1.0, %v5357_v22  ;;  %v5359_v47 = vpop.eup %5358  ;;  %v6759_v22 = vld [vmem:[#allocation12 + $0x44] ss:$16 sps:$4 sm:$0xff]  }
 0xcb7   :  { %5362 = vrcp.f32 %v4024_v6  ;;  %v5361_v2 = vpop.eup %5360  ;;  %v6756_v6 = vld [vmem:[#allocation12 + $0x28] ss:$16 sps:$4 sm:$0xff]  }
 0xcb8   :  { %5364 = vrcp.f32 %v4025_v52  ;;  %v4026_v13 = vadd.f32 1.0, %v5361_v2  ;;  %v6762_v52 = vld [vmem:[#allocation12 + $0x4c] ss:$16 sps:$4 sm:$0xff]   ;;  %v6768_v2 = vld [vmem:[#allocation12 + $0x48] ss:$16 sps:$4 sm:$0xff]  }
 0xcba   :  { %5366 = vrcp.f32 %v4026_v13  ;;  %v6780_v13 = vld [vmem:[#allocation12 + $0x68] ss:$16 sps:$4 sm:$0xff]  }
 0xcc1   :  { %v5363_v37 = vpop.eup %5362 }
 0xcc2   :  { %v4035_v21 = vmul.f32 %v5363_v37, %v5359_v47  ;;  %v5365_v0 = vpop.eup %5364  ;;  %v6765_v47 = vld [vmem:[#allocation12 + $0x40] ss:$16 sps:$4 sm:$0xff]   ;;  %v6771_v37 = vld [vmem:[#allocation12 + $0x64] ss:$16 sps:$4 sm:$0xff]  }
 0xcc3   :  { %v4034_v18 = vmul.f32 %v5365_v0, %v6644_v26  ;;  %v6777_v0 = vld [vmem:[#allocation12 + $0x60] ss:$16 sps:$4 sm:$0xff]  }
 0xcc4   :  { %v5367_v42 = vpop.eup %5366 }
 0xcc5   :  { %v6690_v27 = vadd.f32 %v4035_v21, %v4034_v18  ;;  %v6774_v21 = vld [vmem:[#allocation12 + $0x6c] ss:$16 sps:$4 sm:$0xff]   ;;  %v6783_v18 = vld [vmem:[#allocation12 + $0x84] ss:$16 sps:$4 sm:$0xff]  }
 0xcc7   :  { %5368 = vtanh.f32 %v6690_v27 }
 0xcd1   :  { %v5369_v23 = vpop.eup %5368 }
 0xcd2   :  { %v4038_v12 = vmul.f32 %v5369_v23, %v5367_v42  ;;  %v6789_v42 = vld [vmem:[#allocation12 + $0x80] ss:$16 sps:$4 sm:$0xff]   ;;  %v6792_v23 = vld [vmem:[#allocation12 + $0x88] ss:$16 sps:$4 sm:$0xff]  }
 0xcd4   :  { %v4043_v54 = vpack.c.bf16 %v4038_v12, %v4038_v12  ;;  %v6795_v12 = vld [vmem:[#allocation12 + $0xa4] ss:$16 sps:$4 sm:$0xff]  }
 0xcd6   :  { %4077 = vmatmul.mubr.bf16.vlgmr.msra.gmra.mrb[80].mxu0 %v4043_v54  ;;  %4118 = vmatmul.mubr.bf16.vlgmr.msra.gmra.mrb[80].mxu1 %v4043_v54  ;;  %v6798_v54 = vld [vmem:[#allocation12 + $0xac] ss:$16 sps:$4 sm:$0xff]  }
 0xcd7   :  { %4160 = vmatpush1.bf16.msra.mxu0 %v6323_v56  ;;  %4201 = vmatpush1.bf16.msra.mxu1 %v6325_v51  ;;  %v6995_v56 = vld [vmem:[#allocation24_spill] sm:$0xff] }
 0xcd8   :  { %4161 = vmatprep.subr.bf16.mxu0 %v6331_v61  ;;  %4202 = vmatprep.subr.bf16.mxu1 %v6333_v8  ;;  %v3265_v51 = vadd.f32 %v6995_v56, %v6526_v36  ;;  %v6996_v61 = vld [vmem:[#allocation25_spill] sm:$0xff]  ;;  %v6801_v56 = vld [vmem:[#allocation12 + $0xa0] ss:$16 sps:$4 sm:$0xff]  }
 0xcd9   :  { %4191 = vmatprep.mubr.bf16.mxu0 %v6938_v17  ;;  %4232 = vmatprep.mubr.bf16.mxu1 %v6938_v17  ;;  %v3338_v8 = vadd.f32 %v6996_v61, %v6530_v16  ;;  %v6807_v61 = vld [vmem:[#allocation12 + $0xc4] ss:$16 sps:$4 sm:$0xff]  }
 0xcdb   :  { %4162 = vmatpush1.bf16.msra.mxu0 %v6335_v28  ;;  %4203 = vmatpush1.bf16.msra.mxu1 %v6337_v32  ;;  %v6997_v28 = vld [vmem:[#allocation26_spill] sm:$0xff] }
 0xcdc   :  { %4163 = vmatprep.subr.bf16.mxu0 %v6343_v34  ;;  %4204 = vmatprep.subr.bf16.mxu1 %v6345_v38  ;;  %v3267_v32 = vadd.f32 %v6997_v28, %v6538_v53  ;;  %v6998_v34 = vld [vmem:[#allocation27_spill] sm:$0xff]  ;;  %v6813_v28 = vld [vmem:[#allocation12 + $0xc0] ss:$16 sps:$4 sm:$0xff]  }
 0xcdd   :  { %v3340_v38 = vadd.f32 %v6998_v34, %v6542_v4  ;;  %v6819_v34 = vld [vmem:[#allocation12 + $0xe4] ss:$16 sps:$4 sm:$0xff]  }
 0xcdf   :  { %4164 = vmatpush1.bf16.msra.mxu0 %v6347_v19  ;;  %4205 = vmatpush1.bf16.msra.mxu1 %v6349_v45 }
 0xce0   :  { %4165 = vmatprep.subr.bf16.mxu0 %v6355_v29  ;;  %4206 = vmatprep.subr.bf16.mxu1 %v6357_v30 }
 0xce3   :  { %4166 = vmatpush1.bf16.msra.mxu0 %v6359_v57  ;;  %4207 = vmatpush1.bf16.msra.mxu1 %v6361_v33 }
 0xce4   :  { %4167 = vmatprep.subr.bf16.mxu0 %v6367_v49  ;;  %4208 = vmatprep.subr.bf16.mxu1 %v6369_v31 }
 0xce7   :  { %4168 = vmatpush1.bf16.msra.mxu0 %v6371_v46  ;;  %4209 = vmatpush1.bf16.msra.mxu1 %v6373_v20 }
 0xce8   :  { %4169 = vmatprep.subr.bf16.mxu0 %v6379_v39  ;;  %4210 = vmatprep.subr.bf16.mxu1 %v6381_v40 }
 0xceb   :  { %4170 = vmatpush1.bf16.msra.mxu0 %v6383_v41  ;;  %4211 = vmatpush1.bf16.msra.mxu1 %v6385_v58 }
 0xcec   :  { %4171 = vmatprep.subr.bf16.mxu0 %v6391_v11  ;;  %4212 = vmatprep.subr.bf16.mxu1 %v6393_v14 }
 0xcef   :  { %4172 = vmatpush1.bf16.msra.mxu0 %v6395_v62  ;;  %4213 = vmatpush1.bf16.msra.mxu1 %v6397_v43 }
 0xcf0   :  { %4173 = vmatprep.subr.bf16.mxu0 %v6403_v44  ;;  %4214 = vmatprep.subr.bf16.mxu1 %v6405_v48 }
 0xcf3   :  { %4174 = vmatpush1.bf16.msra.mxu0 %v6407_v50  ;;  %4215 = vmatpush1.bf16.msra.mxu1 %v6409_v5 }
 0xcf4   :  { %4274 = vmatprep.subr.bf16.mxu0 %v6319_v10  ;;  %4315 = vmatprep.subr.bf16.mxu1 %v6321_v1 }
 0xda9   :  { %v4078_v19 = vpop.f32.mrb[80].mxu0  ;;  %v4119_v45 = vpop.f32.mrb[80].mxu1 }
 0xdaa   :  { %v4126_v29 = vadd.f32 %v4078_v19, %v3265_v51  ;;  %v4128_v30 = vadd.f32 %v4119_v45, %v3338_v8  ;;  %v4080_v57 = vpop.f32.mrb[81].mxu0  ;;  %v4121_v10 = vpop.f32.mrb[81].mxu1  ;;  %v6804_v51 = vld [vmem:[#allocation12 + $0xa8] ss:$16 sps:$4 sm:$0xff]   ;;  %v6810_v8 = vld [vmem:[#allocation12 + $0xcc] ss:$16 sps:$4 sm:$0xff]  }
 0xdab   :  { %v4127_v33 = vadd.f32 %v4080_v57, %v3267_v32  ;;  %v4129_v1 = vadd.f32 %v4121_v10, %v3340_v38  ;;  %v4082_v49 = vpop.f32.mrb[82].mxu0  ;;  %v4123_v31 = vpop.f32.mrb[82].mxu1  ;;  %v6816_v32 = vld [vmem:[#allocation12 + $0xc8] ss:$16 sps:$4 sm:$0xff]   ;;  %v6822_v38 = vld [vmem:[#allocation12 + $0xec] ss:$16 sps:$4 sm:$0xff]  }
 0xdac   :  { %v4914_v46 = vmul.f32 -1.442695, %v4126_v29  ;;  %v4083_v20 = vpop.f32.mrb[83].mxu0  ;;  %v4124_v39 = vpop.f32.mrb[83].mxu1  ;;  %v4916_v41 = vmul.f32 -1.442695, %v4128_v30 }
 0xdad   :  { %v4915_v40 = vmul.f32 -1.442695, %v4127_v33  ;;  %v6825_v19 = vld [vmem:[#allocation12 + $0xe0] ss:$16 sps:$4 sm:$0xff]   ;;  %v6828_v45 = vld [vmem:[#allocation12 + $0xe8] ss:$16 sps:$4 sm:$0xff]  }
 0xdae   :  { %5370 = vpow2.f32 %v4914_v46  ;;  %v5464_v29 = vld [vmem:[#allocation12 + $0x4] ss:$16 sps:$4 sm:$0xff]   ;;  %v5465_v30 = vld [vmem:[#allocation12 + $0xc] ss:$16 sps:$4 sm:$0xff]  }
 0xdaf   :  { %5372 = vpow2.f32 %v4915_v40  ;;  %v6999_v57 = vld [vmem:[#allocation28_spill] sm:$0xff]  ;;  %v7000_v33 = vld [vmem:[#allocation29_spill] sm:$0xff]  ;;  %v7001_v49 = vld [vmem:[#allocation30_spill] sm:$0xff] }
 0xdb0   :  { %5374 = vtanh.f32 %v4129_v1  ;;  %v3269_v10 = vadd.f32 %v6999_v57, %v6526_v36  ;;  %v3342_v1 = vadd.f32 %v7000_v33, %v6530_v16  ;;  %v3271_v31 = vadd.f32 %v7001_v49, %v6538_v53  ;;  %v7002_v46 = vld [vmem:[#allocation31_spill] sm:$0xff] }
 0xdb1   :  { %5376 = vpow2.f32 %v4916_v41  ;;  %v3344_v20 = vadd.f32 %v7002_v46, %v6542_v4 }
 0xdb8   :  { %v5371_v58 = vpop.eup %5370 }
 0xdb9   :  { %v4139_v11 = vadd.f32 1.0, %v5371_v58  ;;  %v5373_v14 = vpop.eup %5372 }
 0xdba   :  { %v4140_v62 = vadd.f32 1.0, %v5373_v14  ;;  %v5375_v43 = vpop.eup %5374 }
 0xdbb   :  { %5378 = vrcp.f32 %v4139_v11  ;;  %v5377_v44 = vpop.eup %5376 }
 0xdbc   :  { %5380 = vrcp.f32 %v4140_v62  ;;  %v4141_v26 = vadd.f32 1.0, %v5377_v44 }
 0xdbe   :  { %5382 = vrcp.f32 %v4141_v26 }
 0xdc5   :  { %v5379_v48 = vpop.eup %5378 }
 0xdc6   :  { %v4150_v50 = vmul.f32 %v5379_v48, %v5375_v43  ;;  %v5381_v5 = vpop.eup %5380 }
 0xdc7   :  { %v4149_v55 = vmul.f32 %v5381_v5, %v6690_v27  ;;  %v6786_v27 = vld [vmem:[#allocation12 + $0x8c] ss:$16 sps:$4 sm:$0xff]  }
 0xdc8   :  { %v5383_v3 = vpop.eup %5382 }
 0xdc9   :  { %v6736_v24 = vadd.f32 %v4150_v50, %v4149_v55 }
 0xdcb   :  { %5384 = vtanh.f32 %v6736_v24 }
 0xdd5   :  { %v5385_v25 = vpop.eup %5384 }
 0xdd6   :  { %v4153_v35 = vmul.f32 %v5385_v25, %v5383_v3 }
 0xdd8   :  { %v4158_v15 = vpack.c.bf16 %v4153_v35, %v4153_v35 }
 0xdda   :  { %4192 = vmatmul.mubr.bf16.vlgmr.msra.gmra.mrb[84].mxu0 %v4158_v15  ;;  %4233 = vmatmul.mubr.bf16.vlgmr.msra.gmra.mrb[84].mxu1 %v4158_v15 }
 0xddb   :  { %4275 = vmatpush1.bf16.msra.mxu0 %v6739_v9  ;;  %4316 = vmatpush1.bf16.msra.mxu1 %v6742_v59 }
 0xddc   :  { %4276 = vmatprep.subr.bf16.mxu0 %v6745_v7  ;;  %4317 = vmatprep.subr.bf16.mxu1 %v6748_v60 }
 0xddd   :  { %4306 = vmatprep.mubr.bf16.mxu0 %v6938_v17  ;;  %4347 = vmatprep.mubr.bf16.mxu1 %v6938_v17 }
 0xddf   :  { %4277 = vmatpush1.bf16.msra.mxu0 %v6753_v63  ;;  %4318 = vmatpush1.bf16.msra.mxu1 %v6756_v6 }
 0xde0   :  { %4278 = vmatprep.subr.bf16.mxu0 %v6759_v22  ;;  %4319 = vmatprep.subr.bf16.mxu1 %v6762_v52 }
 0xde3   :  { %4279 = vmatpush1.bf16.msra.mxu0 %v6765_v47  ;;  %4320 = vmatpush1.bf16.msra.mxu1 %v6768_v2 }
 0xde4   :  { %4280 = vmatprep.subr.bf16.mxu0 %v6771_v37  ;;  %4321 = vmatprep.subr.bf16.mxu1 %v6774_v21 }
 0xde7   :  { %4281 = vmatpush1.bf16.msra.mxu0 %v6777_v0  ;;  %4322 = vmatpush1.bf16.msra.mxu1 %v6780_v13 }
 0xde8   :  { %4282 = vmatprep.subr.bf16.mxu0 %v6783_v18  ;;  %4323 = vmatprep.subr.bf16.mxu1 %v6786_v27 }
 0xdeb   :  { %4283 = vmatpush1.bf16.msra.mxu0 %v6789_v42  ;;  %4324 = vmatpush1.bf16.msra.mxu1 %v6792_v23 }
 0xdec   :  { %4284 = vmatprep.subr.bf16.mxu0 %v6795_v12  ;;  %4325 = vmatprep.subr.bf16.mxu1 %v6798_v54 }
 0xdef   :  { %4285 = vmatpush1.bf16.msra.mxu0 %v6801_v56  ;;  %4326 = vmatpush1.bf16.msra.mxu1 %v6804_v51 }
 0xdf0   :  { %4286 = vmatprep.subr.bf16.mxu0 %v6807_v61  ;;  %4327 = vmatprep.subr.bf16.mxu1 %v6810_v8 }
 0xdf3   :  { %4287 = vmatpush1.bf16.msra.mxu0 %v6813_v28  ;;  %4328 = vmatpush1.bf16.msra.mxu1 %v6816_v32 }
 0xdf4   :  { %4288 = vmatprep.subr.bf16.mxu0 %v6819_v34  ;;  %4329 = vmatprep.subr.bf16.mxu1 %v6822_v38 }
 0xdf7   :  { %4289 = vmatpush1.bf16.msra.mxu0 %v6825_v19  ;;  %4330 = vmatpush1.bf16.msra.mxu1 %v6828_v45 }
 0xdf8   :  { %4389 = vmatprep.subr.bf16.mxu0 %v5464_v29  ;;  %4430 = vmatprep.subr.bf16.mxu1 %v5465_v30 }
 0xead   :  { %v4193_v39 = vpop.f32.mrb[84].mxu0  ;;  %v4234_v40 = vpop.f32.mrb[84].mxu1 }
 0xeae   :  { %v4241_v41 = vadd.f32 %v4193_v39, %v3269_v10  ;;  %v4243_v58 = vadd.f32 %v4234_v40, %v3342_v1  ;;  %v4195_v11 = vpop.f32.mrb[85].mxu0  ;;  %v4236_v14 = vpop.f32.mrb[85].mxu1 }
 0xeaf   :  { %v4242_v62 = vadd.f32 %v4195_v11, %v3271_v31  ;;  %v4244_v43 = vadd.f32 %v4236_v14, %v3344_v20  ;;  %v4197_v44 = vpop.f32.mrb[86].mxu0  ;;  %v4238_v48 = vpop.f32.mrb[86].mxu1 }
 0xeb0   :  { %v4917_v50 = vmul.f32 -1.442695, %v4241_v41  ;;  %v4198_v5 = vpop.f32.mrb[87].mxu0  ;;  %v4239_v26 = vpop.f32.mrb[87].mxu1  ;;  %v4919_v3 = vmul.f32 -1.442695, %v4243_v58 }
 0xeb1   :  { %v4918_v55 = vmul.f32 -1.442695, %v4242_v62  ;;  %v7008_v26 = vld [vmem:[#allocation37_spill] sm:$0xff] }
 0xeb2   :  { %5386 = vpow2.f32 %v4917_v50  ;;  %v7007_v50 = vld [vmem:[#allocation36_spill] sm:$0xff] }
 0xeb3   :  { %5388 = vpow2.f32 %v4918_v55  ;;  %v3279_v5 = vadd.f32 %v7007_v50, %v6526_v36  ;;  %v3352_v55 = vadd.f32 %v7008_v26, %v6530_v16 }
 0xeb4   :  { %5390 = vtanh.f32 %v4244_v43 }
 0xeb5   :  { %5392 = vpow2.f32 %v4919_v3  ;;  %v7009_v3 = vld [vmem:[#allocation16_spill] sm:$0xff] }
 0xebc   :  { %v5387_v25 = vpop.eup %5386 }
 0xebd   :  { %v4254_v35 = vadd.f32 1.0, %v5387_v25  ;;  %v5389_v15 = vpop.eup %5388  ;;  %v3281_v25 = vadd.f32 %v7009_v3, %v6538_v53 }
 0xebe   :  { %v4255_v29 = vadd.f32 1.0, %v5389_v15  ;;  %v5391_v30 = vpop.eup %5390 }
 0xebf   :  { %5394 = vrcp.f32 %v4254_v35  ;;  %v5393_v57 = vpop.eup %5392  ;;  %v7010_v35 = vld [vmem:[#allocation38_spill] sm:$0xff] }
 0xec0   :  { %5396 = vrcp.f32 %v4255_v29  ;;  %v4256_v49 = vadd.f32 1.0, %v5393_v57  ;;  %v3354_v15 = vadd.f32 %v7010_v35, %v6542_v4 }
 0xec2   :  { %5398 = vrcp.f32 %v4256_v49 }
 0xec9   :  { %v5395_v10 = vpop.eup %5394 }
 0xeca   :  { %v4265_v33 = vmul.f32 %v5395_v10, %v5391_v30  ;;  %v5397_v1 = vpop.eup %5396 }
 0xecb   :  { %v4264_v31 = vmul.f32 %v5397_v1, %v6736_v24 }
 0xecc   :  { %v5399_v20 = vpop.eup %5398 }
 0xecd   :  { %v6840_v46 = vadd.f32 %v4265_v33, %v4264_v31 }
 0xecf   :  { %5400 = vtanh.f32 %v6840_v46 }
 0xed9   :  { %v5401_v39 = vpop.eup %5400 }
 0xeda   :  { %v4268_v40 = vmul.f32 %v5401_v39, %v5399_v20 }
 0xedc   :  { %v4273_v41 = vpack.c.bf16 %v4268_v40, %v4268_v40 }
 0xede   :  { %4307 = vmatmul.mubr.bf16.vlgmr.msra.gmra.mrb[88].mxu0 %v4273_v41  ;;  %4348 = vmatmul.mubr.bf16.vlgmr.msra.gmra.mrb[88].mxu1 %v4273_v41 }
 0xedf   :  { %4390 = vmatpush1.bf16.msra.mxu0 %v6739_v9  ;;  %4431 = vmatpush1.bf16.msra.mxu1 %v6742_v59  ;;  %v7004_v9 = vld [vmem:[#allocation33_spill] sm:$0xff] }
 0xee0   :  { %4391 = vmatprep.subr.bf16.mxu0 %v6745_v7  ;;  %4432 = vmatprep.subr.bf16.mxu1 %v6748_v60  ;;  %v3348_v59 = vadd.f32 %v7004_v9, %v6530_v16  ;;  %v7005_v7 = vld [vmem:[#allocation34_spill] sm:$0xff] }
 0xee1   :  { %4421 = vmatprep.mubr.bf16.mxu0 %v6938_v17  ;;  %4462 = vmatprep.mubr.bf16.mxu1 %v6938_v17  ;;  %v7003_v17 = vld [vmem:[#allocation32_spill] sm:$0xff]  ;;  %v3277_v60 = vadd.f32 %v7005_v7, %v6538_v53 }
 0xee2   :  { %v3275_v24 = vadd.f32 %v7003_v17, %v6526_v36 }
 0xee3   :  { %4392 = vmatpush1.bf16.msra.mxu0 %v6753_v63  ;;  %4433 = vmatpush1.bf16.msra.mxu1 %v6756_v6  ;;  %v7006_v63 = vld [vmem:[#allocation35_spill] sm:$0xff] }
 0xee4   :  { %4393 = vmatprep.subr.bf16.mxu0 %v6759_v22  ;;  %4434 = vmatprep.subr.bf16.mxu1 %v6762_v52  ;;  %v3350_v6 = vadd.f32 %v7006_v63, %v6542_v4 }
 0xee7   :  { %4394 = vmatpush1.bf16.msra.mxu0 %v6765_v47  ;;  %4435 = vmatpush1.bf16.msra.mxu1 %v6768_v2 }
 0xee8   :  { %4395 = vmatprep.subr.bf16.mxu0 %v6771_v37  ;;  %4436 = vmatprep.subr.bf16.mxu1 %v6774_v21 }
 0xeeb   :  { %4396 = vmatpush1.bf16.msra.mxu0 %v6777_v0  ;;  %4437 = vmatpush1.bf16.msra.mxu1 %v6780_v13 }
 0xeec   :  { %4397 = vmatprep.subr.bf16.mxu0 %v6783_v18  ;;  %4438 = vmatprep.subr.bf16.mxu1 %v6786_v27 }
 0xeef   :  { %4398 = vmatpush1.bf16.msra.mxu0 %v6789_v42  ;;  %4439 = vmatpush1.bf16.msra.mxu1 %v6792_v23 }
 0xef0   :  { %4399 = vmatprep.subr.bf16.mxu0 %v6795_v12  ;;  %4440 = vmatprep.subr.bf16.mxu1 %v6798_v54 }
 0xef3   :  { %4400 = vmatpush1.bf16.msra.mxu0 %v6801_v56  ;;  %4441 = vmatpush1.bf16.msra.mxu1 %v6804_v51 }
 0xef4   :  { %4401 = vmatprep.subr.bf16.mxu0 %v6807_v61  ;;  %4442 = vmatprep.subr.bf16.mxu1 %v6810_v8 }
 0xef7   :  { %4402 = vmatpush1.bf16.msra.mxu0 %v6813_v28  ;;  %4443 = vmatpush1.bf16.msra.mxu1 %v6816_v32 }
 0xef8   :  { %4403 = vmatprep.subr.bf16.mxu0 %v6819_v34  ;;  %4444 = vmatprep.subr.bf16.mxu1 %v6822_v38 }
 0xefb   :  { %4404 = vmatpush1.bf16.msra.mxu0 %v6825_v19  ;;  %4445 = vmatpush1.bf16.msra.mxu1 %v6828_v45 }
 0xfb1   :  { %v4308_v22 = vpop.f32.mrb[88].mxu0  ;;  %v4349_v52 = vpop.f32.mrb[88].mxu1 }
 0xfb2   :  { %v4356_v47 = vadd.f32 %v4308_v22, %v3275_v24  ;;  %v4358_v2 = vadd.f32 %v4349_v52, %v3348_v59  ;;  %v4310_v37 = vpop.f32.mrb[89].mxu0  ;;  %v4351_v21 = vpop.f32.mrb[89].mxu1 }
 0xfb3   :  { %v4357_v0 = vadd.f32 %v4310_v37, %v3277_v60  ;;  %v4359_v13 = vadd.f32 %v4351_v21, %v3350_v6  ;;  %v4312_v18 = vpop.f32.mrb[90].mxu0  ;;  %v4353_v27 = vpop.f32.mrb[90].mxu1  ;;  %v4926_v37 = vld [vmem:[%s6905_s7] ss:$0 sm:$0xff] }
 0xfb4   :  { %v4920_v42 = vmul.f32 -1.442695, %v4356_v47  ;;  %v4313_v23 = vpop.f32.mrb[91].mxu0  ;;  %v4354_v12 = vpop.f32.mrb[91].mxu1  ;;  %v4922_v56 = vmul.f32 -1.442695, %v4358_v2 }
 0xfb5   :  { %v4921_v54 = vmul.f32 -1.442695, %v4357_v0 }
 0xfb6   :  { %5402 = vpow2.f32 %v4920_v42 }
 0xfb7   :  { %5404 = vpow2.f32 %v4921_v54 }
 0xfb8   :  { %5406 = vtanh.f32 %v4359_v13  ;;  %v4927_v13 = vld [vmem:[#allocation4] ss:$0 sm:$0xff] }
 0xfb9   :  { %5408 = vpow2.f32 %v4922_v56 }
 0xfc0   :  { %v5403_v51 = vpop.eup %5402 }
 0xfc1   :  { %v4369_v61 = vadd.f32 1.0, %v5403_v51  ;;  %v5405_v8 = vpop.eup %5404 }
 0xfc2   :  { %v4370_v28 = vadd.f32 1.0, %v5405_v8  ;;  %v5407_v32 = vpop.eup %5406 }
 0xfc3   :  { %5410 = vrcp.f32 %v4369_v61  ;;  %v5409_v34 = vpop.eup %5408 }
 0xfc4   :  { %5412 = vrcp.f32 %v4370_v28  ;;  %v4371_v58 = vadd.f32 1.0, %v5409_v34 }
 0xfc6   :  { %5414 = vrcp.f32 %v4371_v58 }
 0xfcd   :  { %v5411_v38 = vpop.eup %5410 }
 0xfce   :  { %v4380_v19 = vmul.f32 %v5411_v38, %v5407_v32  ;;  %v5413_v45 = vpop.eup %5412 }
 0xfcf   :  { %v4379_v11 = vmul.f32 %v5413_v45, %v6840_v46 }
 0xfd0   :  { %v5415_v62 = vpop.eup %5414 }
 0xfd1   :  { %v4381_v14 = vadd.f32 %v4380_v19, %v4379_v11 }
 0xfd3   :  { %5416 = vtanh.f32 %v4381_v14 }
 0xfdd   :  { %v5417_v43 = vpop.eup %5416 }
 0xfde   :  { %v4383_v44 = vmul.f32 %v5417_v43, %v5415_v62 }
 0xfe0   :  { %v4388_v48 = vpack.c.bf16 %v4383_v44, %v4383_v44 }
 0xfe2   :  { %4422 = vmatmul.mubr.bf16.vlgmr.msra.gmra.mrb[92].mxu0 %v4388_v48  ;;  %4463 = vmatmul.mubr.bf16.vlgmr.msra.gmra.mrb[92].mxu1 %v4388_v48 }
0x10b5   :  { %v4423_v29 = vpop.f32.mrb[92].mxu0  ;;  %v4464_v30 = vpop.f32.mrb[92].mxu1 }
0x10b6   :  { %v4471_v57 = vadd.f32 %v4423_v29, %v3279_v5  ;;  %v4473_v10 = vadd.f32 %v4464_v30, %v3352_v55  ;;  %v4425_v33 = vpop.f32.mrb[93].mxu0  ;;  %v4466_v1 = vpop.f32.mrb[93].mxu1 }
0x10b7   :  { %v4472_v49 = vadd.f32 %v4425_v33, %v3281_v25  ;;  %v4474_v31 = vadd.f32 %v4466_v1, %v3354_v15  ;;  %v4427_v46 = vpop.f32.mrb[94].mxu0  ;;  %v4468_v20 = vpop.f32.mrb[94].mxu1 }
0x10b8   :  { %v4923_v36 = vmul.f32 -1.442695, %v4471_v57  ;;  %v4428_v39 = vpop.f32.mrb[95].mxu0  ;;  %v4469_v40 = vpop.f32.mrb[95].mxu1  ;;  %v4925_v53 = vmul.f32 -1.442695, %v4473_v10 }
0x10b9   :  { %v4924_v16 = vmul.f32 -1.442695, %v4472_v49 }
0x10ba   :  { %5418 = vpow2.f32 %v4923_v36 }
0x10bb   :  { %5420 = vpow2.f32 %v4924_v16 }
0x10bc   :  { %5422 = vtanh.f32 %v4474_v31 }
0x10bd   :  { %5424 = vpow2.f32 %v4925_v53 }
0x10c4   :  { %v5419_v41 = vpop.eup %5418 }
0x10c5   :  { %v4484_v17 = vadd.f32 1.0, %v5419_v41  ;;  %v5421_v4 = vpop.eup %5420 }
0x10c6   :  { %v4485_v24 = vadd.f32 1.0, %v5421_v4  ;;  %v5423_v9 = vpop.eup %5422 }
0x10c7   :  { %5426 = vrcp.f32 %v4484_v17  ;;  %v5425_v59 = vpop.eup %5424 }
0x10c8   :  { %5428 = vrcp.f32 %v4485_v24  ;;  %v4486_v6 = vadd.f32 1.0, %v5425_v59 }
0x10ca   :  { %5430 = vrcp.f32 %v4486_v6 }
0x10d1   :  { %v5427_v7 = vpop.eup %5426 }
0x10d2   :  { %v4495_v60 = vmul.f32 %v5427_v7, %v5423_v9  ;;  %v5429_v63 = vpop.eup %5428 }
0x10d3   :  { %v4494_v22 = vmul.f32 %v5429_v63, %v4381_v14 }
0x10d4   :  { %v5431_v47 = vpop.eup %5430 }
0x10d5   :  { %v4496_v52 = vadd.f32 %v4495_v60, %v4494_v22 }
0x10d7   :  { %5432 = vtanh.f32 %v4496_v52 }
0x10e1   :  { %v5433_v2 = vpop.eup %5432 }
0x10e2   :  { %v4498_v21 = vmul.f32 %v5433_v2, %v5431_v47 }
0x10e4   :  { %v4506_v0 = vmul.f32 %v4926_v37, %v4498_v21 }
0x10e6   :  { %4507 = vadd.xlane.f32.xlu0 %v4506_v0 }
0x1173   :  { %v4508_v18 = vpop.xlane.xlu0 %4507 }
0x1174   :  { %v4516_v27 = vadd.f32 %v4927_v13, %v4508_v18 }
0x1176   :  { %4518 = vst.msk [vmem:[%s6907_s9] sm:$0xff] %vm4517_vm0, %v4516_v27 }
0x1177   :  { %4523 = vsyncpa [#allocation6], 1 }
0x1178   :  { %4524 = vsyncpa [#allocation8], 1 }
0x1179   :  { %4525 = vsyncpa [#allocation11], 1 }

</bundles_post_ra>
